<compile_context>
chip_gen: v7x
topology: tpu7x:2x2x1
jax: 0.10.0
libtpu: 0.0.40
codegen_flags: <defaults>
</compile_context>

<pallas_src>
import functools

import jax
import jax.numpy as jnp
from jax.experimental import pallas as pl
from jax.experimental.pallas import tpu as pltpu

_LANE = 128
_BN_EPS = 1e-5


# -----------------------------------------------------------------------------
# Synthetic parameters in *PyTorch native layouts*
# -----------------------------------------------------------------------------
def _conv_channel_schedule(c_in, c_out, min_layer_nums=3):
    chans, cur = [], c_in
    while cur < c_out:
        nxt = cur * 2 if cur * 2 < c_out else c_out
        chans.append((cur, nxt))
        cur = nxt
    while len(chans) < min_layer_nums:
        chans.append((c_out, c_out))
    return chans


def init_params(key, input_size, embed_size, hidden_size, num_rnn_layers):
    """Conv1d (Cout,Cin,3), BN stats, GRU weight_ih (3H,In) / weight_hh (3H,H)
    with gate order [r,z,n], Linear (1,2H) -- i.e. checkpoint-like layouts."""
    def nxt():
        nonlocal key
        key, sub = jax.random.split(key)
        return sub

    rnd = lambda shape, s: s * jax.random.normal(nxt(), shape, jnp.float32)

    conv = []
    for (cin, cout) in _conv_channel_schedule(input_size, embed_size, 3):
        conv.append(dict(
            weight=rnd((cout, cin, 3), 0.2), bias=rnd((cout,), 0.1),
            gamma=1.0 + rnd((cout,), 0.1), beta=rnd((cout,), 0.1),
            mean=rnd((cout,), 0.1), var=jnp.abs(1.0 + rnd((cout,), 0.1))))

    H = hidden_size
    gru = []
    for layer in range(num_rnn_layers):
        In = embed_size if layer == 0 else 2 * H
        gru.append({d: dict(w_ih=rnd((3 * H, In), 0.2), w_hh=rnd((3 * H, H), 0.2),
                            b_ih=rnd((3 * H,), 0.1), b_hh=rnd((3 * H,), 0.1))
                    for d in ("fwd", "bwd")})

    out = dict(weight=rnd((1, 2 * H), 0.2), bias=rnd((1,), 0.1))
    return dict(conv=conv, gru=gru, out=out)


# -----------------------------------------------------------------------------
# Offline packing: PyTorch layouts -> 2 flat lane-aligned arrays + static layout
# -----------------------------------------------------------------------------
def pack_params(params, hidden_size):
    """Fold BN into per-channel scale/bias, fuse fwd/bwd GRU gates into the
    [r_f r_b | z_f z_b | n_f n_b] column order with a block-diagonal W_hh, and
    pack everything into:
        wpack : bf16 (rows, 128)  -- all matmul weights (16-row aligned blocks)
        bpack : f32  (rows, 128)  -- all scales / folded biases
    Returns (wpack, bpack, layout); layout holds only static Python ints."""
    H = hidden_size
    w_items, b_items = [], []
    w_rows, b_rows = 0, 0

    def add_w(mat):
        nonlocal w_rows
        r, c = mat.shape
        rp = -(-r // 16) * 16                      # bf16 sublane tile = 16 rows
        blk = jnp.zeros((rp, _LANE), jnp.float32).at[:r, :c].set(mat)
        w_items.append(blk.astype(jnp.bfloat16))
        off = w_rows
        w_rows += rp
        return off

    def add_b(rows2d):
        nonlocal b_rows
        r, c = rows2d.shape
        blk = jnp.zeros((r, _LANE), jnp.float32).at[:, :c].set(rows2d)
        b_items.append(blk)
        off = b_rows
        b_rows += r
        return off

    layout = dict(H=H, conv=[], gru=[])

    # ---- conv layers: per-tap (cin, cout) slabs packed as (cin, 3*cout) ----
    for p in params["conv"]:
        cout, cin, _ = p["weight"].shape
        w3 = jnp.concatenate([p["weight"][:, :, k].T for k in range(3)], axis=1)
        scale = p["gamma"] / jnp.sqrt(p["var"] + _BN_EPS)
        bias = (p["bias"] - p["mean"]) * scale + p["beta"]   # conv bias folded into BN
        layout["conv"].append(dict(cin=cin, cout=cout, w_off=add_w(w3),
                                   sb_off=add_b(jnp.stack([scale, bias], 0))))

    # ---- GRU layers: fused-direction, gate-interleaved packing ----
    for dirs in params["gru"]:
        In = dirs["fwd"]["w_ih"].shape[1]

        def ih_wide(d, col0):
            # (3H, In) PyTorch weight_ih -> (In, 6H), gate g of direction d at
            # columns (2g + dir)*H : (2g + dir + 1)*H, zeros elsewhere.
            wide = jnp.zeros((In, 6 * H), jnp.float32)
            for g in range(3):
                blk = dirs[d]["w_ih"][g * H:(g + 1) * H, :].T
                wide = wide.at[:, (2 * g) * H + col0:(2 * g) * H + col0 + H].set(blk)
            return wide

        whh = jnp.zeros((2 * H, 6 * H), jnp.float32)          # block-diagonal
        for di, d in enumerate(("fwd", "bwd")):
            for g in range(3):
                blk = dirs[d]["w_hh"][g * H:(g + 1) * H, :].T
                whh = whh.at[di * H:(di + 1) * H,
                             (2 * g + di) * H:(2 * g + di + 1) * H].set(blk)

        def gate_interleave(vf, vb):                           # (3H,),(3H,) -> (6H,)
            parts = []
            for g in range(3):
                parts += [vf[g * H:(g + 1) * H], vb[g * H:(g + 1) * H]]
            return jnp.concatenate(parts)

        def in_bias(d):   # r/z hidden-side biases folded into the input-side bias
            b_ih, b_hh = dirs[d]["b_ih"], dirs[d]["b_hh"]
            return jnp.concatenate([b_ih[:2 * H] + b_hh[:2 * H], b_ih[2 * H:]])

        def hid_bias(d):  # only b_hn stays on the hidden side (inside r * (...))
            return jnp.concatenate([jnp.zeros((2 * H,), jnp.float32),
                                    dirs[d]["b_hh"][2 * H:]])

        b_i = gate_interleave(in_bias("fwd"), in_bias("bwd"))
        b_h = gate_interleave(hid_bias("fwd"), hid_bias("bwd"))
        layout["gru"].append(dict(in_l=In,
                                  wif_off=add_w(ih_wide("fwd", 0)),
                                  wib_off=add_w(ih_wide("bwd", H)),
                                  whh_off=add_w(whh),
                                  b_off=add_b(jnp.stack([b_i, b_h], 0))))

    layout["out"] = dict(w_off=add_w(params["out"]["weight"].T),     # (2H, 1)
                         b_off=add_b(params["out"]["bias"].reshape(1, 1)))

    wpack = jnp.concatenate(w_items, axis=0)
    bpack = jnp.concatenate(b_items, axis=0)
    pad = (-b_rows) % 8
    if pad:
        bpack = jnp.concatenate([bpack, jnp.zeros((pad, _LANE), jnp.float32)], 0)
    return wpack, bpack, layout


# -----------------------------------------------------------------------------
# Fused kernel: conv stack + fused bidirectional GRU + Linear
# -----------------------------------------------------------------------------
def _make_fused_kernel(layout, B, T):
    H = layout["H"]
    n_gru = len(layout["gru"])
    TB = T * B

    def kernel(x_ref, wpack_ref, bpack_ref, out_ref, *scratch):
        mid_scr = scratch[0] if scratch else None

        # ---- pre_conv: [Conv1d(k=3,p=1) -> BN(eval, folded) -> ReLU] stack ----
        h = None
        for idx, c in enumerate(layout["conv"]):
            cin, cout = c["cin"], c["cout"]
            w3 = wpack_ref[c["w_off"]:c["w_off"] + cin, 0:3 * cout]  # (cin,3cout) bf16
            if idx == 0:
                # NCW input: cast + NCW->time-major fold into the first tap matmul
                # (per-batch 2D transpose, batch stacked into the sublane axis).
                x = x_ref[...].astype(jnp.float32)                   # (B, cin, T)
                rows = [jnp.dot(x[b].T.astype(jnp.bfloat16), w3,
                                preferred_element_type=jnp.float32)
                        for b in range(B)]                           # B x (T, 3cout)
                y3 = jnp.stack(rows, axis=1).reshape(TB, 3 * cout)   # time-major rows
            else:
                y3 = jnp.dot(h.astype(jnp.bfloat16), w3,
                             preferred_element_type=jnp.float32)     # (TB, 3cout)
            # 3-tap combine via sublane shifts (zero padding built in, no lane concat)
            zb = jnp.zeros((B, cout), jnp.float32)
            y = y3[:, cout:2 * cout]                                            # x[t]
            y = y + jnp.concatenate([zb, y3[:TB - B, 0:cout]], axis=0)          # x[t-1]
            y = y + jnp.concatenate([y3[B:, 2 * cout:3 * cout], zb], axis=0)    # x[t+1]
            sb = bpack_ref[c["sb_off"]:c["sb_off"] + 2, 0:cout]      # scale / bias
            h = jnp.maximum(y * sb[0:1, :] + sb[1:2, :], 0.0)        # folded BN + ReLU

        # ---- bidirectional multi-layer GRU, fwd+bwd fused per layer ----
        seq = h                                                      # (TB, In0) f32
        hb_first = None
        for li, g in enumerate(layout["gru"]):
            In, H6 = g["in_l"], 6 * H
            is_last = li == n_gru - 1
            wif = wpack_ref[g["wif_off"]:g["wif_off"] + In, 0:H6]
            wib = wpack_ref[g["wib_off"]:g["wib_off"] + In, 0:H6]
            whh = wpack_ref[g["whh_off"]:g["whh_off"] + 2 * H, 0:H6]
            bb = bpack_ref[g["b_off"]:g["b_off"] + 2, 0:H6]
            b_i, b_hn = bb[0:1, :], bb[1:2, 4 * H:6 * H]
            # Hoisted x-side projections (all timesteps, both directions, zero-padded
            # into the fused [rf rb | zf zb | nf nb] column layout -> per-step add only).
            seq_b = seq.astype(jnp.bfloat16)
            gi_f = (jnp.dot(seq_b, wif, preferred_element_type=jnp.float32)
                    + b_i).reshape(T, B, H6)
            gi_b = jnp.dot(seq_b, wib,
                           preferred_element_type=jnp.float32).reshape(T, B, H6)
            # Fused recurrence: carry h2 = [h_fwd | h_bwd]; one (B,2H)x(2H,6H) matmul,
            # one sigmoid (4H lanes), one tanh (2H lanes) per step.  T is tiny ->
            # static unroll so the scheduler sees the whole chain.
            h2 = jnp.zeros((B, 2 * H), jnp.float32)
            for s in range(T):
                gi_t = gi_f[s] + gi_b[T - 1 - s]                     # (B, 6H)
                gh = jnp.dot(h2.astype(jnp.bfloat16), whh,
                             preferred_element_type=jnp.float32)     # (B, 6H)
                rz = jax.nn.sigmoid(gi_t[:, :4 * H] + gh[:, :4 * H])
                r, z = rz[:, :2 * H], rz[:, 2 * H:]
                n = jnp.tanh(gi_t[:, 4 * H:] + r * (gh[:, 4 * H:] + b_hn))
                h2 = (1.0 - z) * n + z * h2
                if not is_last:
                    # middle-layer outputs straight into VMEM scratch (time-major):
                    # fwd part belongs to time s, bwd part to time T-1-s.
                    mid_scr[s, :, 0:H] = h2[:, 0:H]
                    mid_scr[T - 1 - s, :, H:2 * H] = h2[:, H:2 * H]
                elif s == 0:
                    hb_first = h2[:, H:2 * H]        # bwd output at t = T-1
            if not is_last:
                seq = mid_scr[...].reshape(TB, 2 * H)

        # ---- out: Linear(2H -> 1); split dot over [fwd | bwd] avoids a lane concat --
        ow = layout["out"]
        w_out = wpack_ref[ow["w_off"]:ow["w_off"] + 2 * H, 0:1]      # (2H, 1) bf16
        b_out = bpack_ref[ow["b_off"]:ow["b_off"] + 1, 0:1]          # (1, 1) f32
        out_ref[...] = (
            jnp.dot(h2[:, 0:H].astype(jnp.bfloat16), w_out[0:H, :],
                    preferred_element_type=jnp.float32)
            + jnp.dot(hb_first.astype(jnp.bfloat16), w_out[H:2 * H, :],
                      preferred_element_type=jnp.float32)
            + b_out)

    return kernel


# -----------------------------------------------------------------------------
# Full forward: one pallas_call, three operands, (B, 1) out
# -----------------------------------------------------------------------------
def conv_discriminator_forward(wpack, bpack, layout, x):
    """x: (B, C_in, T) PyTorch NCW input.  Cast, layout permutation, conv stack,
    bi-GRU and final Linear all run inside a single fused kernel."""
    B, _, T = x.shape
    H = layout["H"]
    scratch = ([pltpu.VMEM((T, B, 2 * H), jnp.float32)]
               if len(layout["gru"]) > 1 else [])
    # TODO(synk): for production batch sizes add grid=(B//tile_b,) with
    # dimension_semantics=("parallel",) so v7x's two TensorCores split the batch;
    # at B=2 a single invocation is cheaper than a cross-core split.
    return pl.pallas_call(
        _make_fused_kernel(layout, B, T),
        out_shape=jax.ShapeDtypeStruct((B, 1), jnp.float32),
        scratch_shapes=scratch,
    )(x, wpack, bpack)


if __name__ == "__main__":
    input_size, embed_size, hidden_size, num_rnn_layers = 6, 32, 16, 2
    B, T = 2, 8

    key = jax.random.PRNGKey(0)
    pkey, xkey = jax.random.split(key)
    params = init_params(pkey, input_size, embed_size, hidden_size, num_rnn_layers)
    wpack, bpack, layout = pack_params(params, hidden_size)
    x = jax.random.normal(xkey, (B, input_size, T), jnp.float32)   # PyTorch NCW input

    fwd = jax.jit(functools.partial(conv_discriminator_forward, wpack, bpack, layout))
    out = jax.block_until_ready(fwd(x))

    assert out.shape == (B, 1), out.shape
    assert bool(jnp.all(jnp.isfinite(out)))
    print("KERNEL_OK")
</pallas_src>

<mosaic_0001>
module attributes {stable_mosaic.version = 11 : i64} {
  func.func @kernel(%arg0: memref<2x6x8xf32, #tpu.memory_space<vmem>>, %arg1: memref<288x128xbf16, #tpu.memory_space<vmem>>, %arg2: memref<16x128xf32, #tpu.memory_space<vmem>>, %arg3: memref<2x1xf32, #tpu.memory_space<vmem>>, %arg4: memref<8x2x32xf32, #tpu.memory_space<vmem>>) attributes {dimension_semantics = [], scalar_prefetch = 0 : i64, scratch_operands = 1 : i64, tpu.core_type = #tpu.core_type<tc>} {
    %c0 = arith.constant 0 : index
    %c0_0 = arith.constant 0 : index
    %0 = vector.load %arg1[%c0, %c0_0] : memref<288x128xbf16, #tpu.memory_space<vmem>>, vector<6x36xbf16>
    %c0_1 = arith.constant 0 : index
    %c0_2 = arith.constant 0 : index
    %c0_3 = arith.constant 0 : index
    %1 = vector.load %arg0[%c0_1, %c0_2, %c0_3] : memref<2x6x8xf32, #tpu.memory_space<vmem>>, vector<2x6x8xf32>
    %2 = vector.extract_strided_slice %1 {offsets = [0, 0, 0], sizes = [1, 6, 8], strides = [1, 1, 1]} : vector<2x6x8xf32> to vector<1x6x8xf32>
    %3 = vector.shape_cast %2 : vector<1x6x8xf32> to vector<6x8xf32>
    %4 = tpu.transpose %3, [1, 0] : vector<6x8xf32> -> vector<8x6xf32>
    %5 = arith.truncf %4 : vector<8x6xf32> to vector<8x6xbf16>
    %cst = arith.constant dense<0.000000e+00> : vector<8x36xf32>
    %6 = tpu.matmul %5, %0, %cst {dimension_numbers = #tpu.dot_dimension_numbers<[1], [0], [0], [1], [0, 0, 1, 1], [], []>} : vector<8x6xbf16>, vector<6x36xbf16>, vector<8x36xf32> -> vector<8x36xf32>
    %7 = vector.extract_strided_slice %1 {offsets = [1, 0, 0], sizes = [1, 6, 8], strides = [1, 1, 1]} : vector<2x6x8xf32> to vector<1x6x8xf32>
    %8 = vector.shape_cast %7 : vector<1x6x8xf32> to vector<6x8xf32>
    %9 = tpu.transpose %8, [1, 0] : vector<6x8xf32> -> vector<8x6xf32>
    %10 = arith.truncf %9 : vector<8x6xf32> to vector<8x6xbf16>
    %cst_4 = arith.constant dense<0.000000e+00> : vector<8x36xf32>
    %11 = tpu.matmul %10, %0, %cst_4 {dimension_numbers = #tpu.dot_dimension_numbers<[1], [0], [0], [1], [0, 0, 1, 1], [], []>} : vector<8x6xbf16>, vector<6x36xbf16>, vector<8x36xf32> -> vector<8x36xf32>
    %12 = vector.shape_cast %6 : vector<8x36xf32> to vector<8x1x36xf32>
    %13 = vector.shape_cast %11 : vector<8x36xf32> to vector<8x1x36xf32>
    %14 = tpu.concatenate %12, %13 in 1 : vector<8x1x36xf32>, vector<8x1x36xf32> -> vector<8x2x36xf32>
    %15 = vector.shape_cast %14 : vector<8x2x36xf32> to vector<16x36xf32>
    %cst_5 = arith.constant 0.000000e+00 : f32
    %16 = vector.broadcast %cst_5 : f32 to vector<2x12xf32>
    %17 = vector.extract_strided_slice %15 {offsets = [0, 12], sizes = [16, 12], strides = [1, 1]} : vector<16x36xf32> to vector<16x12xf32>
    %18 = vector.extract_strided_slice %15 {offsets = [0, 0], sizes = [14, 12], strides = [1, 1]} : vector<16x36xf32> to vector<14x12xf32>
    %19 = tpu.concatenate %16, %18 in 0 : vector<2x12xf32>, vector<14x12xf32> -> vector<16x12xf32>
    %20 = arith.addf %17, %19 : vector<16x12xf32>
    %21 = vector.extract_strided_slice %15 {offsets = [2, 24], sizes = [14, 12], strides = [1, 1]} : vector<16x36xf32> to vector<14x12xf32>
    %22 = tpu.concatenate %21, %16 in 0 : vector<14x12xf32>, vector<2x12xf32> -> vector<16x12xf32>
    %23 = arith.addf %20, %22 : vector<16x12xf32>
    %c0_6 = arith.constant 0 : index
    %c0_7 = arith.constant 0 : index
    %24 = vector.load %arg2[%c0_6, %c0_7] : memref<16x128xf32, #tpu.memory_space<vmem>>, vector<2x12xf32>
    %25 = vector.extract_strided_slice %24 {offsets = [0, 0], sizes = [1, 12], strides = [1, 1]} : vector<2x12xf32> to vector<1x12xf32>
    %26 = vector.broadcast %25 : vector<1x12xf32> to vector<16x12xf32>
    %27 = arith.mulf %23, %26 : vector<16x12xf32>
    %28 = vector.extract_strided_slice %24 {offsets = [1, 0], sizes = [1, 12], strides = [1, 1]} : vector<2x12xf32> to vector<1x12xf32>
    %29 = vector.broadcast %28 : vector<1x12xf32> to vector<16x12xf32>
    %30 = arith.addf %27, %29 : vector<16x12xf32>
    %cst_8 = arith.constant 0.000000e+00 : f32
    %31 = vector.broadcast %cst_8 : f32 to vector<16x12xf32>
    %32 = arith.maximumf %30, %31 : vector<16x12xf32>
    %c16 = arith.constant 16 : index
    %c0_9 = arith.constant 0 : index
    %33 = vector.load %arg1[%c16, %c0_9] : memref<288x128xbf16, #tpu.memory_space<vmem>>, vector<12x72xbf16>
    %34 = arith.truncf %32 : vector<16x12xf32> to vector<16x12xbf16>
    %cst_10 = arith.constant dense<0.000000e+00> : vector<16x72xf32>
    %35 = tpu.matmul %34, %33, %cst_10 {dimension_numbers = #tpu.dot_dimension_numbers<[1], [0], [0], [1], [0, 0, 1, 1], [], []>} : vector<16x12xbf16>, vector<12x72xbf16>, vector<16x72xf32> -> vector<16x72xf32>
    %cst_11 = arith.constant 0.000000e+00 : f32
    %36 = vector.broadcast %cst_11 : f32 to vector<2x24xf32>
    %37 = vector.extract_strided_slice %35 {offsets = [0, 24], sizes = [16, 24], strides = [1, 1]} : vector<16x72xf32> to vector<16x24xf32>
    %38 = vector.extract_strided_slice %35 {offsets = [0, 0], sizes = [14, 24], strides = [1, 1]} : vector<16x72xf32> to vector<14x24xf32>
    %39 = tpu.concatenate %36, %38 in 0 : vector<2x24xf32>, vector<14x24xf32> -> vector<16x24xf32>
    %40 = arith.addf %37, %39 : vector<16x24xf32>
    %41 = vector.extract_strided_slice %35 {offsets = [2, 48], sizes = [14, 24], strides = [1, 1]} : vector<16x72xf32> to vector<14x24xf32>
    %42 = tpu.concatenate %41, %36 in 0 : vector<14x24xf32>, vector<2x24xf32> -> vector<16x24xf32>
    %43 = arith.addf %40, %42 : vector<16x24xf32>
    %c2 = arith.constant 2 : index
    %c0_12 = arith.constant 0 : index
    %44 = vector.load %arg2[%c2, %c0_12] : memref<16x128xf32, #tpu.memory_space<vmem>>, vector<2x24xf32>
    %45 = vector.extract_strided_slice %44 {offsets = [0, 0], sizes = [1, 24], strides = [1, 1]} : vector<2x24xf32> to vector<1x24xf32>
    %46 = vector.broadcast %45 : vector<1x24xf32> to vector<16x24xf32>
    %47 = arith.mulf %43, %46 : vector<16x24xf32>
    %48 = vector.extract_strided_slice %44 {offsets = [1, 0], sizes = [1, 24], strides = [1, 1]} : vector<2x24xf32> to vector<1x24xf32>
    %49 = vector.broadcast %48 : vector<1x24xf32> to vector<16x24xf32>
    %50 = arith.addf %47, %49 : vector<16x24xf32>
    %cst_13 = arith.constant 0.000000e+00 : f32
    %51 = vector.broadcast %cst_13 : f32 to vector<16x24xf32>
    %52 = arith.maximumf %50, %51 : vector<16x24xf32>
    %c32 = arith.constant 32 : index
    %c0_14 = arith.constant 0 : index
    %53 = vector.load %arg1[%c32, %c0_14] : memref<288x128xbf16, #tpu.memory_space<vmem>>, vector<24x96xbf16>
    %54 = arith.truncf %52 : vector<16x24xf32> to vector<16x24xbf16>
    %cst_15 = arith.constant dense<0.000000e+00> : vector<16x96xf32>
    %55 = tpu.matmul %54, %53, %cst_15 {dimension_numbers = #tpu.dot_dimension_numbers<[1], [0], [0], [1], [0, 0, 1, 1], [], []>} : vector<16x24xbf16>, vector<24x96xbf16>, vector<16x96xf32> -> vector<16x96xf32>
    %cst_16 = arith.constant 0.000000e+00 : f32
    %56 = vector.broadcast %cst_16 : f32 to vector<2x32xf32>
    %57 = vector.extract_strided_slice %55 {offsets = [0, 32], sizes = [16, 32], strides = [1, 1]} : vector<16x96xf32> to vector<16x32xf32>
    %58 = vector.extract_strided_slice %55 {offsets = [0, 0], sizes = [14, 32], strides = [1, 1]} : vector<16x96xf32> to vector<14x32xf32>
    %59 = tpu.concatenate %56, %58 in 0 : vector<2x32xf32>, vector<14x32xf32> -> vector<16x32xf32>
    %60 = arith.addf %57, %59 : vector<16x32xf32>
    %61 = vector.extract_strided_slice %55 {offsets = [2, 64], sizes = [14, 32], strides = [1, 1]} : vector<16x96xf32> to vector<14x32xf32>
    %62 = tpu.concatenate %61, %56 in 0 : vector<14x32xf32>, vector<2x32xf32> -> vector<16x32xf32>
    %63 = arith.addf %60, %62 : vector<16x32xf32>
    %c4 = arith.constant 4 : index
    %c0_17 = arith.constant 0 : index
    %64 = vector.load %arg2[%c4, %c0_17] : memref<16x128xf32, #tpu.memory_space<vmem>>, vector<2x32xf32>
    %65 = vector.extract_strided_slice %64 {offsets = [0, 0], sizes = [1, 32], strides = [1, 1]} : vector<2x32xf32> to vector<1x32xf32>
    %66 = vector.broadcast %65 : vector<1x32xf32> to vector<16x32xf32>
    %67 = arith.mulf %63, %66 : vector<16x32xf32>
    %68 = vector.extract_strided_slice %64 {offsets = [1, 0], sizes = [1, 32], strides = [1, 1]} : vector<2x32xf32> to vector<1x32xf32>
    %69 = vector.broadcast %68 : vector<1x32xf32> to vector<16x32xf32>
    %70 = arith.addf %67, %69 : vector<16x32xf32>
    %cst_18 = arith.constant 0.000000e+00 : f32
    %71 = vector.broadcast %cst_18 : f32 to vector<16x32xf32>
    %72 = arith.maximumf %70, %71 : vector<16x32xf32>
    %c64 = arith.constant 64 : index
    %c0_19 = arith.constant 0 : index
    %73 = vector.load %arg1[%c64, %c0_19] : memref<288x128xbf16, #tpu.memory_space<vmem>>, vector<32x96xbf16>
    %c96 = arith.constant 96 : index
    %c0_20 = arith.constant 0 : index
    %74 = vector.load %arg1[%c96, %c0_20] : memref<288x128xbf16, #tpu.memory_space<vmem>>, vector<32x96xbf16>
    %c128 = arith.constant 128 : index
    %c0_21 = arith.constant 0 : index
    %75 = vector.load %arg1[%c128, %c0_21] : memref<288x128xbf16, #tpu.memory_space<vmem>>, vector<32x96xbf16>
    %c6 = arith.constant 6 : index
    %c0_22 = arith.constant 0 : index
    %76 = vector.load %arg2[%c6, %c0_22] : memref<16x128xf32, #tpu.memory_space<vmem>>, vector<2x96xf32>
    %77 = vector.extract_strided_slice %76 {offsets = [0, 0], sizes = [1, 96], strides = [1, 1]} : vector<2x96xf32> to vector<1x96xf32>
    %78 = vector.extract_strided_slice %76 {offsets = [1, 64], sizes = [1, 32], strides = [1, 1]} : vector<2x96xf32> to vector<1x32xf32>
    %79 = arith.truncf %72 : vector<16x32xf32> to vector<16x32xbf16>
    %cst_23 = arith.constant dense<0.000000e+00> : vector<16x96xf32>
    %80 = tpu.matmul %79, %73, %cst_23 {dimension_numbers = #tpu.dot_dimension_numbers<[1], [0], [0], [1], [0, 0, 1, 1], [], []>} : vector<16x32xbf16>, vector<32x96xbf16>, vector<16x96xf32> -> vector<16x96xf32>
    %81 = vector.broadcast %77 : vector<1x96xf32> to vector<16x96xf32>
    %82 = arith.addf %80, %81 : vector<16x96xf32>
    %83 = vector.shape_cast %82 : vector<16x96xf32> to vector<8x2x96xf32>
    %cst_24 = arith.constant dense<0.000000e+00> : vector<16x96xf32>
    %84 = tpu.matmul %79, %74, %cst_24 {dimension_numbers = #tpu.dot_dimension_numbers<[1], [0], [0], [1], [0, 0, 1, 1], [], []>} : vector<16x32xbf16>, vector<32x96xbf16>, vector<16x96xf32> -> vector<16x96xf32>
    %85 = vector.shape_cast %84 : vector<16x96xf32> to vector<8x2x96xf32>
    %cst_25 = arith.constant 0.000000e+00 : f32
    %86 = vector.broadcast %cst_25 : f32 to vector<2x32xf32>
    %87 = vector.extract_strided_slice %83 {offsets = [0, 0, 0], sizes = [1, 2, 96], strides = [1, 1, 1]} : vector<8x2x96xf32> to vector<1x2x96xf32>
    %88 = vector.shape_cast %87 : vector<1x2x96xf32> to vector<2x96xf32>
    %89 = vector.extract_strided_slice %85 {offsets = [7, 0, 0], sizes = [1, 2, 96], strides = [1, 1, 1]} : vector<8x2x96xf32> to vector<1x2x96xf32>
    %90 = vector.shape_cast %89 : vector<1x2x96xf32> to vector<2x96xf32>
    %91 = arith.addf %88, %90 : vector<2x96xf32>
    %92 = arith.truncf %86 : vector<2x32xf32> to vector<2x32xbf16>
    %cst_26 = arith.constant dense<0.000000e+00> : vector<2x96xf32>
    %93 = tpu.matmul %92, %75, %cst_26 {dimension_numbers = #tpu.dot_dimension_numbers<[1], [0], [0], [1], [0, 0, 1, 1], [], []>} : vector<2x32xbf16>, vector<32x96xbf16>, vector<2x96xf32> -> vector<2x96xf32>
    %94 = vector.extract_strided_slice %91 {offsets = [0, 0], sizes = [2, 64], strides = [1, 1]} : vector<2x96xf32> to vector<2x64xf32>
    %95 = vector.extract_strided_slice %93 {offsets = [0, 0], sizes = [2, 64], strides = [1, 1]} : vector<2x96xf32> to vector<2x64xf32>
    %96 = arith.addf %94, %95 : vector<2x64xf32>
    %97 = arith.negf %96 : vector<2x64xf32>
    %98 = math.exp %97 : vector<2x64xf32>
    %cst_27 = arith.constant 1.000000e+00 : f32
    %99 = vector.broadcast %cst_27 : f32 to vector<2x64xf32>
    %100 = arith.addf %99, %98 : vector<2x64xf32>
    %101 = arith.divf %99, %100 : vector<2x64xf32>
    %102 = vector.extract_strided_slice %101 {offsets = [0, 0], sizes = [2, 32], strides = [1, 1]} : vector<2x64xf32> to vector<2x32xf32>
    %103 = vector.extract_strided_slice %101 {offsets = [0, 32], sizes = [2, 32], strides = [1, 1]} : vector<2x64xf32> to vector<2x32xf32>
    %104 = vector.extract_strided_slice %91 {offsets = [0, 64], sizes = [2, 32], strides = [1, 1]} : vector<2x96xf32> to vector<2x32xf32>
    %105 = vector.extract_strided_slice %93 {offsets = [0, 64], sizes = [2, 32], strides = [1, 1]} : vector<2x96xf32> to vector<2x32xf32>
    %106 = vector.broadcast %78 : vector<1x32xf32> to vector<2x32xf32>
    %107 = arith.addf %105, %106 : vector<2x32xf32>
    %108 = arith.mulf %102, %107 : vector<2x32xf32>
    %109 = arith.addf %104, %108 : vector<2x32xf32>
    %110 = math.tanh %109 : vector<2x32xf32>
    %cst_28 = arith.constant 1.000000e+00 : f32
    %111 = vector.broadcast %cst_28 : f32 to vector<2x32xf32>
    %112 = arith.subf %111, %103 : vector<2x32xf32>
    %113 = arith.mulf %112, %110 : vector<2x32xf32>
    %114 = arith.mulf %103, %86 : vector<2x32xf32>
    %115 = arith.addf %113, %114 : vector<2x32xf32>
    %116 = vector.extract_strided_slice %115 {offsets = [0, 0], sizes = [2, 16], strides = [1, 1]} : vector<2x32xf32> to vector<2x16xf32>
    %c0_29 = arith.constant 0 : index
    %c0_30 = arith.constant 0 : index
    %c0_31 = arith.constant 0 : index
    %117 = vector.load %arg4[%c0_29, %c0_30, %c0_31] : memref<8x2x32xf32, #tpu.memory_space<vmem>>, vector<1x2x16xf32>
    %118 = vector.shape_cast %117 : vector<1x2x16xf32> to vector<2x16xf32>
    %119 = vector.shape_cast %116 : vector<2x16xf32> to vector<1x2x16xf32>
    tpu.vector_store %arg4[%c0_29, %c0_30, %c0_31], %119 {strides = array<i32>} : memref<8x2x32xf32, #tpu.memory_space<vmem>>, vector<1x2x16xf32>,
    %120 = vector.extract_strided_slice %115 {offsets = [0, 16], sizes = [2, 16], strides = [1, 1]} : vector<2x32xf32> to vector<2x16xf32>
    %c7 = arith.constant 7 : index
    %c0_32 = arith.constant 0 : index
    %c16_33 = arith.constant 16 : index
    %121 = vector.load %arg4[%c7, %c0_32, %c16_33] : memref<8x2x32xf32, #tpu.memory_space<vmem>>, vector<1x2x16xf32>
    %122 = vector.shape_cast %121 : vector<1x2x16xf32> to vector<2x16xf32>
    %123 = vector.shape_cast %120 : vector<2x16xf32> to vector<1x2x16xf32>
    tpu.vector_store %arg4[%c7, %c0_32, %c16_33], %123 {strides = array<i32>} : memref<8x2x32xf32, #tpu.memory_space<vmem>>, vector<1x2x16xf32>,
    %124 = vector.extract_strided_slice %83 {offsets = [1, 0, 0], sizes = [1, 2, 96], strides = [1, 1, 1]} : vector<8x2x96xf32> to vector<1x2x96xf32>
    %125 = vector.shape_cast %124 : vector<1x2x96xf32> to vector<2x96xf32>
    %126 = vector.extract_strided_slice %85 {offsets = [6, 0, 0], sizes = [1, 2, 96], strides = [1, 1, 1]} : vector<8x2x96xf32> to vector<1x2x96xf32>
    %127 = vector.shape_cast %126 : vector<1x2x96xf32> to vector<2x96xf32>
    %128 = arith.addf %125, %127 : vector<2x96xf32>
    %129 = arith.truncf %115 : vector<2x32xf32> to vector<2x32xbf16>
    %cst_34 = arith.constant dense<0.000000e+00> : vector<2x96xf32>
    %130 = tpu.matmul %129, %75, %cst_34 {dimension_numbers = #tpu.dot_dimension_numbers<[1], [0], [0], [1], [0, 0, 1, 1], [], []>} : vector<2x32xbf16>, vector<32x96xbf16>, vector<2x96xf32> -> vector<2x96xf32>
    %131 = vector.extract_strided_slice %128 {offsets = [0, 0], sizes = [2, 64], strides = [1, 1]} : vector<2x96xf32> to vector<2x64xf32>
    %132 = vector.extract_strided_slice %130 {offsets = [0, 0], sizes = [2, 64], strides = [1, 1]} : vector<2x96xf32> to vector<2x64xf32>
    %133 = arith.addf %131, %132 : vector<2x64xf32>
    %134 = arith.negf %133 : vector<2x64xf32>
    %135 = math.exp %134 : vector<2x64xf32>
    %cst_35 = arith.constant 1.000000e+00 : f32
    %136 = vector.broadcast %cst_35 : f32 to vector<2x64xf32>
    %137 = arith.addf %136, %135 : vector<2x64xf32>
    %138 = arith.divf %136, %137 : vector<2x64xf32>
    %139 = vector.extract_strided_slice %138 {offsets = [0, 0], sizes = [2, 32], strides = [1, 1]} : vector<2x64xf32> to vector<2x32xf32>
    %140 = vector.extract_strided_slice %138 {offsets = [0, 32], sizes = [2, 32], strides = [1, 1]} : vector<2x64xf32> to vector<2x32xf32>
    %141 = vector.extract_strided_slice %128 {offsets = [0, 64], sizes = [2, 32], strides = [1, 1]} : vector<2x96xf32> to vector<2x32xf32>
    %142 = vector.extract_strided_slice %130 {offsets = [0, 64], sizes = [2, 32], strides = [1, 1]} : vector<2x96xf32> to vector<2x32xf32>
    %143 = vector.broadcast %78 : vector<1x32xf32> to vector<2x32xf32>
    %144 = arith.addf %142, %143 : vector<2x32xf32>
    %145 = arith.mulf %139, %144 : vector<2x32xf32>
    %146 = arith.addf %141, %145 : vector<2x32xf32>
    %147 = math.tanh %146 : vector<2x32xf32>
    %cst_36 = arith.constant 1.000000e+00 : f32
    %148 = vector.broadcast %cst_36 : f32 to vector<2x32xf32>
    %149 = arith.subf %148, %140 : vector<2x32xf32>
    %150 = arith.mulf %149, %147 : vector<2x32xf32>
    %151 = arith.mulf %140, %115 : vector<2x32xf32>
    %152 = arith.addf %150, %151 : vector<2x32xf32>
    %153 = vector.extract_strided_slice %152 {offsets = [0, 0], sizes = [2, 16], strides = [1, 1]} : vector<2x32xf32> to vector<2x16xf32>
    %c1 = arith.constant 1 : index
    %c0_37 = arith.constant 0 : index
    %c0_38 = arith.constant 0 : index
    %154 = vector.load %arg4[%c1, %c0_37, %c0_38] : memref<8x2x32xf32, #tpu.memory_space<vmem>>, vector<1x2x16xf32>
    %155 = vector.shape_cast %154 : vector<1x2x16xf32> to vector<2x16xf32>
    %156 = vector.shape_cast %153 : vector<2x16xf32> to vector<1x2x16xf32>
    tpu.vector_store %arg4[%c1, %c0_37, %c0_38], %156 {strides = array<i32>} : memref<8x2x32xf32, #tpu.memory_space<vmem>>, vector<1x2x16xf32>,
    %157 = vector.extract_strided_slice %152 {offsets = [0, 16], sizes = [2, 16], strides = [1, 1]} : vector<2x32xf32> to vector<2x16xf32>
    %c6_39 = arith.constant 6 : index
    %c0_40 = arith.constant 0 : index
    %c16_41 = arith.constant 16 : index
    %158 = vector.load %arg4[%c6_39, %c0_40, %c16_41] : memref<8x2x32xf32, #tpu.memory_space<vmem>>, vector<1x2x16xf32>
    %159 = vector.shape_cast %158 : vector<1x2x16xf32> to vector<2x16xf32>
    %160 = vector.shape_cast %157 : vector<2x16xf32> to vector<1x2x16xf32>
    tpu.vector_store %arg4[%c6_39, %c0_40, %c16_41], %160 {strides = array<i32>} : memref<8x2x32xf32, #tpu.memory_space<vmem>>, vector<1x2x16xf32>,
    %161 = vector.extract_strided_slice %83 {offsets = [2, 0, 0], sizes = [1, 2, 96], strides = [1, 1, 1]} : vector<8x2x96xf32> to vector<1x2x96xf32>
    %162 = vector.shape_cast %161 : vector<1x2x96xf32> to vector<2x96xf32>
    %163 = vector.extract_strided_slice %85 {offsets = [5, 0, 0], sizes = [1, 2, 96], strides = [1, 1, 1]} : vector<8x2x96xf32> to vector<1x2x96xf32>
    %164 = vector.shape_cast %163 : vector<1x2x96xf32> to vector<2x96xf32>
    %165 = arith.addf %162, %164 : vector<2x96xf32>
    %166 = arith.truncf %152 : vector<2x32xf32> to vector<2x32xbf16>
    %cst_42 = arith.constant dense<0.000000e+00> : vector<2x96xf32>
    %167 = tpu.matmul %166, %75, %cst_42 {dimension_numbers = #tpu.dot_dimension_numbers<[1], [0], [0], [1], [0, 0, 1, 1], [], []>} : vector<2x32xbf16>, vector<32x96xbf16>, vector<2x96xf32> -> vector<2x96xf32>
    %168 = vector.extract_strided_slice %165 {offsets = [0, 0], sizes = [2, 64], strides = [1, 1]} : vector<2x96xf32> to vector<2x64xf32>
    %169 = vector.extract_strided_slice %167 {offsets = [0, 0], sizes = [2, 64], strides = [1, 1]} : vector<2x96xf32> to vector<2x64xf32>
    %170 = arith.addf %168, %169 : vector<2x64xf32>
    %171 = arith.negf %170 : vector<2x64xf32>
    %172 = math.exp %171 : vector<2x64xf32>
    %cst_43 = arith.constant 1.000000e+00 : f32
    %173 = vector.broadcast %cst_43 : f32 to vector<2x64xf32>
    %174 = arith.addf %173, %172 : vector<2x64xf32>
    %175 = arith.divf %173, %174 : vector<2x64xf32>
    %176 = vector.extract_strided_slice %175 {offsets = [0, 0], sizes = [2, 32], strides = [1, 1]} : vector<2x64xf32> to vector<2x32xf32>
    %177 = vector.extract_strided_slice %175 {offsets = [0, 32], sizes = [2, 32], strides = [1, 1]} : vector<2x64xf32> to vector<2x32xf32>
    %178 = vector.extract_strided_slice %165 {offsets = [0, 64], sizes = [2, 32], strides = [1, 1]} : vector<2x96xf32> to vector<2x32xf32>
    %179 = vector.extract_strided_slice %167 {offsets = [0, 64], sizes = [2, 32], strides = [1, 1]} : vector<2x96xf32> to vector<2x32xf32>
    %180 = vector.broadcast %78 : vector<1x32xf32> to vector<2x32xf32>
    %181 = arith.addf %179, %180 : vector<2x32xf32>
    %182 = arith.mulf %176, %181 : vector<2x32xf32>
    %183 = arith.addf %178, %182 : vector<2x32xf32>
    %184 = math.tanh %183 : vector<2x32xf32>
    %cst_44 = arith.constant 1.000000e+00 : f32
    %185 = vector.broadcast %cst_44 : f32 to vector<2x32xf32>
    %186 = arith.subf %185, %177 : vector<2x32xf32>
    %187 = arith.mulf %186, %184 : vector<2x32xf32>
    %188 = arith.mulf %177, %152 : vector<2x32xf32>
    %189 = arith.addf %187, %188 : vector<2x32xf32>
    %190 = vector.extract_strided_slice %189 {offsets = [0, 0], sizes = [2, 16], strides = [1, 1]} : vector<2x32xf32> to vector<2x16xf32>
    %c2_45 = arith.constant 2 : index
    %c0_46 = arith.constant 0 : index
    %c0_47 = arith.constant 0 : index
    %191 = vector.load %arg4[%c2_45, %c0_46, %c0_47] : memref<8x2x32xf32, #tpu.memory_space<vmem>>, vector<1x2x16xf32>
    %192 = vector.shape_cast %191 : vector<1x2x16xf32> to vector<2x16xf32>
    %193 = vector.shape_cast %190 : vector<2x16xf32> to vector<1x2x16xf32>
    tpu.vector_store %arg4[%c2_45, %c0_46, %c0_47], %193 {strides = array<i32>} : memref<8x2x32xf32, #tpu.memory_space<vmem>>, vector<1x2x16xf32>,
    %194 = vector.extract_strided_slice %189 {offsets = [0, 16], sizes = [2, 16], strides = [1, 1]} : vector<2x32xf32> to vector<2x16xf32>
    %c5 = arith.constant 5 : index
    %c0_48 = arith.constant 0 : index
    %c16_49 = arith.constant 16 : index
    %195 = vector.load %arg4[%c5, %c0_48, %c16_49] : memref<8x2x32xf32, #tpu.memory_space<vmem>>, vector<1x2x16xf32>
    %196 = vector.shape_cast %195 : vector<1x2x16xf32> to vector<2x16xf32>
    %197 = vector.shape_cast %194 : vector<2x16xf32> to vector<1x2x16xf32>
    tpu.vector_store %arg4[%c5, %c0_48, %c16_49], %197 {strides = array<i32>} : memref<8x2x32xf32, #tpu.memory_space<vmem>>, vector<1x2x16xf32>,
    %198 = vector.extract_strided_slice %83 {offsets = [3, 0, 0], sizes = [1, 2, 96], strides = [1, 1, 1]} : vector<8x2x96xf32> to vector<1x2x96xf32>
    %199 = vector.shape_cast %198 : vector<1x2x96xf32> to vector<2x96xf32>
    %200 = vector.extract_strided_slice %85 {offsets = [4, 0, 0], sizes = [1, 2, 96], strides = [1, 1, 1]} : vector<8x2x96xf32> to vector<1x2x96xf32>
    %201 = vector.shape_cast %200 : vector<1x2x96xf32> to vector<2x96xf32>
    %202 = arith.addf %199, %201 : vector<2x96xf32>
    %203 = arith.truncf %189 : vector<2x32xf32> to vector<2x32xbf16>
    %cst_50 = arith.constant dense<0.000000e+00> : vector<2x96xf32>
    %204 = tpu.matmul %203, %75, %cst_50 {dimension_numbers = #tpu.dot_dimension_numbers<[1], [0], [0], [1], [0, 0, 1, 1], [], []>} : vector<2x32xbf16>, vector<32x96xbf16>, vector<2x96xf32> -> vector<2x96xf32>
    %205 = vector.extract_strided_slice %202 {offsets = [0, 0], sizes = [2, 64], strides = [1, 1]} : vector<2x96xf32> to vector<2x64xf32>
    %206 = vector.extract_strided_slice %204 {offsets = [0, 0], sizes = [2, 64], strides = [1, 1]} : vector<2x96xf32> to vector<2x64xf32>
    %207 = arith.addf %205, %206 : vector<2x64xf32>
    %208 = arith.negf %207 : vector<2x64xf32>
    %209 = math.exp %208 : vector<2x64xf32>
    %cst_51 = arith.constant 1.000000e+00 : f32
    %210 = vector.broadcast %cst_51 : f32 to vector<2x64xf32>
    %211 = arith.addf %210, %209 : vector<2x64xf32>
    %212 = arith.divf %210, %211 : vector<2x64xf32>
    %213 = vector.extract_strided_slice %212 {offsets = [0, 0], sizes = [2, 32], strides = [1, 1]} : vector<2x64xf32> to vector<2x32xf32>
    %214 = vector.extract_strided_slice %212 {offsets = [0, 32], sizes = [2, 32], strides = [1, 1]} : vector<2x64xf32> to vector<2x32xf32>
    %215 = vector.extract_strided_slice %202 {offsets = [0, 64], sizes = [2, 32], strides = [1, 1]} : vector<2x96xf32> to vector<2x32xf32>
    %216 = vector.extract_strided_slice %204 {offsets = [0, 64], sizes = [2, 32], strides = [1, 1]} : vector<2x96xf32> to vector<2x32xf32>
    %217 = vector.broadcast %78 : vector<1x32xf32> to vector<2x32xf32>
    %218 = arith.addf %216, %217 : vector<2x32xf32>
    %219 = arith.mulf %213, %218 : vector<2x32xf32>
    %220 = arith.addf %215, %219 : vector<2x32xf32>
    %221 = math.tanh %220 : vector<2x32xf32>
    %cst_52 = arith.constant 1.000000e+00 : f32
    %222 = vector.broadcast %cst_52 : f32 to vector<2x32xf32>
    %223 = arith.subf %222, %214 : vector<2x32xf32>
    %224 = arith.mulf %223, %221 : vector<2x32xf32>
    %225 = arith.mulf %214, %189 : vector<2x32xf32>
    %226 = arith.addf %224, %225 : vector<2x32xf32>
    %227 = vector.extract_strided_slice %226 {offsets = [0, 0], sizes = [2, 16], strides = [1, 1]} : vector<2x32xf32> to vector<2x16xf32>
    %c3 = arith.constant 3 : index
    %c0_53 = arith.constant 0 : index
    %c0_54 = arith.constant 0 : index
    %228 = vector.load %arg4[%c3, %c0_53, %c0_54] : memref<8x2x32xf32, #tpu.memory_space<vmem>>, vector<1x2x16xf32>
    %229 = vector.shape_cast %228 : vector<1x2x16xf32> to vector<2x16xf32>
    %230 = vector.shape_cast %227 : vector<2x16xf32> to vector<1x2x16xf32>
    tpu.vector_store %arg4[%c3, %c0_53, %c0_54], %230 {strides = array<i32>} : memref<8x2x32xf32, #tpu.memory_space<vmem>>, vector<1x2x16xf32>,
    %231 = vector.extract_strided_slice %226 {offsets = [0, 16], sizes = [2, 16], strides = [1, 1]} : vector<2x32xf32> to vector<2x16xf32>
    %c4_55 = arith.constant 4 : index
    %c0_56 = arith.constant 0 : index
    %c16_57 = arith.constant 16 : index
    %232 = vector.load %arg4[%c4_55, %c0_56, %c16_57] : memref<8x2x32xf32, #tpu.memory_space<vmem>>, vector<1x2x16xf32>
    %233 = vector.shape_cast %232 : vector<1x2x16xf32> to vector<2x16xf32>
    %234 = vector.shape_cast %231 : vector<2x16xf32> to vector<1x2x16xf32>
    tpu.vector_store %arg4[%c4_55, %c0_56, %c16_57], %234 {strides = array<i32>} : memref<8x2x32xf32, #tpu.memory_space<vmem>>, vector<1x2x16xf32>,
    %235 = vector.extract_strided_slice %83 {offsets = [4, 0, 0], sizes = [1, 2, 96], strides = [1, 1, 1]} : vector<8x2x96xf32> to vector<1x2x96xf32>
    %236 = vector.shape_cast %235 : vector<1x2x96xf32> to vector<2x96xf32>
    %237 = vector.extract_strided_slice %85 {offsets = [3, 0, 0], sizes = [1, 2, 96], strides = [1, 1, 1]} : vector<8x2x96xf32> to vector<1x2x96xf32>
    %238 = vector.shape_cast %237 : vector<1x2x96xf32> to vector<2x96xf32>
    %239 = arith.addf %236, %238 : vector<2x96xf32>
    %240 = arith.truncf %226 : vector<2x32xf32> to vector<2x32xbf16>
    %cst_58 = arith.constant dense<0.000000e+00> : vector<2x96xf32>
    %241 = tpu.matmul %240, %75, %cst_58 {dimension_numbers = #tpu.dot_dimension_numbers<[1], [0], [0], [1], [0, 0, 1, 1], [], []>} : vector<2x32xbf16>, vector<32x96xbf16>, vector<2x96xf32> -> vector<2x96xf32>
    %242 = vector.extract_strided_slice %239 {offsets = [0, 0], sizes = [2, 64], strides = [1, 1]} : vector<2x96xf32> to vector<2x64xf32>
    %243 = vector.extract_strided_slice %241 {offsets = [0, 0], sizes = [2, 64], strides = [1, 1]} : vector<2x96xf32> to vector<2x64xf32>
    %244 = arith.addf %242, %243 : vector<2x64xf32>
    %245 = arith.negf %244 : vector<2x64xf32>
    %246 = math.exp %245 : vector<2x64xf32>
    %cst_59 = arith.constant 1.000000e+00 : f32
    %247 = vector.broadcast %cst_59 : f32 to vector<2x64xf32>
    %248 = arith.addf %247, %246 : vector<2x64xf32>
    %249 = arith.divf %247, %248 : vector<2x64xf32>
    %250 = vector.extract_strided_slice %249 {offsets = [0, 0], sizes = [2, 32], strides = [1, 1]} : vector<2x64xf32> to vector<2x32xf32>
    %251 = vector.extract_strided_slice %249 {offsets = [0, 32], sizes = [2, 32], strides = [1, 1]} : vector<2x64xf32> to vector<2x32xf32>
    %252 = vector.extract_strided_slice %239 {offsets = [0, 64], sizes = [2, 32], strides = [1, 1]} : vector<2x96xf32> to vector<2x32xf32>
    %253 = vector.extract_strided_slice %241 {offsets = [0, 64], sizes = [2, 32], strides = [1, 1]} : vector<2x96xf32> to vector<2x32xf32>
    %254 = vector.broadcast %78 : vector<1x32xf32> to vector<2x32xf32>
    %255 = arith.addf %253, %254 : vector<2x32xf32>
    %256 = arith.mulf %250, %255 : vector<2x32xf32>
    %257 = arith.addf %252, %256 : vector<2x32xf32>
    %258 = math.tanh %257 : vector<2x32xf32>
    %cst_60 = arith.constant 1.000000e+00 : f32
    %259 = vector.broadcast %cst_60 : f32 to vector<2x32xf32>
    %260 = arith.subf %259, %251 : vector<2x32xf32>
    %261 = arith.mulf %260, %258 : vector<2x32xf32>
    %262 = arith.mulf %251, %226 : vector<2x32xf32>
    %263 = arith.addf %261, %262 : vector<2x32xf32>
    %264 = vector.extract_strided_slice %263 {offsets = [0, 0], sizes = [2, 16], strides = [1, 1]} : vector<2x32xf32> to vector<2x16xf32>
    %c4_61 = arith.constant 4 : index
    %c0_62 = arith.constant 0 : index
    %c0_63 = arith.constant 0 : index
    %265 = vector.load %arg4[%c4_61, %c0_62, %c0_63] : memref<8x2x32xf32, #tpu.memory_space<vmem>>, vector<1x2x16xf32>
    %266 = vector.shape_cast %265 : vector<1x2x16xf32> to vector<2x16xf32>
    %267 = vector.shape_cast %264 : vector<2x16xf32> to vector<1x2x16xf32>
    tpu.vector_store %arg4[%c4_61, %c0_62, %c0_63], %267 {strides = array<i32>} : memref<8x2x32xf32, #tpu.memory_space<vmem>>, vector<1x2x16xf32>,
    %268 = vector.extract_strided_slice %263 {offsets = [0, 16], sizes = [2, 16], strides = [1, 1]} : vector<2x32xf32> to vector<2x16xf32>
    %c3_64 = arith.constant 3 : index
    %c0_65 = arith.constant 0 : index
    %c16_66 = arith.constant 16 : index
    %269 = vector.load %arg4[%c3_64, %c0_65, %c16_66] : memref<8x2x32xf32, #tpu.memory_space<vmem>>, vector<1x2x16xf32>
    %270 = vector.shape_cast %269 : vector<1x2x16xf32> to vector<2x16xf32>
    %271 = vector.shape_cast %268 : vector<2x16xf32> to vector<1x2x16xf32>
    tpu.vector_store %arg4[%c3_64, %c0_65, %c16_66], %271 {strides = array<i32>} : memref<8x2x32xf32, #tpu.memory_space<vmem>>, vector<1x2x16xf32>,
    %272 = vector.extract_strided_slice %83 {offsets = [5, 0, 0], sizes = [1, 2, 96], strides = [1, 1, 1]} : vector<8x2x96xf32> to vector<1x2x96xf32>
    %273 = vector.shape_cast %272 : vector<1x2x96xf32> to vector<2x96xf32>
    %274 = vector.extract_strided_slice %85 {offsets = [2, 0, 0], sizes = [1, 2, 96], strides = [1, 1, 1]} : vector<8x2x96xf32> to vector<1x2x96xf32>
    %275 = vector.shape_cast %274 : vector<1x2x96xf32> to vector<2x96xf32>
    %276 = arith.addf %273, %275 : vector<2x96xf32>
    %277 = arith.truncf %263 : vector<2x32xf32> to vector<2x32xbf16>
    %cst_67 = arith.constant dense<0.000000e+00> : vector<2x96xf32>
    %278 = tpu.matmul %277, %75, %cst_67 {dimension_numbers = #tpu.dot_dimension_numbers<[1], [0], [0], [1], [0, 0, 1, 1], [], []>} : vector<2x32xbf16>, vector<32x96xbf16>, vector<2x96xf32> -> vector<2x96xf32>
    %279 = vector.extract_strided_slice %276 {offsets = [0, 0], sizes = [2, 64], strides = [1, 1]} : vector<2x96xf32> to vector<2x64xf32>
    %280 = vector.extract_strided_slice %278 {offsets = [0, 0], sizes = [2, 64], strides = [1, 1]} : vector<2x96xf32> to vector<2x64xf32>
    %281 = arith.addf %279, %280 : vector<2x64xf32>
    %282 = arith.negf %281 : vector<2x64xf32>
    %283 = math.exp %282 : vector<2x64xf32>
    %cst_68 = arith.constant 1.000000e+00 : f32
    %284 = vector.broadcast %cst_68 : f32 to vector<2x64xf32>
    %285 = arith.addf %284, %283 : vector<2x64xf32>
    %286 = arith.divf %284, %285 : vector<2x64xf32>
    %287 = vector.extract_strided_slice %286 {offsets = [0, 0], sizes = [2, 32], strides = [1, 1]} : vector<2x64xf32> to vector<2x32xf32>
    %288 = vector.extract_strided_slice %286 {offsets = [0, 32], sizes = [2, 32], strides = [1, 1]} : vector<2x64xf32> to vector<2x32xf32>
    %289 = vector.extract_strided_slice %276 {offsets = [0, 64], sizes = [2, 32], strides = [1, 1]} : vector<2x96xf32> to vector<2x32xf32>
    %290 = vector.extract_strided_slice %278 {offsets = [0, 64], sizes = [2, 32], strides = [1, 1]} : vector<2x96xf32> to vector<2x32xf32>
    %291 = vector.broadcast %78 : vector<1x32xf32> to vector<2x32xf32>
    %292 = arith.addf %290, %291 : vector<2x32xf32>
    %293 = arith.mulf %287, %292 : vector<2x32xf32>
    %294 = arith.addf %289, %293 : vector<2x32xf32>
    %295 = math.tanh %294 : vector<2x32xf32>
    %cst_69 = arith.constant 1.000000e+00 : f32
    %296 = vector.broadcast %cst_69 : f32 to vector<2x32xf32>
    %297 = arith.subf %296, %288 : vector<2x32xf32>
    %298 = arith.mulf %297, %295 : vector<2x32xf32>
    %299 = arith.mulf %288, %263 : vector<2x32xf32>
    %300 = arith.addf %298, %299 : vector<2x32xf32>
    %301 = vector.extract_strided_slice %300 {offsets = [0, 0], sizes = [2, 16], strides = [1, 1]} : vector<2x32xf32> to vector<2x16xf32>
    %c5_70 = arith.constant 5 : index
    %c0_71 = arith.constant 0 : index
    %c0_72 = arith.constant 0 : index
    %302 = vector.load %arg4[%c5_70, %c0_71, %c0_72] : memref<8x2x32xf32, #tpu.memory_space<vmem>>, vector<1x2x16xf32>
    %303 = vector.shape_cast %302 : vector<1x2x16xf32> to vector<2x16xf32>
    %304 = vector.shape_cast %301 : vector<2x16xf32> to vector<1x2x16xf32>
    tpu.vector_store %arg4[%c5_70, %c0_71, %c0_72], %304 {strides = array<i32>} : memref<8x2x32xf32, #tpu.memory_space<vmem>>, vector<1x2x16xf32>,
    %305 = vector.extract_strided_slice %300 {offsets = [0, 16], sizes = [2, 16], strides = [1, 1]} : vector<2x32xf32> to vector<2x16xf32>
    %c2_73 = arith.constant 2 : index
    %c0_74 = arith.constant 0 : index
    %c16_75 = arith.constant 16 : index
    %306 = vector.load %arg4[%c2_73, %c0_74, %c16_75] : memref<8x2x32xf32, #tpu.memory_space<vmem>>, vector<1x2x16xf32>
    %307 = vector.shape_cast %306 : vector<1x2x16xf32> to vector<2x16xf32>
    %308 = vector.shape_cast %305 : vector<2x16xf32> to vector<1x2x16xf32>
    tpu.vector_store %arg4[%c2_73, %c0_74, %c16_75], %308 {strides = array<i32>} : memref<8x2x32xf32, #tpu.memory_space<vmem>>, vector<1x2x16xf32>,
    %309 = vector.extract_strided_slice %83 {offsets = [6, 0, 0], sizes = [1, 2, 96], strides = [1, 1, 1]} : vector<8x2x96xf32> to vector<1x2x96xf32>
    %310 = vector.shape_cast %309 : vector<1x2x96xf32> to vector<2x96xf32>
    %311 = vector.extract_strided_slice %85 {offsets = [1, 0, 0], sizes = [1, 2, 96], strides = [1, 1, 1]} : vector<8x2x96xf32> to vector<1x2x96xf32>
    %312 = vector.shape_cast %311 : vector<1x2x96xf32> to vector<2x96xf32>
    %313 = arith.addf %310, %312 : vector<2x96xf32>
    %314 = arith.truncf %300 : vector<2x32xf32> to vector<2x32xbf16>
    %cst_76 = arith.constant dense<0.000000e+00> : vector<2x96xf32>
    %315 = tpu.matmul %314, %75, %cst_76 {dimension_numbers = #tpu.dot_dimension_numbers<[1], [0], [0], [1], [0, 0, 1, 1], [], []>} : vector<2x32xbf16>, vector<32x96xbf16>, vector<2x96xf32> -> vector<2x96xf32>
    %316 = vector.extract_strided_slice %313 {offsets = [0, 0], sizes = [2, 64], strides = [1, 1]} : vector<2x96xf32> to vector<2x64xf32>
    %317 = vector.extract_strided_slice %315 {offsets = [0, 0], sizes = [2, 64], strides = [1, 1]} : vector<2x96xf32> to vector<2x64xf32>
    %318 = arith.addf %316, %317 : vector<2x64xf32>
    %319 = arith.negf %318 : vector<2x64xf32>
    %320 = math.exp %319 : vector<2x64xf32>
    %cst_77 = arith.constant 1.000000e+00 : f32
    %321 = vector.broadcast %cst_77 : f32 to vector<2x64xf32>
    %322 = arith.addf %321, %320 : vector<2x64xf32>
    %323 = arith.divf %321, %322 : vector<2x64xf32>
    %324 = vector.extract_strided_slice %323 {offsets = [0, 0], sizes = [2, 32], strides = [1, 1]} : vector<2x64xf32> to vector<2x32xf32>
    %325 = vector.extract_strided_slice %323 {offsets = [0, 32], sizes = [2, 32], strides = [1, 1]} : vector<2x64xf32> to vector<2x32xf32>
    %326 = vector.extract_strided_slice %313 {offsets = [0, 64], sizes = [2, 32], strides = [1, 1]} : vector<2x96xf32> to vector<2x32xf32>
    %327 = vector.extract_strided_slice %315 {offsets = [0, 64], sizes = [2, 32], strides = [1, 1]} : vector<2x96xf32> to vector<2x32xf32>
    %328 = vector.broadcast %78 : vector<1x32xf32> to vector<2x32xf32>
    %329 = arith.addf %327, %328 : vector<2x32xf32>
    %330 = arith.mulf %324, %329 : vector<2x32xf32>
    %331 = arith.addf %326, %330 : vector<2x32xf32>
    %332 = math.tanh %331 : vector<2x32xf32>
    %cst_78 = arith.constant 1.000000e+00 : f32
    %333 = vector.broadcast %cst_78 : f32 to vector<2x32xf32>
    %334 = arith.subf %333, %325 : vector<2x32xf32>
    %335 = arith.mulf %334, %332 : vector<2x32xf32>
    %336 = arith.mulf %325, %300 : vector<2x32xf32>
    %337 = arith.addf %335, %336 : vector<2x32xf32>
    %338 = vector.extract_strided_slice %337 {offsets = [0, 0], sizes = [2, 16], strides = [1, 1]} : vector<2x32xf32> to vector<2x16xf32>
    %c6_79 = arith.constant 6 : index
    %c0_80 = arith.constant 0 : index
    %c0_81 = arith.constant 0 : index
    %339 = vector.load %arg4[%c6_79, %c0_80, %c0_81] : memref<8x2x32xf32, #tpu.memory_space<vmem>>, vector<1x2x16xf32>
    %340 = vector.shape_cast %339 : vector<1x2x16xf32> to vector<2x16xf32>
    %341 = vector.shape_cast %338 : vector<2x16xf32> to vector<1x2x16xf32>
    tpu.vector_store %arg4[%c6_79, %c0_80, %c0_81], %341 {strides = array<i32>} : memref<8x2x32xf32, #tpu.memory_space<vmem>>, vector<1x2x16xf32>,
    %342 = vector.extract_strided_slice %337 {offsets = [0, 16], sizes = [2, 16], strides = [1, 1]} : vector<2x32xf32> to vector<2x16xf32>
    %c1_82 = arith.constant 1 : index
    %c0_83 = arith.constant 0 : index
    %c16_84 = arith.constant 16 : index
    %343 = vector.load %arg4[%c1_82, %c0_83, %c16_84] : memref<8x2x32xf32, #tpu.memory_space<vmem>>, vector<1x2x16xf32>
    %344 = vector.shape_cast %343 : vector<1x2x16xf32> to vector<2x16xf32>
    %345 = vector.shape_cast %342 : vector<2x16xf32> to vector<1x2x16xf32>
    tpu.vector_store %arg4[%c1_82, %c0_83, %c16_84], %345 {strides = array<i32>} : memref<8x2x32xf32, #tpu.memory_space<vmem>>, vector<1x2x16xf32>,
    %346 = vector.extract_strided_slice %83 {offsets = [7, 0, 0], sizes = [1, 2, 96], strides = [1, 1, 1]} : vector<8x2x96xf32> to vector<1x2x96xf32>
    %347 = vector.shape_cast %346 : vector<1x2x96xf32> to vector<2x96xf32>
    %348 = vector.extract_strided_slice %85 {offsets = [0, 0, 0], sizes = [1, 2, 96], strides = [1, 1, 1]} : vector<8x2x96xf32> to vector<1x2x96xf32>
    %349 = vector.shape_cast %348 : vector<1x2x96xf32> to vector<2x96xf32>
    %350 = arith.addf %347, %349 : vector<2x96xf32>
    %351 = arith.truncf %337 : vector<2x32xf32> to vector<2x32xbf16>
    %cst_85 = arith.constant dense<0.000000e+00> : vector<2x96xf32>
    %352 = tpu.matmul %351, %75, %cst_85 {dimension_numbers = #tpu.dot_dimension_numbers<[1], [0], [0], [1], [0, 0, 1, 1], [], []>} : vector<2x32xbf16>, vector<32x96xbf16>, vector<2x96xf32> -> vector<2x96xf32>
    %353 = vector.extract_strided_slice %350 {offsets = [0, 0], sizes = [2, 64], strides = [1, 1]} : vector<2x96xf32> to vector<2x64xf32>
    %354 = vector.extract_strided_slice %352 {offsets = [0, 0], sizes = [2, 64], strides = [1, 1]} : vector<2x96xf32> to vector<2x64xf32>
    %355 = arith.addf %353, %354 : vector<2x64xf32>
    %356 = arith.negf %355 : vector<2x64xf32>
    %357 = math.exp %356 : vector<2x64xf32>
    %cst_86 = arith.constant 1.000000e+00 : f32
    %358 = vector.broadcast %cst_86 : f32 to vector<2x64xf32>
    %359 = arith.addf %358, %357 : vector<2x64xf32>
    %360 = arith.divf %358, %359 : vector<2x64xf32>
    %361 = vector.extract_strided_slice %360 {offsets = [0, 0], sizes = [2, 32], strides = [1, 1]} : vector<2x64xf32> to vector<2x32xf32>
    %362 = vector.extract_strided_slice %360 {offsets = [0, 32], sizes = [2, 32], strides = [1, 1]} : vector<2x64xf32> to vector<2x32xf32>
    %363 = vector.extract_strided_slice %350 {offsets = [0, 64], sizes = [2, 32], strides = [1, 1]} : vector<2x96xf32> to vector<2x32xf32>
    %364 = vector.extract_strided_slice %352 {offsets = [0, 64], sizes = [2, 32], strides = [1, 1]} : vector<2x96xf32> to vector<2x32xf32>
    %365 = vector.broadcast %78 : vector<1x32xf32> to vector<2x32xf32>
    %366 = arith.addf %364, %365 : vector<2x32xf32>
    %367 = arith.mulf %361, %366 : vector<2x32xf32>
    %368 = arith.addf %363, %367 : vector<2x32xf32>
    %369 = math.tanh %368 : vector<2x32xf32>
    %cst_87 = arith.constant 1.000000e+00 : f32
    %370 = vector.broadcast %cst_87 : f32 to vector<2x32xf32>
    %371 = arith.subf %370, %362 : vector<2x32xf32>
    %372 = arith.mulf %371, %369 : vector<2x32xf32>
    %373 = arith.mulf %362, %337 : vector<2x32xf32>
    %374 = arith.addf %372, %373 : vector<2x32xf32>
    %375 = vector.extract_strided_slice %374 {offsets = [0, 0], sizes = [2, 16], strides = [1, 1]} : vector<2x32xf32> to vector<2x16xf32>
    %c7_88 = arith.constant 7 : index
    %c0_89 = arith.constant 0 : index
    %c0_90 = arith.constant 0 : index
    %376 = vector.load %arg4[%c7_88, %c0_89, %c0_90] : memref<8x2x32xf32, #tpu.memory_space<vmem>>, vector<1x2x16xf32>
    %377 = vector.shape_cast %376 : vector<1x2x16xf32> to vector<2x16xf32>
    %378 = vector.shape_cast %375 : vector<2x16xf32> to vector<1x2x16xf32>
    tpu.vector_store %arg4[%c7_88, %c0_89, %c0_90], %378 {strides = array<i32>} : memref<8x2x32xf32, #tpu.memory_space<vmem>>, vector<1x2x16xf32>,
    %379 = vector.extract_strided_slice %374 {offsets = [0, 16], sizes = [2, 16], strides = [1, 1]} : vector<2x32xf32> to vector<2x16xf32>
    %c0_91 = arith.constant 0 : index
    %c0_92 = arith.constant 0 : index
    %c16_93 = arith.constant 16 : index
    %380 = vector.load %arg4[%c0_91, %c0_92, %c16_93] : memref<8x2x32xf32, #tpu.memory_space<vmem>>, vector<1x2x16xf32>
    %381 = vector.shape_cast %380 : vector<1x2x16xf32> to vector<2x16xf32>
    %382 = vector.shape_cast %379 : vector<2x16xf32> to vector<1x2x16xf32>
    tpu.vector_store %arg4[%c0_91, %c0_92, %c16_93], %382 {strides = array<i32>} : memref<8x2x32xf32, #tpu.memory_space<vmem>>, vector<1x2x16xf32>,
    %c0_94 = arith.constant 0 : index
    %c0_95 = arith.constant 0 : index
    %c0_96 = arith.constant 0 : index
    %383 = vector.load %arg4[%c0_94, %c0_95, %c0_96] : memref<8x2x32xf32, #tpu.memory_space<vmem>>, vector<8x2x32xf32>
    %384 = vector.shape_cast %383 : vector<8x2x32xf32> to vector<16x32xf32>
    %c160 = arith.constant 160 : index
    %c0_97 = arith.constant 0 : index
    %385 = vector.load %arg1[%c160, %c0_97] : memref<288x128xbf16, #tpu.memory_space<vmem>>, vector<32x96xbf16>
    %c192 = arith.constant 192 : index
    %c0_98 = arith.constant 0 : index
    %386 = vector.load %arg1[%c192, %c0_98] : memref<288x128xbf16, #tpu.memory_space<vmem>>, vector<32x96xbf16>
    %c224 = arith.constant 224 : index
    %c0_99 = arith.constant 0 : index
    %387 = vector.load %arg1[%c224, %c0_99] : memref<288x128xbf16, #tpu.memory_space<vmem>>, vector<32x96xbf16>
    %c8 = arith.constant 8 : index
    %c0_100 = arith.constant 0 : index
    %388 = vector.load %arg2[%c8, %c0_100] : memref<16x128xf32, #tpu.memory_space<vmem>>, vector<2x96xf32>
    %389 = vector.extract_strided_slice %388 {offsets = [0, 0], sizes = [1, 96], strides = [1, 1]} : vector<2x96xf32> to vector<1x96xf32>
    %390 = vector.extract_strided_slice %388 {offsets = [1, 64], sizes = [1, 32], strides = [1, 1]} : vector<2x96xf32> to vector<1x32xf32>
    %391 = arith.truncf %384 : vector<16x32xf32> to vector<16x32xbf16>
    %cst_101 = arith.constant dense<0.000000e+00> : vector<16x96xf32>
    %392 = tpu.matmul %391, %385, %cst_101 {dimension_numbers = #tpu.dot_dimension_numbers<[1], [0], [0], [1], [0, 0, 1, 1], [], []>} : vector<16x32xbf16>, vector<32x96xbf16>, vector<16x96xf32> -> vector<16x96xf32>
    %393 = vector.broadcast %389 : vector<1x96xf32> to vector<16x96xf32>
    %394 = arith.addf %392, %393 : vector<16x96xf32>
    %395 = vector.shape_cast %394 : vector<16x96xf32> to vector<8x2x96xf32>
    %cst_102 = arith.constant dense<0.000000e+00> : vector<16x96xf32>
    %396 = tpu.matmul %391, %386, %cst_102 {dimension_numbers = #tpu.dot_dimension_numbers<[1], [0], [0], [1], [0, 0, 1, 1], [], []>} : vector<16x32xbf16>, vector<32x96xbf16>, vector<16x96xf32> -> vector<16x96xf32>
    %397 = vector.shape_cast %396 : vector<16x96xf32> to vector<8x2x96xf32>
    %cst_103 = arith.constant 0.000000e+00 : f32
    %398 = vector.broadcast %cst_103 : f32 to vector<2x32xf32>
    %399 = vector.extract_strided_slice %395 {offsets = [0, 0, 0], sizes = [1, 2, 96], strides = [1, 1, 1]} : vector<8x2x96xf32> to vector<1x2x96xf32>
    %400 = vector.shape_cast %399 : vector<1x2x96xf32> to vector<2x96xf32>
    %401 = vector.extract_strided_slice %397 {offsets = [7, 0, 0], sizes = [1, 2, 96], strides = [1, 1, 1]} : vector<8x2x96xf32> to vector<1x2x96xf32>
    %402 = vector.shape_cast %401 : vector<1x2x96xf32> to vector<2x96xf32>
    %403 = arith.addf %400, %402 : vector<2x96xf32>
    %404 = arith.truncf %398 : vector<2x32xf32> to vector<2x32xbf16>
    %cst_104 = arith.constant dense<0.000000e+00> : vector<2x96xf32>
    %405 = tpu.matmul %404, %387, %cst_104 {dimension_numbers = #tpu.dot_dimension_numbers<[1], [0], [0], [1], [0, 0, 1, 1], [], []>} : vector<2x32xbf16>, vector<32x96xbf16>, vector<2x96xf32> -> vector<2x96xf32>
    %406 = vector.extract_strided_slice %403 {offsets = [0, 0], sizes = [2, 64], strides = [1, 1]} : vector<2x96xf32> to vector<2x64xf32>
    %407 = vector.extract_strided_slice %405 {offsets = [0, 0], sizes = [2, 64], strides = [1, 1]} : vector<2x96xf32> to vector<2x64xf32>
    %408 = arith.addf %406, %407 : vector<2x64xf32>
    %409 = arith.negf %408 : vector<2x64xf32>
    %410 = math.exp %409 : vector<2x64xf32>
    %cst_105 = arith.constant 1.000000e+00 : f32
    %411 = vector.broadcast %cst_105 : f32 to vector<2x64xf32>
    %412 = arith.addf %411, %410 : vector<2x64xf32>
    %413 = arith.divf %411, %412 : vector<2x64xf32>
    %414 = vector.extract_strided_slice %413 {offsets = [0, 0], sizes = [2, 32], strides = [1, 1]} : vector<2x64xf32> to vector<2x32xf32>
    %415 = vector.extract_strided_slice %413 {offsets = [0, 32], sizes = [2, 32], strides = [1, 1]} : vector<2x64xf32> to vector<2x32xf32>
    %416 = vector.extract_strided_slice %403 {offsets = [0, 64], sizes = [2, 32], strides = [1, 1]} : vector<2x96xf32> to vector<2x32xf32>
    %417 = vector.extract_strided_slice %405 {offsets = [0, 64], sizes = [2, 32], strides = [1, 1]} : vector<2x96xf32> to vector<2x32xf32>
    %418 = vector.broadcast %390 : vector<1x32xf32> to vector<2x32xf32>
    %419 = arith.addf %417, %418 : vector<2x32xf32>
    %420 = arith.mulf %414, %419 : vector<2x32xf32>
    %421 = arith.addf %416, %420 : vector<2x32xf32>
    %422 = math.tanh %421 : vector<2x32xf32>
    %cst_106 = arith.constant 1.000000e+00 : f32
    %423 = vector.broadcast %cst_106 : f32 to vector<2x32xf32>
    %424 = arith.subf %423, %415 : vector<2x32xf32>
    %425 = arith.mulf %424, %422 : vector<2x32xf32>
    %426 = arith.mulf %415, %398 : vector<2x32xf32>
    %427 = arith.addf %425, %426 : vector<2x32xf32>
    %428 = vector.extract_strided_slice %427 {offsets = [0, 16], sizes = [2, 16], strides = [1, 1]} : vector<2x32xf32> to vector<2x16xf32>
    %429 = vector.extract_strided_slice %395 {offsets = [1, 0, 0], sizes = [1, 2, 96], strides = [1, 1, 1]} : vector<8x2x96xf32> to vector<1x2x96xf32>
    %430 = vector.shape_cast %429 : vector<1x2x96xf32> to vector<2x96xf32>
    %431 = vector.extract_strided_slice %397 {offsets = [6, 0, 0], sizes = [1, 2, 96], strides = [1, 1, 1]} : vector<8x2x96xf32> to vector<1x2x96xf32>
    %432 = vector.shape_cast %431 : vector<1x2x96xf32> to vector<2x96xf32>
    %433 = arith.addf %430, %432 : vector<2x96xf32>
    %434 = arith.truncf %427 : vector<2x32xf32> to vector<2x32xbf16>
    %cst_107 = arith.constant dense<0.000000e+00> : vector<2x96xf32>
    %435 = tpu.matmul %434, %387, %cst_107 {dimension_numbers = #tpu.dot_dimension_numbers<[1], [0], [0], [1], [0, 0, 1, 1], [], []>} : vector<2x32xbf16>, vector<32x96xbf16>, vector<2x96xf32> -> vector<2x96xf32>
    %436 = vector.extract_strided_slice %433 {offsets = [0, 0], sizes = [2, 64], strides = [1, 1]} : vector<2x96xf32> to vector<2x64xf32>
    %437 = vector.extract_strided_slice %435 {offsets = [0, 0], sizes = [2, 64], strides = [1, 1]} : vector<2x96xf32> to vector<2x64xf32>
    %438 = arith.addf %436, %437 : vector<2x64xf32>
    %439 = arith.negf %438 : vector<2x64xf32>
    %440 = math.exp %439 : vector<2x64xf32>
    %cst_108 = arith.constant 1.000000e+00 : f32
    %441 = vector.broadcast %cst_108 : f32 to vector<2x64xf32>
    %442 = arith.addf %441, %440 : vector<2x64xf32>
    %443 = arith.divf %441, %442 : vector<2x64xf32>
    %444 = vector.extract_strided_slice %443 {offsets = [0, 0], sizes = [2, 32], strides = [1, 1]} : vector<2x64xf32> to vector<2x32xf32>
    %445 = vector.extract_strided_slice %443 {offsets = [0, 32], sizes = [2, 32], strides = [1, 1]} : vector<2x64xf32> to vector<2x32xf32>
    %446 = vector.extract_strided_slice %433 {offsets = [0, 64], sizes = [2, 32], strides = [1, 1]} : vector<2x96xf32> to vector<2x32xf32>
    %447 = vector.extract_strided_slice %435 {offsets = [0, 64], sizes = [2, 32], strides = [1, 1]} : vector<2x96xf32> to vector<2x32xf32>
    %448 = vector.broadcast %390 : vector<1x32xf32> to vector<2x32xf32>
    %449 = arith.addf %447, %448 : vector<2x32xf32>
    %450 = arith.mulf %444, %449 : vector<2x32xf32>
    %451 = arith.addf %446, %450 : vector<2x32xf32>
    %452 = math.tanh %451 : vector<2x32xf32>
    %cst_109 = arith.constant 1.000000e+00 : f32
    %453 = vector.broadcast %cst_109 : f32 to vector<2x32xf32>
    %454 = arith.subf %453, %445 : vector<2x32xf32>
    %455 = arith.mulf %454, %452 : vector<2x32xf32>
    %456 = arith.mulf %445, %427 : vector<2x32xf32>
    %457 = arith.addf %455, %456 : vector<2x32xf32>
    %458 = vector.extract_strided_slice %395 {offsets = [2, 0, 0], sizes = [1, 2, 96], strides = [1, 1, 1]} : vector<8x2x96xf32> to vector<1x2x96xf32>
    %459 = vector.shape_cast %458 : vector<1x2x96xf32> to vector<2x96xf32>
    %460 = vector.extract_strided_slice %397 {offsets = [5, 0, 0], sizes = [1, 2, 96], strides = [1, 1, 1]} : vector<8x2x96xf32> to vector<1x2x96xf32>
    %461 = vector.shape_cast %460 : vector<1x2x96xf32> to vector<2x96xf32>
    %462 = arith.addf %459, %461 : vector<2x96xf32>
    %463 = arith.truncf %457 : vector<2x32xf32> to vector<2x32xbf16>
    %cst_110 = arith.constant dense<0.000000e+00> : vector<2x96xf32>
    %464 = tpu.matmul %463, %387, %cst_110 {dimension_numbers = #tpu.dot_dimension_numbers<[1], [0], [0], [1], [0, 0, 1, 1], [], []>} : vector<2x32xbf16>, vector<32x96xbf16>, vector<2x96xf32> -> vector<2x96xf32>
    %465 = vector.extract_strided_slice %462 {offsets = [0, 0], sizes = [2, 64], strides = [1, 1]} : vector<2x96xf32> to vector<2x64xf32>
    %466 = vector.extract_strided_slice %464 {offsets = [0, 0], sizes = [2, 64], strides = [1, 1]} : vector<2x96xf32> to vector<2x64xf32>
    %467 = arith.addf %465, %466 : vector<2x64xf32>
    %468 = arith.negf %467 : vector<2x64xf32>
    %469 = math.exp %468 : vector<2x64xf32>
    %cst_111 = arith.constant 1.000000e+00 : f32
    %470 = vector.broadcast %cst_111 : f32 to vector<2x64xf32>
    %471 = arith.addf %470, %469 : vector<2x64xf32>
    %472 = arith.divf %470, %471 : vector<2x64xf32>
    %473 = vector.extract_strided_slice %472 {offsets = [0, 0], sizes = [2, 32], strides = [1, 1]} : vector<2x64xf32> to vector<2x32xf32>
    %474 = vector.extract_strided_slice %472 {offsets = [0, 32], sizes = [2, 32], strides = [1, 1]} : vector<2x64xf32> to vector<2x32xf32>
    %475 = vector.extract_strided_slice %462 {offsets = [0, 64], sizes = [2, 32], strides = [1, 1]} : vector<2x96xf32> to vector<2x32xf32>
    %476 = vector.extract_strided_slice %464 {offsets = [0, 64], sizes = [2, 32], strides = [1, 1]} : vector<2x96xf32> to vector<2x32xf32>
    %477 = vector.broadcast %390 : vector<1x32xf32> to vector<2x32xf32>
    %478 = arith.addf %476, %477 : vector<2x32xf32>
    %479 = arith.mulf %473, %478 : vector<2x32xf32>
    %480 = arith.addf %475, %479 : vector<2x32xf32>
    %481 = math.tanh %480 : vector<2x32xf32>
    %cst_112 = arith.constant 1.000000e+00 : f32
    %482 = vector.broadcast %cst_112 : f32 to vector<2x32xf32>
    %483 = arith.subf %482, %474 : vector<2x32xf32>
    %484 = arith.mulf %483, %481 : vector<2x32xf32>
    %485 = arith.mulf %474, %457 : vector<2x32xf32>
    %486 = arith.addf %484, %485 : vector<2x32xf32>
    %487 = vector.extract_strided_slice %395 {offsets = [3, 0, 0], sizes = [1, 2, 96], strides = [1, 1, 1]} : vector<8x2x96xf32> to vector<1x2x96xf32>
    %488 = vector.shape_cast %487 : vector<1x2x96xf32> to vector<2x96xf32>
    %489 = vector.extract_strided_slice %397 {offsets = [4, 0, 0], sizes = [1, 2, 96], strides = [1, 1, 1]} : vector<8x2x96xf32> to vector<1x2x96xf32>
    %490 = vector.shape_cast %489 : vector<1x2x96xf32> to vector<2x96xf32>
    %491 = arith.addf %488, %490 : vector<2x96xf32>
    %492 = arith.truncf %486 : vector<2x32xf32> to vector<2x32xbf16>
    %cst_113 = arith.constant dense<0.000000e+00> : vector<2x96xf32>
    %493 = tpu.matmul %492, %387, %cst_113 {dimension_numbers = #tpu.dot_dimension_numbers<[1], [0], [0], [1], [0, 0, 1, 1], [], []>} : vector<2x32xbf16>, vector<32x96xbf16>, vector<2x96xf32> -> vector<2x96xf32>
    %494 = vector.extract_strided_slice %491 {offsets = [0, 0], sizes = [2, 64], strides = [1, 1]} : vector<2x96xf32> to vector<2x64xf32>
    %495 = vector.extract_strided_slice %493 {offsets = [0, 0], sizes = [2, 64], strides = [1, 1]} : vector<2x96xf32> to vector<2x64xf32>
    %496 = arith.addf %494, %495 : vector<2x64xf32>
    %497 = arith.negf %496 : vector<2x64xf32>
    %498 = math.exp %497 : vector<2x64xf32>
    %cst_114 = arith.constant 1.000000e+00 : f32
    %499 = vector.broadcast %cst_114 : f32 to vector<2x64xf32>
    %500 = arith.addf %499, %498 : vector<2x64xf32>
    %501 = arith.divf %499, %500 : vector<2x64xf32>
    %502 = vector.extract_strided_slice %501 {offsets = [0, 0], sizes = [2, 32], strides = [1, 1]} : vector<2x64xf32> to vector<2x32xf32>
    %503 = vector.extract_strided_slice %501 {offsets = [0, 32], sizes = [2, 32], strides = [1, 1]} : vector<2x64xf32> to vector<2x32xf32>
    %504 = vector.extract_strided_slice %491 {offsets = [0, 64], sizes = [2, 32], strides = [1, 1]} : vector<2x96xf32> to vector<2x32xf32>
    %505 = vector.extract_strided_slice %493 {offsets = [0, 64], sizes = [2, 32], strides = [1, 1]} : vector<2x96xf32> to vector<2x32xf32>
    %506 = vector.broadcast %390 : vector<1x32xf32> to vector<2x32xf32>
    %507 = arith.addf %505, %506 : vector<2x32xf32>
    %508 = arith.mulf %502, %507 : vector<2x32xf32>
    %509 = arith.addf %504, %508 : vector<2x32xf32>
    %510 = math.tanh %509 : vector<2x32xf32>
    %cst_115 = arith.constant 1.000000e+00 : f32
    %511 = vector.broadcast %cst_115 : f32 to vector<2x32xf32>
    %512 = arith.subf %511, %503 : vector<2x32xf32>
    %513 = arith.mulf %512, %510 : vector<2x32xf32>
    %514 = arith.mulf %503, %486 : vector<2x32xf32>
    %515 = arith.addf %513, %514 : vector<2x32xf32>
    %516 = vector.extract_strided_slice %395 {offsets = [4, 0, 0], sizes = [1, 2, 96], strides = [1, 1, 1]} : vector<8x2x96xf32> to vector<1x2x96xf32>
    %517 = vector.shape_cast %516 : vector<1x2x96xf32> to vector<2x96xf32>
    %518 = vector.extract_strided_slice %397 {offsets = [3, 0, 0], sizes = [1, 2, 96], strides = [1, 1, 1]} : vector<8x2x96xf32> to vector<1x2x96xf32>
    %519 = vector.shape_cast %518 : vector<1x2x96xf32> to vector<2x96xf32>
    %520 = arith.addf %517, %519 : vector<2x96xf32>
    %521 = arith.truncf %515 : vector<2x32xf32> to vector<2x32xbf16>
    %cst_116 = arith.constant dense<0.000000e+00> : vector<2x96xf32>
    %522 = tpu.matmul %521, %387, %cst_116 {dimension_numbers = #tpu.dot_dimension_numbers<[1], [0], [0], [1], [0, 0, 1, 1], [], []>} : vector<2x32xbf16>, vector<32x96xbf16>, vector<2x96xf32> -> vector<2x96xf32>
    %523 = vector.extract_strided_slice %520 {offsets = [0, 0], sizes = [2, 64], strides = [1, 1]} : vector<2x96xf32> to vector<2x64xf32>
    %524 = vector.extract_strided_slice %522 {offsets = [0, 0], sizes = [2, 64], strides = [1, 1]} : vector<2x96xf32> to vector<2x64xf32>
    %525 = arith.addf %523, %524 : vector<2x64xf32>
    %526 = arith.negf %525 : vector<2x64xf32>
    %527 = math.exp %526 : vector<2x64xf32>
    %cst_117 = arith.constant 1.000000e+00 : f32
    %528 = vector.broadcast %cst_117 : f32 to vector<2x64xf32>
    %529 = arith.addf %528, %527 : vector<2x64xf32>
    %530 = arith.divf %528, %529 : vector<2x64xf32>
    %531 = vector.extract_strided_slice %530 {offsets = [0, 0], sizes = [2, 32], strides = [1, 1]} : vector<2x64xf32> to vector<2x32xf32>
    %532 = vector.extract_strided_slice %530 {offsets = [0, 32], sizes = [2, 32], strides = [1, 1]} : vector<2x64xf32> to vector<2x32xf32>
    %533 = vector.extract_strided_slice %520 {offsets = [0, 64], sizes = [2, 32], strides = [1, 1]} : vector<2x96xf32> to vector<2x32xf32>
    %534 = vector.extract_strided_slice %522 {offsets = [0, 64], sizes = [2, 32], strides = [1, 1]} : vector<2x96xf32> to vector<2x32xf32>
    %535 = vector.broadcast %390 : vector<1x32xf32> to vector<2x32xf32>
    %536 = arith.addf %534, %535 : vector<2x32xf32>
    %537 = arith.mulf %531, %536 : vector<2x32xf32>
    %538 = arith.addf %533, %537 : vector<2x32xf32>
    %539 = math.tanh %538 : vector<2x32xf32>
    %cst_118 = arith.constant 1.000000e+00 : f32
    %540 = vector.broadcast %cst_118 : f32 to vector<2x32xf32>
    %541 = arith.subf %540, %532 : vector<2x32xf32>
    %542 = arith.mulf %541, %539 : vector<2x32xf32>
    %543 = arith.mulf %532, %515 : vector<2x32xf32>
    %544 = arith.addf %542, %543 : vector<2x32xf32>
    %545 = vector.extract_strided_slice %395 {offsets = [5, 0, 0], sizes = [1, 2, 96], strides = [1, 1, 1]} : vector<8x2x96xf32> to vector<1x2x96xf32>
    %546 = vector.shape_cast %545 : vector<1x2x96xf32> to vector<2x96xf32>
    %547 = vector.extract_strided_slice %397 {offsets = [2, 0, 0], sizes = [1, 2, 96], strides = [1, 1, 1]} : vector<8x2x96xf32> to vector<1x2x96xf32>
    %548 = vector.shape_cast %547 : vector<1x2x96xf32> to vector<2x96xf32>
    %549 = arith.addf %546, %548 : vector<2x96xf32>
    %550 = arith.truncf %544 : vector<2x32xf32> to vector<2x32xbf16>
    %cst_119 = arith.constant dense<0.000000e+00> : vector<2x96xf32>
    %551 = tpu.matmul %550, %387, %cst_119 {dimension_numbers = #tpu.dot_dimension_numbers<[1], [0], [0], [1], [0, 0, 1, 1], [], []>} : vector<2x32xbf16>, vector<32x96xbf16>, vector<2x96xf32> -> vector<2x96xf32>
    %552 = vector.extract_strided_slice %549 {offsets = [0, 0], sizes = [2, 64], strides = [1, 1]} : vector<2x96xf32> to vector<2x64xf32>
    %553 = vector.extract_strided_slice %551 {offsets = [0, 0], sizes = [2, 64], strides = [1, 1]} : vector<2x96xf32> to vector<2x64xf32>
    %554 = arith.addf %552, %553 : vector<2x64xf32>
    %555 = arith.negf %554 : vector<2x64xf32>
    %556 = math.exp %555 : vector<2x64xf32>
    %cst_120 = arith.constant 1.000000e+00 : f32
    %557 = vector.broadcast %cst_120 : f32 to vector<2x64xf32>
    %558 = arith.addf %557, %556 : vector<2x64xf32>
    %559 = arith.divf %557, %558 : vector<2x64xf32>
    %560 = vector.extract_strided_slice %559 {offsets = [0, 0], sizes = [2, 32], strides = [1, 1]} : vector<2x64xf32> to vector<2x32xf32>
    %561 = vector.extract_strided_slice %559 {offsets = [0, 32], sizes = [2, 32], strides = [1, 1]} : vector<2x64xf32> to vector<2x32xf32>
    %562 = vector.extract_strided_slice %549 {offsets = [0, 64], sizes = [2, 32], strides = [1, 1]} : vector<2x96xf32> to vector<2x32xf32>
    %563 = vector.extract_strided_slice %551 {offsets = [0, 64], sizes = [2, 32], strides = [1, 1]} : vector<2x96xf32> to vector<2x32xf32>
    %564 = vector.broadcast %390 : vector<1x32xf32> to vector<2x32xf32>
    %565 = arith.addf %563, %564 : vector<2x32xf32>
    %566 = arith.mulf %560, %565 : vector<2x32xf32>
    %567 = arith.addf %562, %566 : vector<2x32xf32>
    %568 = math.tanh %567 : vector<2x32xf32>
    %cst_121 = arith.constant 1.000000e+00 : f32
    %569 = vector.broadcast %cst_121 : f32 to vector<2x32xf32>
    %570 = arith.subf %569, %561 : vector<2x32xf32>
    %571 = arith.mulf %570, %568 : vector<2x32xf32>
    %572 = arith.mulf %561, %544 : vector<2x32xf32>
    %573 = arith.addf %571, %572 : vector<2x32xf32>
    %574 = vector.extract_strided_slice %395 {offsets = [6, 0, 0], sizes = [1, 2, 96], strides = [1, 1, 1]} : vector<8x2x96xf32> to vector<1x2x96xf32>
    %575 = vector.shape_cast %574 : vector<1x2x96xf32> to vector<2x96xf32>
    %576 = vector.extract_strided_slice %397 {offsets = [1, 0, 0], sizes = [1, 2, 96], strides = [1, 1, 1]} : vector<8x2x96xf32> to vector<1x2x96xf32>
    %577 = vector.shape_cast %576 : vector<1x2x96xf32> to vector<2x96xf32>
    %578 = arith.addf %575, %577 : vector<2x96xf32>
    %579 = arith.truncf %573 : vector<2x32xf32> to vector<2x32xbf16>
    %cst_122 = arith.constant dense<0.000000e+00> : vector<2x96xf32>
    %580 = tpu.matmul %579, %387, %cst_122 {dimension_numbers = #tpu.dot_dimension_numbers<[1], [0], [0], [1], [0, 0, 1, 1], [], []>} : vector<2x32xbf16>, vector<32x96xbf16>, vector<2x96xf32> -> vector<2x96xf32>
    %581 = vector.extract_strided_slice %578 {offsets = [0, 0], sizes = [2, 64], strides = [1, 1]} : vector<2x96xf32> to vector<2x64xf32>
    %582 = vector.extract_strided_slice %580 {offsets = [0, 0], sizes = [2, 64], strides = [1, 1]} : vector<2x96xf32> to vector<2x64xf32>
    %583 = arith.addf %581, %582 : vector<2x64xf32>
    %584 = arith.negf %583 : vector<2x64xf32>
    %585 = math.exp %584 : vector<2x64xf32>
    %cst_123 = arith.constant 1.000000e+00 : f32
    %586 = vector.broadcast %cst_123 : f32 to vector<2x64xf32>
    %587 = arith.addf %586, %585 : vector<2x64xf32>
    %588 = arith.divf %586, %587 : vector<2x64xf32>
    %589 = vector.extract_strided_slice %588 {offsets = [0, 0], sizes = [2, 32], strides = [1, 1]} : vector<2x64xf32> to vector<2x32xf32>
    %590 = vector.extract_strided_slice %588 {offsets = [0, 32], sizes = [2, 32], strides = [1, 1]} : vector<2x64xf32> to vector<2x32xf32>
    %591 = vector.extract_strided_slice %578 {offsets = [0, 64], sizes = [2, 32], strides = [1, 1]} : vector<2x96xf32> to vector<2x32xf32>
    %592 = vector.extract_strided_slice %580 {offsets = [0, 64], sizes = [2, 32], strides = [1, 1]} : vector<2x96xf32> to vector<2x32xf32>
    %593 = vector.broadcast %390 : vector<1x32xf32> to vector<2x32xf32>
    %594 = arith.addf %592, %593 : vector<2x32xf32>
    %595 = arith.mulf %589, %594 : vector<2x32xf32>
    %596 = arith.addf %591, %595 : vector<2x32xf32>
    %597 = math.tanh %596 : vector<2x32xf32>
    %cst_124 = arith.constant 1.000000e+00 : f32
    %598 = vector.broadcast %cst_124 : f32 to vector<2x32xf32>
    %599 = arith.subf %598, %590 : vector<2x32xf32>
    %600 = arith.mulf %599, %597 : vector<2x32xf32>
    %601 = arith.mulf %590, %573 : vector<2x32xf32>
    %602 = arith.addf %600, %601 : vector<2x32xf32>
    %603 = vector.extract_strided_slice %395 {offsets = [7, 0, 0], sizes = [1, 2, 96], strides = [1, 1, 1]} : vector<8x2x96xf32> to vector<1x2x96xf32>
    %604 = vector.shape_cast %603 : vector<1x2x96xf32> to vector<2x96xf32>
    %605 = vector.extract_strided_slice %397 {offsets = [0, 0, 0], sizes = [1, 2, 96], strides = [1, 1, 1]} : vector<8x2x96xf32> to vector<1x2x96xf32>
    %606 = vector.shape_cast %605 : vector<1x2x96xf32> to vector<2x96xf32>
    %607 = arith.addf %604, %606 : vector<2x96xf32>
    %608 = arith.truncf %602 : vector<2x32xf32> to vector<2x32xbf16>
    %cst_125 = arith.constant dense<0.000000e+00> : vector<2x96xf32>
    %609 = tpu.matmul %608, %387, %cst_125 {dimension_numbers = #tpu.dot_dimension_numbers<[1], [0], [0], [1], [0, 0, 1, 1], [], []>} : vector<2x32xbf16>, vector<32x96xbf16>, vector<2x96xf32> -> vector<2x96xf32>
    %610 = vector.extract_strided_slice %607 {offsets = [0, 0], sizes = [2, 64], strides = [1, 1]} : vector<2x96xf32> to vector<2x64xf32>
    %611 = vector.extract_strided_slice %609 {offsets = [0, 0], sizes = [2, 64], strides = [1, 1]} : vector<2x96xf32> to vector<2x64xf32>
    %612 = arith.addf %610, %611 : vector<2x64xf32>
    %613 = arith.negf %612 : vector<2x64xf32>
    %614 = math.exp %613 : vector<2x64xf32>
    %cst_126 = arith.constant 1.000000e+00 : f32
    %615 = vector.broadcast %cst_126 : f32 to vector<2x64xf32>
    %616 = arith.addf %615, %614 : vector<2x64xf32>
    %617 = arith.divf %615, %616 : vector<2x64xf32>
    %618 = vector.extract_strided_slice %617 {offsets = [0, 0], sizes = [2, 32], strides = [1, 1]} : vector<2x64xf32> to vector<2x32xf32>
    %619 = vector.extract_strided_slice %617 {offsets = [0, 32], sizes = [2, 32], strides = [1, 1]} : vector<2x64xf32> to vector<2x32xf32>
    %620 = vector.extract_strided_slice %607 {offsets = [0, 64], sizes = [2, 32], strides = [1, 1]} : vector<2x96xf32> to vector<2x32xf32>
    %621 = vector.extract_strided_slice %609 {offsets = [0, 64], sizes = [2, 32], strides = [1, 1]} : vector<2x96xf32> to vector<2x32xf32>
    %622 = vector.broadcast %390 : vector<1x32xf32> to vector<2x32xf32>
    %623 = arith.addf %621, %622 : vector<2x32xf32>
    %624 = arith.mulf %618, %623 : vector<2x32xf32>
    %625 = arith.addf %620, %624 : vector<2x32xf32>
    %626 = math.tanh %625 : vector<2x32xf32>
    %cst_127 = arith.constant 1.000000e+00 : f32
    %627 = vector.broadcast %cst_127 : f32 to vector<2x32xf32>
    %628 = arith.subf %627, %619 : vector<2x32xf32>
    %629 = arith.mulf %628, %626 : vector<2x32xf32>
    %630 = arith.mulf %619, %602 : vector<2x32xf32>
    %631 = arith.addf %629, %630 : vector<2x32xf32>
    %c256 = arith.constant 256 : index
    %c0_128 = arith.constant 0 : index
    %632 = vector.load %arg1[%c256, %c0_128] : memref<288x128xbf16, #tpu.memory_space<vmem>>, vector<32x1xbf16>
    %c10 = arith.constant 10 : index
    %c0_129 = arith.constant 0 : index
    %633 = vector.load %arg2[%c10, %c0_129] : memref<16x128xf32, #tpu.memory_space<vmem>>, vector<1x1xf32>
    %634 = vector.extract_strided_slice %631 {offsets = [0, 0], sizes = [2, 16], strides = [1, 1]} : vector<2x32xf32> to vector<2x16xf32>
    %635 = arith.truncf %634 : vector<2x16xf32> to vector<2x16xbf16>
    %636 = vector.extract_strided_slice %632 {offsets = [0, 0], sizes = [16, 1], strides = [1, 1]} : vector<32x1xbf16> to vector<16x1xbf16>
    %cst_130 = arith.constant dense<0.000000e+00> : vector<2x1xf32>
    %637 = tpu.matmul %635, %636, %cst_130 {dimension_numbers = #tpu.dot_dimension_numbers<[1], [0], [0], [1], [0, 0, 1, 1], [], []>} : vector<2x16xbf16>, vector<16x1xbf16>, vector<2x1xf32> -> vector<2x1xf32>
    %638 = arith.truncf %428 : vector<2x16xf32> to vector<2x16xbf16>
    %639 = vector.extract_strided_slice %632 {offsets = [16, 0], sizes = [16, 1], strides = [1, 1]} : vector<32x1xbf16> to vector<16x1xbf16>
    %cst_131 = arith.constant dense<0.000000e+00> : vector<2x1xf32>
    %640 = tpu.matmul %638, %639, %cst_131 {dimension_numbers = #tpu.dot_dimension_numbers<[1], [0], [0], [1], [0, 0, 1, 1], [], []>} : vector<2x16xbf16>, vector<16x1xbf16>, vector<2x1xf32> -> vector<2x1xf32>
    %641 = arith.addf %637, %640 : vector<2x1xf32>
    %642 = vector.broadcast %633 : vector<1x1xf32> to vector<2x1xf32>
    %643 = arith.addf %641, %642 : vector<2x1xf32>
    %c0_132 = arith.constant 0 : index
    %c0_133 = arith.constant 0 : index
    %644 = vector.load %arg3[%c0_132, %c0_133] : memref<2x1xf32, #tpu.memory_space<vmem>>, vector<2x1xf32>
    tpu.vector_store %arg3[%c0_132, %c0_133], %643 {strides = array<i32>} : memref<2x1xf32, #tpu.memory_space<vmem>>, vector<2x1xf32>,
    return
  }
}

</mosaic_0001>

<bundles_post_ra>
// kernel: conv_discriminator_forward.1
= control target key start
LH: loop header
LB: loop body
LE: loop exit
PB: predicated region body
PF: predicated region fallthrough
CT: control target
= control target key end

     0   :  { %8 = vsyncpa [#allocation4], 0  ;;  %s3441_s12 = smov [#allocation3]   ;;  %s4053_s0 = inlined_call_operand.vmem [shape: f32[2,6,8], index: 0, kind: input, shape index: {}]   ;;  %s4054_s1 = inlined_call_operand.hbm [shape: bf16[288,128], index: 1, kind: input, shape index: {}]   ;;  %s4055_s2 = inlined_call_operand.vmem [shape: f32[16,128], index: 2, kind: input, shape index: {}]   ;;  %s4056_s3 = inlined_call_operand.vmem [shape: f32[2,1], index: 3, kind: output, shape index: {}]  }
   0x1   :  { %s16_s13 = sshll.u32 %s3441_s12, 4  ;;  %s3417_s16 = scalar_lea.hbm %s4054_s1, 2304  ;;  %s17_s13 = int_to_ptr.vmem [resolvable:$true] %s16_s13 }
   0x2   :  { %p3418_p0 = scmp.ne.s32.totalorder %s4054_s1, %s3417_s16  ;;  %p3421_p1 = scmp.lt.u32.totalorder %s3417_s16, %s4054_s1 }
   0x4   :  { %p3423_p2 = pnand %p3421_p1, %p3418_p0 }
   0x6   :  { %3426 = shalt.err (!%p3423_p2)
}
   0x7   :  { %s3427_s21 = scalar_lea.vmem %s17_s13, 2304  ;;  %p3432_p4 = scmp.lt.s32.totalorder %s17_s13, %s17_s13 }
   0x8   :  { %p3428_p3 = scmp.ne.s32.totalorder %s17_s13, %s3427_s21  ;;  %p3433_p5 = scmp.lt.s32.totalorder %s3427_s21, %s3427_s21 }
   0xa   :  { %p3434_p6 = por %p3433_p5, %p3432_p4 }
   0xc   :  { %p3435_p7 = pnand %p3434_p6, %p3428_p3 }
   0xe   :  { %3438 = shalt.err (!%p3435_p7)
}
   0xf   :  { %s3442_s22 = smov 64   ;;  %s3443_s23 = smov 4  }
  0x10   :  { %22 = dma.hbm_to_vmem [thread:$0]  %s4054_s1, 2304, %s17_s13, [#allocation4], %s3442_s22, %s3442_s22, %s3443_s23  }
  0x11   :  { %3439 = dma.done.wait [#allocation4], 2304  }
  0x12   :  { %3440 = vsyncadd [#allocation4], 4294964992  ;;  %v3444_v0 = vmov 0.0   ;;  %vm69_vm0 = vcmask 1042432   ;;  %v31_v1 = vld [vmem:[%s4053_s0 + $0x8] sm:$0x3f]  ;;  %v194_v9 = vlaneseq }
  0x13   :  { %3097 = vmatprep.subr.bf16.mxu1 %v3444_v0  ;;  %3091 = vmatprep.subr.bf16.mxu0 %v3444_v0  ;;  %v30_v2 = vld [vmem:[%s4053_s0] sm:$0x3f]  ;;  %v29_v3 = vld [vmem:[#allocation3] sm:$0x7]  ;;  %vm3445_vm1 = vmmov 0   ;;  %vm65_vm2 = vcmask 48128  }
  0x14   :  { %113 = vxpose.xlu0.b32.start.end [1/1] (short) (narrow) %v31_v1, 8  ;;  %v71_v4 = vsel %vm69_vm0, %v29_v3, 0  ;;  %3099 = vmatprep.mubr.msk.bf16.mxu1 %vm3445_vm1, %v3444_v0  ;;  %v3446_v10 = vmov 1983009808   ;;  %v195_v12 = vshrl.u32 %v194_v9, 7  ;;  %s3447_s30 = smov 12  }
  0x15   :  { %3098 = vmatpush3.bf16.msra.mxu1 %v71_v4  ;;  %3092 = vmatpush3.bf16.msra.mxu0 %v71_v4  ;;  %v356_v11 = vunpack.c.l.s4 %v3446_v10  ;;  %v537_v16 = vld [vmem:[%s4055_s2] sm:$0x3]  ;;  %v3448_v27 = vmov 1966171168   ;;  %vm337_vm3 = vcmask 1040384   ;;  %vm388_vm4 = vcmask 1041408  }
  0x16   :  { %3093 = vmatprep.mubr.msk.bf16.mxu0 %vm3445_vm1, %v3444_v0  ;;  %3103 = vmatprep.subr.bf16.mxu0 %v3444_v0  ;;  %v3508_v14 = vsub.s32 0, %v195_v12  ;;  %v3517_v19 = vsub.s32 1, %v195_v12  ;;  %v192_v28 = vunpack.c.l.s4 %v3448_v27  ;;  %vm468_vm5 = vcmask 1045504   ;;  %s3449_s4 = smov 116   ;;  %s3450_s5 = smov 24  }
  0x17   :  { %3109 = vmatprep.subr.bf16.mxu1 %v3444_v0  ;;  %v357_v13 = vunpack.c.0.s8 %v356_v11  ;;  %vm685_vm6 = vcmask 97280   ;;  %vm806_vm7 = vcmask 1043456   ;;  %s3451_s8 = smov 104   ;;  %vm802_vm8 = vcmask 195584   ;;  %s3452_s9 = smov 32  }
  0x18   :  { %32 = vxpose.xlu0.b32.start.end [1/1] (short) (narrow) %v30_v2, 8  ;;  %v541_v17 = vrot.slane %v537_v16, %v3508_v14  ;;  %v3520_v21 = vrot.slane %v537_v16, %v3517_v19  ;;  %v193_v29 = vunpack.c.0.s8 %v192_v28  ;;  %s3453_s12 = smov 96   ;;  %vm937_vm9 = vcmask 261120   ;;  %s3455_s17 = smov 80  }
  0x19   :  { %v3510_v15 = vsub.s32 %v357_v13, %v195_v12  ;;  %vm1228_vm10 = vcmask 123904   ;;  %vm1231_vm11 = vcmask 255104   ;;  %vm2850_vm12 = vcmask 130048  }
  0x1a   :  { %v543_v23 = vcombine.high %v541_v17, %v541_v17  ;;  %v196_v30 = vsub.s32 %v193_v29, %v195_v12  ;;  %vm2951_vm13 = vcmask 1024  }
  0x1b   :  { %v550_v18 = vrot.slane %v541_v17, %v3510_v15  ;;  %v592_v22 = vrot.slane %v3520_v21, %v3510_v15 }
  0x1c   :  { %v557_v25 = vrot.slane %v543_v23, %v3510_v15 }
  0x1d   :  { %v558_v20 = vcombine.high %v550_v18, %v550_v18  ;;  %v600_v24 = vcombine.high %v592_v22, %v592_v22 }
  0x1e   :  { %v559_v26 = vcombine.high %v557_v25, %v557_v25 }
  0x1f   :  { %562 = vrot.lane.b32.xlu1 %v558_v20, %s3447_s30 }
  0x23   :  { %604 = vrot.lane.b32.xlu1 %v600_v24, %s3447_s30 }
  0x27   :  { %566 = vrot.lane.b32.xlu1 %v559_v26, %s3447_s30 }
  0x41   :  { %560 = vrot.lane.b32.xlu0 %v550_v18, %s3447_s30 }
  0x45   :  { %564 = vrot.lane.b32.xlu0 %v557_v25, %s3447_s30 }
  0x49   :  { %602 = vrot.lane.b32.xlu0 %v592_v22, %s3447_s30 }
  0x94   :  { %v129_v5 = vpop.trf.xlu0 }
  0x95   :  { %v145_v6 = vpack.c.bf16 %v129_v5, %v129_v5 }
  0x97   :  { %3100 = vmatmul.mubr.msk.bf16.vlgmr.msra.gmra.mrb[0].mxu1 %vm65_vm2, %v145_v6 }
  0x98   :  { %v48_v7 = vpop.trf.xlu0  ;;  %3113 = vmatprep.mubr.msk.bf16.mxu1 %vm3445_vm1, %v3444_v0 }
  0x99   :  { %v64_v8 = vpack.c.bf16 %v48_v7, %v48_v7 }
  0x9b   :  { %3094 = vmatmul.mubr.msk.bf16.vlgmr.msra.gmra.mrb[0].mxu0 %vm65_vm2, %v64_v8 }
  0x9c   :  { %3105 = vmatprep.mubr.msk.bf16.mxu0 %vm3445_vm1, %v3444_v0 }
 0x16a   :  { %v183_v31 = vpop.f32.mrb[0].mxu1 }
 0x16b   :  { %v248_v32 = vcombine.high %v183_v31, %v183_v31  ;;  %v255_v33 = vrot.slane %v183_v31, %v196_v30  ;;  %v3101_v34 = vpop.f32.mrb[1].mxu1 }
 0x16c   :  { %v186_v35 = vpop.f32.mrb[2].mxu1 }
 0x16d   :  { %v262_v36 = vrot.slane %v248_v32, %v196_v30  ;;  %v263_v37 = vcombine.high %v255_v33, %v255_v33  ;;  %v271_v38 = vrot.slane %v255_v33, %v196_v30  ;;  %v3102_v39 = vpop.f32.mrb[3].mxu1 }
 0x16e   :  { %v107_v40 = vpop.f32.mrb[0].mxu0 }
 0x16f   :  { %v264_v41 = vcombine.high %v262_v36, %v262_v36  ;;  %v278_v42 = vrot.slane %v262_v36, %v196_v30  ;;  %v285_v43 = vrot.slane %v263_v37, %v196_v30  ;;  %v293_v44 = vcombine.high %v271_v38, %v271_v38  ;;  %v3095_v45 = vpop.f32.mrb[1].mxu0 }
 0x170   :  { %v190_v46 = vcombine.high %v107_v40, %v107_v40  ;;  %v197_v47 = vrot.slane %v107_v40, %v196_v30  ;;  %v110_v48 = vpop.f32.mrb[2].mxu0  ;;  %v300_v56 = vrot.slane %v271_v38, %v3508_v14 }
 0x171   :  { %v292_v49 = vrot.slane %v264_v41, %v196_v30  ;;  %v294_v50 = vcombine.high %v278_v42, %v278_v42  ;;  %v295_v51 = vcombine.high %v285_v43, %v285_v43  ;;  %v3096_v52 = vpop.f32.mrb[3].mxu0  ;;  %v304_v57 = vrot.slane %v285_v43, %v3508_v14 }
 0x172   :  { %v204_v53 = vrot.slane %v190_v46, %v196_v30  ;;  %v205_v54 = vcombine.high %v197_v47, %v197_v47  ;;  %v308_v58 = vrot.slane %v293_v44, %v3508_v14  ;;  %v213_v60 = vrot.slane %v197_v47, %v196_v30 }
 0x173   :  { %v296_v55 = vcombine.high %v292_v49, %v292_v49  ;;  %v312_v63 = vrot.slane %v295_v51, %v3508_v14  ;;  %v316_v1 = vrot.slane %v278_v42, %v3508_v14  ;;  %v320_v2 = vrot.slane %v292_v49, %v3508_v14 }
 0x174   :  { %v206_v59 = vcombine.high %v204_v53, %v204_v53  ;;  %v220_v61 = vrot.slane %v204_v53, %v196_v30  ;;  %v227_v62 = vrot.slane %v205_v54, %v196_v30  ;;  %v324_v3 = vrot.slane %v294_v50, %v3508_v14 }
 0x175   :  { %v235_v5 = vcombine.high %v213_v60, %v213_v60  ;;  %v328_v8 = vrot.slane %v296_v55, %v3508_v14  ;;  %v3540_v9 = vsel %vm337_vm3, %v213_v60, %v300_v56  ;;  %v585_v42 = vcombine.high %v3520_v21, %v3520_v21 }
 0x176   :  { %v234_v4 = vrot.slane %v206_v59, %v196_v30  ;;  %v236_v6 = vcombine.high %v220_v61, %v220_v61  ;;  %v237_v7 = vcombine.high %v227_v62, %v227_v62  ;;  %v3543_v10 = vsel %vm337_vm3, %v227_v62, %v304_v57  ;;  %v3304_v59 = vld [vmem:[#allocation3 + $0x8] sm:$0x3f]  }
 0x177   :  { %v3546_v11 = vsel %vm337_vm3, %v220_v61, %v316_v1  ;;  %v3549_v13 = vsel %vm337_vm3, %v235_v5, %v308_v58  ;;  %v353_v20 = vcombine.low %v3540_v9, %v3540_v9  ;;  %v599_v46 = vrot.slane %v585_v42, %v3510_v15  ;;  %v563_v61 = vpop.permute.xlu1 %562 }
 0x178   :  { %v238_v12 = vcombine.high %v234_v4, %v234_v4  ;;  %v3552_v16 = vsel %vm337_vm3, %v237_v7, %v312_v63  ;;  %v3555_v17 = vsel %vm337_vm3, %v234_v4, %v320_v2  ;;  %v3558_v18 = vsel %vm337_vm3, %v236_v6, %v324_v3  ;;  %v561_v7 = vpop.permute.xlu0 %560 }
 0x179   :  { %v370_v22 = vcombine.low %v3552_v16, %v3546_v11  ;;  %v354_v23 = vcombine.low %v3543_v10, %v3549_v13  ;;  %v371_v24 = vcombine.low %v3555_v17, %v3558_v18  ;;  %v361_v26 = vrot.slane %v353_v20, %v3510_v15 }
 0x17a   :  { %v3569_v25 = vsel %vm337_vm3, %v238_v12, %v328_v8  ;;  %v601_v58 = vcombine.high %v599_v46, %v599_v46  ;;  %v690_v60 = vsel %vm468_vm5, %v3304_v59, 0 }
 0x17b   :  { %v368_v27 = vrot.slane %v354_v23, %v3510_v15  ;;  %v465_v28 = vrot.slane %v3569_v25, %v3510_v15  ;;  %v378_v29 = vrot.slane %v370_v22, %v3510_v15  ;;  %v385_v30 = vrot.slane %v371_v24, %v3510_v15  ;;  %3104 = vmatpush3.bf16.msra.mxu0 %v690_v60  ;;  %v605_v62 = vpop.permute.xlu1 %604 }
 0x17c   :  { %3117 = vmatprep.subr.bf16.mxu0 %v3444_v0  ;;  %v565_v12 = vpop.permute.xlu0 %564 }
 0x17d   :  { %v369_v31 = vcombine.low %v361_v26, %v368_v27  ;;  %v466_v32 = vcombine.low %v385_v30, %v465_v28  ;;  %v386_v36 = vcombine.low %v378_v29, %v385_v30  ;;  %v2960_v41 = vcombine.low %v385_v30, %v385_v30 }
 0x17e   :  { %v458_v45 = vcombine.low %v368_v27, %v378_v29  ;;  %v2961_v48 = vcombine.low %v378_v29, %v378_v29 }
 0x17f   :  { %v389_v33 = vsel %vm388_vm4, 0.0, %v369_v31  ;;  %v469_v37 = vsel %vm468_vm5, %v466_v32, 0.0  ;;  %v415_v40 = vrot.slane %v386_v36, %v3510_v15  ;;  %v422_v44 = vrot.slane %v2960_v41, %v3510_v15  ;;  %v567_v63 = vpop.permute.xlu1 %566 }
 0x180   :  { %v398_v34 = vrot.slane %v389_v33, %v3510_v15  ;;  %v391_v35 = vcombine.high %v389_v33, %v389_v33  ;;  %v488_v39 = vcombine.high %v469_v37, %v469_v37  ;;  %v478_v47 = vrot.slane %v458_v45, %v3510_v15  ;;  %v603_v23 = vpop.permute.xlu0 %602 }
 0x181   :  { %v485_v21 = vrot.slane %v2961_v48, %v3510_v15  ;;  %v495_v50 = vrot.slane %v469_v37, %v3510_v15  ;;  %v423_v51 = vcombine.high %v415_v40, %v415_v40  ;;  %v424_v52 = vcombine.high %v422_v44, %v422_v44 }
 0x182   :  { %425 = vrot.lane.b32.xlu1 %v398_v34, %s3447_s30  ;;  %v405_v38 = vrot.slane %v391_v35, %v3510_v15  ;;  %v502_v43 = vrot.slane %v488_v39, %v3510_v15  ;;  %v406_v49 = vcombine.high %v398_v34, %v398_v34  ;;  %v486_v53 = vcombine.high %v478_v47, %v478_v47 }
 0x183   :  { %v487_v54 = vcombine.high %v485_v21, %v485_v21  ;;  %v503_v56 = vcombine.high %v495_v50, %v495_v50 }
 0x184   :  { %429 = vrot.lane.b32.xlu0 %v405_v38, %s3447_s30  ;;  %v407_v55 = vcombine.high %v405_v38, %v405_v38  ;;  %v504_v57 = vcombine.high %v502_v43, %v502_v43 }
 0x186   :  { %433 = vrot.lane.b32.xlu1 %v415_v40, %s3447_s30 }
 0x188   :  { %517 = vrot.lane.b32.xlu0 %v502_v43, %s3449_s4 }
 0x18a   :  { %437 = vrot.lane.b32.xlu1 %v422_v44, %s3447_s30 }
 0x18c   :  { %606 = vrot.lane.b32.xlu0 %v599_v46, %s3447_s30 }
 0x18e   :  { %505 = vrot.lane.b32.xlu1 %v478_v47, %s3449_s4 }
 0x192   :  { %509 = vrot.lane.b32.xlu1 %v485_v21, %s3449_s4 }
 0x196   :  { %427 = vrot.lane.b32.xlu1 %v406_v49, %s3447_s30 }
 0x19a   :  { %513 = vrot.lane.b32.xlu1 %v495_v50, %s3449_s4 }
 0x19e   :  { %435 = vrot.lane.b32.xlu1 %v423_v51, %s3447_s30 }
 0x1a2   :  { %439 = vrot.lane.b32.xlu1 %v424_v52, %s3447_s30 }
 0x1a6   :  { %507 = vrot.lane.b32.xlu1 %v486_v53, %s3449_s4 }
 0x1aa   :  { %511 = vrot.lane.b32.xlu1 %v487_v54, %s3449_s4 }
 0x1ae   :  { %431 = vrot.lane.b32.xlu1 %v407_v55, %s3447_s30 }
 0x1b2   :  { %515 = vrot.lane.b32.xlu1 %v503_v56, %s3449_s4 }
 0x1b6   :  { %519 = vrot.lane.b32.xlu1 %v504_v57, %s3449_s4 }
 0x1ba   :  { %608 = vrot.lane.b32.xlu1 %v601_v58, %s3447_s30 }
 0x1f4   :  { %v426_v1 = vpop.permute.xlu1 %425 }
 0x1f5   :  { %v449_v30 = vadd.f32 %v426_v1, %v3540_v9 }
 0x1f6   :  { %v430_v26 = vpop.permute.xlu0 %429 }
 0x1f7   :  { %v451_v33 = vadd.f32 %v430_v26, %v3549_v13 }
 0x1f8   :  { %v434_v2 = vpop.permute.xlu1 %433 }
 0x1f9   :  { %v453_v31 = vadd.f32 %v434_v2, %v3546_v11 }
 0x1fa   :  { %v518_v35 = vpop.permute.xlu0 %517 }
 0x1fc   :  { %v438_v3 = vpop.permute.xlu1 %437 }
 0x1fd   :  { %v455_v29 = vadd.f32 %v438_v3, %v3558_v18 }
 0x1fe   :  { %v607_v45 = vpop.permute.xlu0 %606 }
 0x1ff   :  { %v535_v38 = vadd.f32 %v518_v35, %v455_v29 }
 0x200   :  { %v506_v4 = vpop.permute.xlu1 %505 }
 0x201   :  { %v529_v36 = vadd.f32 %v506_v4, %v449_v30  ;;  %v578_v44 = vmul.f32 %v565_v12, %v535_v38  ;;  %v3305_v38 = vld [vmem:[#allocation3 + $0x10] sm:$0xff]  }
 0x202   :  { %3110 = vmatpush3.bf16.msra.mxu1 %v3305_v38  ;;  %v3654_v38 = vld [vmem:[#allocation3 + $0x40] sm:$0xff]  }
 0x203   :  { %v572_v18 = vmul.f32 %v561_v7, %v529_v36  ;;  %v620_v52 = vadd.f32 %v607_v45, %v578_v44  ;;  %3111 = vmatprep.subr.bf16.mxu1 %v3444_v0 }
 0x204   :  { %v510_v5 = vpop.permute.xlu1 %509 }
 0x205   :  { %v531_v39 = vadd.f32 %v510_v5, %v451_v33  ;;  %v614_v49 = vadd.f32 %v603_v23, %v572_v18 }
 0x207   :  { %v574_v11 = vmul.f32 %v565_v12, %v531_v39  ;;  %v622_v58 = vmax.f32 %v614_v49, 0.0  ;;  %v3306_v39 = vld [vmem:[#allocation3 + $0x18] ss:$0 sps:$4 sm:$0xff]  }
 0x208   :  { %v428_v6 = vpop.permute.xlu1 %427 }
 0x209   :  { %v450_v28 = vadd.f32 %v428_v6, %v3543_v10  ;;  %v616_v53 = vadd.f32 %v607_v45, %v574_v11 }
 0x20b   :  { %v624_v2 = vmax.f32 %v616_v53, 0.0 }
 0x20c   :  { %v514_v8 = vpop.permute.xlu1 %513 }
 0x20d   :  { %v533_v37 = vadd.f32 %v514_v8, %v453_v31 }
 0x20f   :  { %v576_v43 = vmul.f32 %v561_v7, %v533_v37  ;;  %v763_v37 = vld [vmem:[%s4055_s2 + $0x2] sm:$0x3] }
 0x210   :  { %v436_v20 = vpop.permute.xlu1 %435 }
 0x211   :  { %v454_v40 = vadd.f32 %v436_v20, %v3555_v17  ;;  %v618_v50 = vadd.f32 %v603_v23, %v576_v43 }
 0x213   :  { %v626_v59 = vmax.f32 %v618_v50, 0.0 }
 0x214   :  { %v440_v22 = vpop.permute.xlu1 %439 }
 0x215   :  { %v456_v13 = vadd.f32 %v440_v22, %v3569_v25  ;;  %v628_v25 = vmax.f32 %v620_v52, 0.0 }
 0x218   :  { %v508_v24 = vpop.permute.xlu1 %507 }
 0x219   :  { %v530_v32 = vadd.f32 %v508_v24, %v450_v28 }
 0x21b   :  { %v573_v41 = vmul.f32 %v563_v61, %v530_v32 }
 0x21c   :  { %v512_v27 = vpop.permute.xlu1 %511 }
 0x21d   :  { %v615_v46 = vadd.f32 %v605_v62, %v573_v41 }
 0x220   :  { %v432_v34 = vpop.permute.xlu1 %431 }
 0x221   :  { %v452_v10 = vadd.f32 %v432_v34, %v3552_v16  ;;  %v623_v16 = vmax.f32 %v615_v46, 0.0 }
 0x223   :  { %v532_v47 = vadd.f32 %v512_v27, %v452_v10  ;;  %v640_v3 = vcombine.low %v622_v58, %v623_v16  ;;  %v777_v10 = vrot.slane %v763_v37, %v3517_v19 }
 0x224   :  { %v516_v42 = vpop.permute.xlu1 %515 }
 0x225   :  { %v534_v9 = vadd.f32 %v516_v42, %v454_v40  ;;  %v575_v56 = vmul.f32 %v567_v63, %v532_v47  ;;  %v648_v12 = vrot.slane %v640_v3, %v3510_v15  ;;  %v767_v40 = vrot.slane %v763_v37, %v3508_v14 }
 0x226   :  { %v808_v42 = vsel %vm806_vm7, %v3306_v39, 0 }
 0x227   :  { %v577_v48 = vmul.f32 %v563_v61, %v534_v9  ;;  %3112 = vmatpush3.bf16.msra.mxu1 %v808_v42 }
 0x228   :  { %v520_v21 = vpop.permute.xlu1 %519  ;;  %3125 = vmatprep.subr.bf16.mxu1 %v3444_v0 }
 0x229   :  { %v619_v51 = vadd.f32 %v605_v62, %v577_v48  ;;  %v536_v17 = vadd.f32 %v520_v21, %v456_v13 }
 0x22b   :  { %v627_v54 = vmax.f32 %v619_v51, 0.0  ;;  %v579_v55 = vmul.f32 %v567_v63, %v536_v17 }
 0x22c   :  { %v609_v57 = vpop.permute.xlu1 %608 }
 0x22d   :  { %v617_v60 = vadd.f32 %v609_v57, %v575_v56  ;;  %v621_v1 = vadd.f32 %v609_v57, %v579_v55  ;;  %v657_v61 = vcombine.low %v626_v59, %v627_v54 }
 0x22f   :  { %v625_v4 = vmax.f32 %v617_v60, 0.0  ;;  %v629_v5 = vmax.f32 %v621_v1, 0.0  ;;  %v665_v63 = vrot.slane %v657_v61, %v3510_v15  ;;  %v881_v61 = vld [vmem:[%s4055_s2 + $0x4] sm:$0x3] }
 0x231   :  { %v641_v6 = vcombine.low %v624_v2, %v625_v4  ;;  %v658_v62 = vcombine.low %v628_v25, %v629_v5  ;;  %v3307_v4 = vld [vmem:[#allocation3 + $0x20] sm:$0xff]   ;;  %v3308_v5 = vld [vmem:[#allocation3 + $0x30] sm:$0xff]  }
 0x233   :  { %v655_v7 = vrot.slane %v641_v6, %v3510_v15  ;;  %v672_v8 = vrot.slane %v658_v62, %v3510_v15  ;;  %v885_v6 = vrot.slane %v881_v61, %v3508_v14 }
 0x235   :  { %v656_v20 = vcombine.low %v648_v12, %v655_v7  ;;  %v673_v22 = vcombine.low %v665_v63, %v672_v8  ;;  %v3309_v7 = vld [vmem:[#allocation3 + $0x28] sm:$0xff]   ;;  %v3310_v8 = vld [vmem:[#allocation3 + $0x38] sm:$0xff]   ;;  %v895_v12 = vrot.slane %v881_v61, %v3517_v19 }
 0x237   :  { %v676_v23 = vpack.c.bf16 %v673_v22, %v656_v20 }
 0x239   :  { %678 = vrot.lane.b32.xlu0 %v676_v23, %s3449_s4 }
 0x2ab   :  { %v679_v24 = vpop.permute.xlu0 %678 }
 0x2ac   :  { %3106 = vmatmul.mubr.msk.bf16.vlgmr.msra.gmra.mrb[4].mxu0 %vm685_vm6, %v679_v24 }
 0x2ad   :  { %3121 = vmatprep.mubr.msk.bf16.mxu0 %vm3445_vm1, %v3444_v0  ;;  %3118 = vmatpush3.bf16.msra.mxu0 %v3307_v4 }
 0x2ae   :  { %3119 = vmatprep.subr.bf16.mxu0 %v3444_v0 }
 0x2b1   :  { %3120 = vmatpush3.bf16.msra.mxu0 %v3309_v7 }
 0x2b2   :  { %3133 = vmatprep.subr.bf16.mxu0 %v3444_v0 }
 0x37f   :  { %v726_v26 = vpop.f32.mrb[4].mxu0 }
 0x380   :  { %v735_v27 = vrot.slane %v726_v26, 6  ;;  %v3107_v28 = vpop.f32.mrb[5].mxu0  ;;  %v749_v30 = vrot.slane %v726_v26, 2 }
 0x381   :  { %v729_v29 = vpop.f32.mrb[6].mxu0 }
 0x382   :  { %v736_v31 = vrot.slane %v729_v29, 6  ;;  %v750_v32 = vrot.slane %v729_v29, 2  ;;  %v3108_v33 = vpop.f32.mrb[7].mxu0  ;;  %v739_v34 = vsel %vm388_vm4, 0.0, %v735_v27 }
 0x383   :  { %741 = vrot.lane.b32.xlu1 %v739_v34, %s3450_s5 }
 0x384   :  { %v737_v35 = vsel %vm388_vm4, %v735_v27, %v736_v31  ;;  %v751_v36 = vsel %vm468_vm5, %v749_v30, %v750_v32  ;;  %v753_v41 = vsel %vm468_vm5, %v750_v32, 0.0 }
 0x385   :  { %743 = vrot.lane.b32.xlu0 %v737_v35, %s3450_s5 }
 0x387   :  { %755 = vrot.lane.b32.xlu1 %v751_v36, %s3451_s8 }
 0x389   :  { %757 = vrot.lane.b32.xlu0 %v753_v41, %s3451_s8  ;;  %v3454_v41 = vmov 0  }
 0x38b   :  { %769 = vrot.lane.b32.xlu1 %v767_v40, %s3450_s5  ;;  %v3659_v40 = vld [vmem:[#allocation3 + $0x48] sm:$0xff]  }
 0x38d   :  { %779 = vrot.lane.b32.xlu0 %v777_v10, %s3450_s5  ;;  %v916_v10 = vld [vmem:[%s4055_s2 + $0x6] sm:$0x3] }
 0x38e   :  { %v921_v42 = vrot.slane %v916_v10, %v3508_v14 }
 0x3f5   :  { %v742_v18 = vpop.permute.xlu1 %741 }
 0x3f6   :  { %v747_v44 = vadd.f32 %v742_v18, %v726_v26 }
 0x3f7   :  { %v744_v43 = vpop.permute.xlu0 %743 }
 0x3f8   :  { %v748_v11 = vadd.f32 %v744_v43, %v729_v29 }
 0x3f9   :  { %v756_v9 = vpop.permute.xlu1 %755 }
 0x3fa   :  { %v761_v13 = vadd.f32 %v756_v9, %v747_v44 }
 0x3fb   :  { %v758_v45 = vpop.permute.xlu0 %757 }
 0x3fc   :  { %v762_v46 = vadd.f32 %v758_v45, %v748_v11 }
 0x3fd   :  { %v770_v47 = vpop.permute.xlu1 %769 }
 0x3fe   :  { %v772_v48 = vmul.f32 %v770_v47, %v761_v13  ;;  %v773_v21 = vmul.f32 %v770_v47, %v762_v46 }
 0x3ff   :  { %v780_v49 = vpop.permute.xlu0 %779 }
 0x400   :  { %v782_v50 = vadd.f32 %v780_v49, %v772_v48  ;;  %v783_v51 = vadd.f32 %v780_v49, %v773_v21 }
 0x402   :  { %v784_v17 = vmax.f32 %v782_v50, 0.0  ;;  %v785_v52 = vmax.f32 %v783_v51, 0.0 }
 0x404   :  { %v789_v53 = vpack.c.bf16 %v785_v52, %v784_v17 }
 0x406   :  { %791 = vrot.lane.b32.xlu1 %v789_v53, %s3451_s8 }
 0x478   :  { %v792_v16 = vpop.permute.xlu1 %791 }
 0x479   :  { %3114 = vmatmul.mubr.msk.bf16.vlgmr.msra.gmra.mrb[4].mxu1 %vm802_vm8, %v792_v16 }
 0x47a   :  { %3129 = vmatprep.mubr.msk.bf16.mxu1 %vm3445_vm1, %v3444_v0  ;;  %3126 = vmatpush3.bf16.msra.mxu1 %v3308_v5 }
 0x47b   :  { %3127 = vmatprep.subr.bf16.mxu1 %v3444_v0 }
 0x47e   :  { %3128 = vmatpush3.bf16.msra.mxu1 %v3310_v8 }
 0x47f   :  { %3141 = vmatprep.subr.bf16.mxu1 %v3444_v0 }
 0x54c   :  { %v844_v54 = vpop.f32.mrb[4].mxu1 }
 0x54d   :  { %v853_v55 = vrot.slane %v844_v54, 6  ;;  %v3115_v56 = vpop.f32.mrb[5].mxu1  ;;  %v867_v58 = vrot.slane %v844_v54, 2 }
 0x54e   :  { %v847_v57 = vpop.f32.mrb[6].mxu1 }
 0x54f   :  { %v854_v59 = vrot.slane %v847_v57, 6  ;;  %v868_v60 = vrot.slane %v847_v57, 2  ;;  %v3116_v1 = vpop.f32.mrb[7].mxu1  ;;  %v857_v25 = vsel %vm388_vm4, 0.0, %v853_v55 }
 0x550   :  { %859 = vrot.lane.b32.xlu0 %v857_v25, %s3452_s9 }
 0x551   :  { %v855_v2 = vsel %vm388_vm4, %v853_v55, %v854_v59  ;;  %v869_v3 = vsel %vm468_vm5, %v867_v58, %v868_v60  ;;  %v871_v62 = vsel %vm468_vm5, %v868_v60, 0.0  ;;  %v3689_v55 = vrot.slane %v916_v10, %v3517_v19 }
 0x552   :  { %861 = vrot.lane.b32.xlu1 %v855_v2, %s3452_s9 }
 0x554   :  { %873 = vrot.lane.b32.xlu0 %v869_v3, %s3453_s12 }
 0x556   :  { %875 = vrot.lane.b32.xlu1 %v871_v62, %s3453_s12 }
 0x558   :  { %887 = vrot.lane.b32.xlu0 %v885_v6, %s3452_s9 }
 0x55a   :  { %897 = vrot.lane.b32.xlu1 %v895_v12, %s3452_s9 }
 0x5c2   :  { %v860_v63 = vpop.permute.xlu0 %859 }
 0x5c3   :  { %v865_v23 = vadd.f32 %v860_v63, %v844_v54 }
 0x5c4   :  { %v862_v20 = vpop.permute.xlu1 %861 }
 0x5c5   :  { %v866_v24 = vadd.f32 %v862_v20, %v847_v57 }
 0x5c6   :  { %v874_v22 = vpop.permute.xlu0 %873 }
 0x5c7   :  { %v879_v27 = vadd.f32 %v874_v22, %v865_v23 }
 0x5c8   :  { %v876_v26 = vpop.permute.xlu1 %875 }
 0x5c9   :  { %v880_v28 = vadd.f32 %v876_v26, %v866_v24 }
 0x5ca   :  { %v888_v29 = vpop.permute.xlu0 %887 }
 0x5cb   :  { %v890_v30 = vmul.f32 %v888_v29, %v879_v27  ;;  %v891_v31 = vmul.f32 %v888_v29, %v880_v28 }
 0x5cc   :  { %v898_v32 = vpop.permute.xlu1 %897 }
 0x5cd   :  { %v900_v33 = vadd.f32 %v898_v32, %v890_v30  ;;  %v901_v34 = vadd.f32 %v898_v32, %v891_v31 }
 0x5cf   :  { %v902_v35 = vmax.f32 %v900_v33, 0.0  ;;  %v903_v36 = vmax.f32 %v901_v34, 0.0 }
 0x5d1   :  { %v917_v37 = vpack.c.bf16 %v903_v36, %v902_v35 }
 0x5d3   :  { %923 = vrot.lane.b32.xlu0 %v917_v37, %s3453_s12 }
 0x645   :  { %v924_v39 = vpop.permute.xlu0 %923 }
 0x646   :  { %3122 = vmatmul.mubr.msk.bf16.vlgmr.msra.gmra.mrb[8].mxu0 %vm937_vm9, %v924_v39  ;;  %3130 = vmatmul.mubr.msk.bf16.vlgmr.msra.gmra.mrb[8].mxu1 %vm937_vm9, %v924_v39 }
 0x647   :  { %3134 = vmatpush3.bf16.msra.mxu0 %v3654_v38  ;;  %3137 = vmatprep.mubr.msk.bf16.mxu0 %vm3445_vm1, %v3444_v0 }
 0x648   :  { %3135 = vmatprep.subr.bf16.mxu0 %v3444_v0  ;;  %3142 = vmatpush3.bf16.msra.mxu1 %v3654_v38 }
 0x649   :  { %3143 = vmatprep.subr.bf16.mxu1 %v3444_v0  ;;  %3145 = vmatprep.mubr.msk.bf16.mxu1 %vm3445_vm1, %v3444_v0 }
 0x64b   :  { %3136 = vmatpush3.bf16.msra.mxu0 %v3659_v40 }
 0x64c   :  { %3144 = vmatpush3.bf16.msra.mxu1 %v3659_v40  ;;  %3149 = vmatprep.subr.bf16.mxu0 %v3444_v0 }
 0x64d   :  { %3157 = vmatprep.subr.bf16.mxu1 %v3444_v0 }
 0x64e   :  { %3138 = vmatmul.mubr.bf16.vlgmr.msra.gmra.mrb[12].mxu0 %v3454_v41 }
 0x64f   :  { %3150 = vmatpush3.bf16.msra.mxu0 %v3654_v38  ;;  %3153 = vmatprep.mubr.msk.bf16.mxu0 %vm3445_vm1, %v3444_v0 }
 0x650   :  { %3151 = vmatprep.subr.bf16.mxu0 %v3444_v0 }
 0x653   :  { %3152 = vmatpush3.bf16.msra.mxu0 %v3659_v40 }
 0x654   :  { %3165 = vmatprep.subr.bf16.mxu0 %v3444_v0 }
 0x719   :  { %v975_v18 = vpop.f32.mrb[8].mxu0  ;;  %v1072_v43 = vpop.f32.mrb[8].mxu1 }
 0x71a   :  { %v976_v9 = vadd.f32 %v975_v18, %v921_v42  ;;  %v1081_v44 = vcombine.high %v1072_v43, %v1072_v43  ;;  %v3123_v11 = vpop.f32.mrb[9].mxu0  ;;  %v3131_v45 = vpop.f32.mrb[9].mxu1  ;;  %v1088_v21 = vrot.slane %v1072_v43, %v3510_v15 }
 0x71b   :  { %v978_v13 = vpop.f32.mrb[10].mxu0  ;;  %v1075_v46 = vpop.f32.mrb[10].mxu1 }
 0x71c   :  { %v984_v47 = vcombine.high %v976_v9, %v976_v9  ;;  %v991_v48 = vrot.slane %v976_v9, %v3510_v15  ;;  %v1095_v49 = vrot.slane %v1081_v44, %v3510_v15  ;;  %v3124_v50 = vpop.f32.mrb[11].mxu0  ;;  %v3132_v51 = vpop.f32.mrb[11].mxu1  ;;  %v979_v17 = vadd.f32 %v978_v13, %v921_v42 }
 0x71d   :  { %v1098_v52 = vcombine.high %v1075_v46, %v1075_v46  ;;  %v1105_v53 = vrot.slane %v1075_v46, %v3510_v15  ;;  %v1096_v1 = vcombine.high %v1088_v21, %v1088_v21 }
 0x71e   :  { %v998_v16 = vrot.slane %v984_v47, %v3510_v15  ;;  %v999_v54 = vcombine.high %v991_v48, %v991_v48  ;;  %v1097_v56 = vcombine.high %v1095_v49, %v1095_v49  ;;  %v1001_v57 = vcombine.high %v979_v17, %v979_v17 }
 0x71f   :  { %v1008_v58 = vrot.slane %v979_v17, %v3510_v15  ;;  %v1112_v59 = vrot.slane %v1098_v52, %v3510_v15  ;;  %v1113_v60 = vcombine.high %v1105_v53, %v1105_v53 }
 0x720   :  { %v1000_v25 = vcombine.high %v998_v16, %v998_v16  ;;  %v1015_v2 = vrot.slane %v1001_v57, %v3510_v15 }
 0x721   :  { %v1016_v3 = vcombine.high %v1008_v58, %v1008_v58  ;;  %v1114_v61 = vcombine.high %v1112_v59, %v1112_v59  ;;  %v1173_v4 = vpop.f32.mrb[12].mxu0  ;;  %v1233_v5 = vadd.f32 %v1112_v59, %v999_v54  ;;  %v3695_v7 = vadd.f32 %v1113_v60, %v998_v16 }
 0x722   :  { %v1190_v6 = vadd.f32 %v3689_v55, %v1173_v4  ;;  %v3139_v62 = vpop.f32.mrb[13].mxu0  ;;  %v3697_v8 = vadd.f32 %v1105_v53, %v1000_v25  ;;  %v3699_v12 = vadd.f32 %v1097_v56, %v1008_v58  ;;  %v3703_v23 = vadd.f32 %v1096_v1, %v1015_v2 }
 0x723   :  { %v1123_v63 = vadd.f32 %v1114_v61, %v991_v48  ;;  %v1176_v20 = vpop.f32.mrb[14].mxu0  ;;  %v3701_v22 = vadd.f32 %v1095_v49, %v1016_v3  ;;  %v1017_v24 = vcombine.high %v1015_v2, %v1015_v2 }
 0x724   :  { %v3140_v26 = vpop.f32.mrb[15].mxu0  ;;  %v1198_v27 = vrot.slane %v1190_v6, %v3510_v15 }
 0x725   :  { %v3706_v28 = vadd.f32 %v1088_v21, %v1017_v24  ;;  %v1179_v29 = vadd.f32 %v1173_v4, %v1123_v63 }
 0x726   :  { %1199 = vrot.lane.b32.xlu1 %v1198_v27, %s3442_s22 }
 0x727   :  { %v2975_v30 = vmul.f32 -1.442695, %v1179_v29 }
 0x729   :  { %3321 = vpow2.f32 %v2975_v30 }
 0x733   :  { %v3322_v31 = vpop.eup %3321 }
 0x734   :  { %v1183_v32 = vadd.f32 1.0, %v3322_v31 }
 0x736   :  { %3323 = vrcp.f32 %v1183_v32 }
 0x740   :  { %v3324_v33 = vpop.eup %3323 }
 0x741   :  { %v1209_v10 = vsub.f32 1.0, %v3324_v33  ;;  %v1215_v18 = vmul.f32 0.0, %v3324_v33 }
 0x798   :  { %v1200_v34 = vpop.permute.xlu1 %1199 }
 0x799   :  { %v1202_v35 = vmul.f32 %v3324_v33, %v1200_v34 }
 0x79b   :  { %1204 = vrot.lane.b32.xlu0 %v1202_v35, %s3442_s22 }
 0x80d   :  { %v1205_v36 = vpop.permute.xlu0 %1204 }
 0x80e   :  { %v1207_v37 = vadd.f32 %v1205_v36, %v1123_v63 }
 0x810   :  { %3325 = vtanh.f32 %v1207_v37 }
 0x81a   :  { %v3326_v39 = vpop.eup %3325 }
 0x81b   :  { %1211 = vrot.lane.b32.xlu1 %v3326_v39, %s3453_s12 }
 0x88d   :  { %v1212_v42 = vpop.permute.xlu1 %1211 }
 0x88e   :  { %v1214_v43 = vmul.f32 %v1212_v42, %v1209_v10 }
 0x890   :  { %v3711_v9 = vadd.f32 %v1215_v18, %v1214_v43 }
 0x892   :  { %v1234_v44 = vpack.c.bf16 %v3711_v9, %v3711_v9 }
 0x894   :  { %1236 = vrot.lane.b32.xlu0 %v1234_v44, %s3453_s12 }
 0x906   :  { %v1237_v11 = vpop.permute.xlu0 %1236 }
 0x907   :  { %3146 = vmatmul.mubr.msk.bf16.vlgmr.msra.gmra.mrb[12].mxu1 %vm937_vm9, %v1237_v11 }
 0x908   :  { %3158 = vmatpush3.bf16.msra.mxu1 %v3654_v38  ;;  %3161 = vmatprep.mubr.msk.bf16.mxu1 %vm3445_vm1, %v3444_v0 }
 0x909   :  { %3159 = vmatprep.subr.bf16.mxu1 %v3444_v0 }
 0x90c   :  { %3160 = vmatpush3.bf16.msra.mxu1 %v3659_v40 }
 0x90d   :  { %3173 = vmatprep.subr.bf16.mxu1 %v3444_v0 }
 0x9da   :  { %v1275_v45 = vpop.f32.mrb[12].mxu1 }
 0x9db   :  { %v1288_v13 = vadd.f32 %v1275_v45, %v3689_v55  ;;  %v3147_v46 = vpop.f32.mrb[13].mxu1  ;;  %v1281_v49 = vadd.f32 %v1275_v45, %v1233_v5 }
 0x9dc   :  { %v1278_v47 = vpop.f32.mrb[14].mxu1 }
 0x9dd   :  { %v3148_v48 = vpop.f32.mrb[15].mxu1  ;;  %v1296_v21 = vrot.slane %v1288_v13, %v3510_v15  ;;  %v2977_v50 = vmul.f32 -1.442695, %v1281_v49 }
 0x9df   :  { %1297 = vrot.lane.b32.xlu1 %v1296_v21, %s3442_s22  ;;  %3327 = vpow2.f32 %v2977_v50 }
 0x9e9   :  { %v3328_v51 = vpop.eup %3327 }
 0x9ea   :  { %v1285_v17 = vadd.f32 1.0, %v3328_v51 }
 0x9ec   :  { %3329 = vrcp.f32 %v1285_v17 }
 0x9f6   :  { %v3330_v52 = vpop.eup %3329 }
 0x9f7   :  { %v1307_v58 = vsub.f32 1.0, %v3330_v52  ;;  %v1313_v60 = vmul.f32 %v3330_v52, %v3711_v9 }
 0xa51   :  { %v1298_v53 = vpop.permute.xlu1 %1297 }
 0xa52   :  { %v1300_v16 = vmul.f32 %v3330_v52, %v1298_v53 }
 0xa54   :  { %1302 = vrot.lane.b32.xlu0 %v1300_v16, %s3442_s22 }
 0xac6   :  { %v1303_v54 = vpop.permute.xlu0 %1302 }
 0xac7   :  { %v1305_v56 = vadd.f32 %v1303_v54, %v1233_v5 }
 0xac9   :  { %3331 = vtanh.f32 %v1305_v56 }
 0xad3   :  { %v3332_v57 = vpop.eup %3331 }
 0xad4   :  { %1309 = vrot.lane.b32.xlu1 %v3332_v57, %s3453_s12 }
 0xb46   :  { %v1310_v59 = vpop.permute.xlu1 %1309 }
 0xb47   :  { %v1312_v1 = vmul.f32 %v1310_v59, %v1307_v58 }
 0xb49   :  { %v3729_v25 = vadd.f32 %v1313_v60, %v1312_v1 }
 0xb4b   :  { %v1331_v2 = vpack.c.bf16 %v3729_v25, %v3729_v25 }
 0xb4d   :  { %1333 = vrot.lane.b32.xlu0 %v1331_v2, %s3453_s12 }
 0xbbf   :  { %v1334_v3 = vpop.permute.xlu0 %1333 }
 0xbc0   :  { %3154 = vmatmul.mubr.msk.bf16.vlgmr.msra.gmra.mrb[16].mxu0 %vm937_vm9, %v1334_v3 }
 0xbc1   :  { %3166 = vmatpush3.bf16.msra.mxu0 %v3654_v38  ;;  %3169 = vmatprep.mubr.msk.bf16.mxu0 %vm3445_vm1, %v3444_v0 }
 0xbc2   :  { %3167 = vmatprep.subr.bf16.mxu0 %v3444_v0 }
 0xbc5   :  { %3168 = vmatpush3.bf16.msra.mxu0 %v3659_v40 }
 0xbc6   :  { %3181 = vmatprep.subr.bf16.mxu0 %v3444_v0 }
 0xc93   :  { %v1372_v61 = vpop.f32.mrb[16].mxu0 }
 0xc94   :  { %v1385_v4 = vadd.f32 %v1372_v61, %v3689_v55  ;;  %v3155_v5 = vpop.f32.mrb[17].mxu0  ;;  %v1378_v20 = vadd.f32 %v1372_v61, %v3695_v7 }
 0xc95   :  { %v1375_v6 = vpop.f32.mrb[18].mxu0 }
 0xc96   :  { %v3156_v62 = vpop.f32.mrb[19].mxu0  ;;  %v1393_v63 = vrot.slane %v1385_v4, %v3510_v15  ;;  %v2979_v24 = vmul.f32 -1.442695, %v1378_v20 }
 0xc98   :  { %1394 = vrot.lane.b32.xlu1 %v1393_v63, %s3442_s22  ;;  %3333 = vpow2.f32 %v2979_v24 }
 0xca2   :  { %v3334_v26 = vpop.eup %3333 }
 0xca3   :  { %v1382_v27 = vadd.f32 1.0, %v3334_v26 }
 0xca5   :  { %3335 = vrcp.f32 %v1382_v27 }
 0xcaf   :  { %v3336_v29 = vpop.eup %3335 }
 0xcb0   :  { %v1404_v35 = vsub.f32 1.0, %v3336_v29  ;;  %v1410_v37 = vmul.f32 %v3336_v29, %v3729_v25 }
 0xd0a   :  { %v1395_v30 = vpop.permute.xlu1 %1394 }
 0xd0b   :  { %v1397_v31 = vmul.f32 %v3336_v29, %v1395_v30 }
 0xd0d   :  { %1399 = vrot.lane.b32.xlu0 %v1397_v31, %s3442_s22 }
 0xd7f   :  { %v1400_v32 = vpop.permute.xlu0 %1399 }
 0xd80   :  { %v1402_v33 = vadd.f32 %v1400_v32, %v3695_v7 }
 0xd82   :  { %3337 = vtanh.f32 %v1402_v33 }
 0xd8c   :  { %v3338_v34 = vpop.eup %3337 }
 0xd8d   :  { %1406 = vrot.lane.b32.xlu1 %v3338_v34, %s3453_s12 }
 0xdff   :  { %v1407_v36 = vpop.permute.xlu1 %1406 }
 0xe00   :  { %v1409_v39 = vmul.f32 %v1407_v36, %v1404_v35 }
 0xe02   :  { %v3749_v10 = vadd.f32 %v1410_v37, %v1409_v39 }
 0xe04   :  { %v1428_v42 = vpack.c.bf16 %v3749_v10, %v3749_v10 }
 0xe06   :  { %1430 = vrot.lane.b32.xlu0 %v1428_v42, %s3453_s12 }
 0xe78   :  { %v1431_v18 = vpop.permute.xlu0 %1430 }
 0xe79   :  { %3162 = vmatmul.mubr.msk.bf16.vlgmr.msra.gmra.mrb[16].mxu1 %vm937_vm9, %v1431_v18 }
 0xe7a   :  { %3174 = vmatpush3.bf16.msra.mxu1 %v3654_v38  ;;  %3177 = vmatprep.mubr.msk.bf16.mxu1 %vm3445_vm1, %v3444_v0 }
 0xe7b   :  { %3175 = vmatprep.subr.bf16.mxu1 %v3444_v0 }
 0xe7e   :  { %3176 = vmatpush3.bf16.msra.mxu1 %v3659_v40 }
 0xe7f   :  { %3189 = vmatprep.subr.bf16.mxu1 %v3444_v0 }
 0xf4c   :  { %v1469_v7 = vpop.f32.mrb[16].mxu1 }
 0xf4d   :  { %v1482_v43 = vadd.f32 %v1469_v7, %v3689_v55  ;;  %v3163_v44 = vpop.f32.mrb[17].mxu1  ;;  %v1475_v46 = vadd.f32 %v1469_v7, %v3697_v8 }
 0xf4e   :  { %v1472_v11 = vpop.f32.mrb[18].mxu1 }
 0xf4f   :  { %v3164_v45 = vpop.f32.mrb[19].mxu1  ;;  %v1490_v13 = vrot.slane %v1482_v43, %v3510_v15  ;;  %v2981_v47 = vmul.f32 -1.442695, %v1475_v46 }
 0xf51   :  { %1491 = vrot.lane.b32.xlu1 %v1490_v13, %s3442_s22  ;;  %3339 = vpow2.f32 %v2981_v47 }
 0xf5b   :  { %v3340_v48 = vpop.eup %3339 }
 0xf5c   :  { %v1479_v21 = vadd.f32 1.0, %v3340_v48 }
 0xf5e   :  { %3341 = vrcp.f32 %v1479_v21 }
 0xf68   :  { %v3342_v49 = vpop.eup %3341 }
 0xf69   :  { %v1501_v16 = vsub.f32 1.0, %v3342_v49  ;;  %v1507_v56 = vmul.f32 %v3342_v49, %v3749_v10 }
 0xfc3   :  { %v1492_v50 = vpop.permute.xlu1 %1491 }
 0xfc4   :  { %v1494_v51 = vmul.f32 %v3342_v49, %v1492_v50 }
 0xfc6   :  { %1496 = vrot.lane.b32.xlu0 %v1494_v51, %s3442_s22 }
0x1038   :  { %v1497_v17 = vpop.permute.xlu0 %1496 }
0x1039   :  { %v1499_v52 = vadd.f32 %v1497_v17, %v3697_v8 }
0x103b   :  { %3343 = vtanh.f32 %v1499_v52 }
0x1045   :  { %v3344_v53 = vpop.eup %3343 }
0x1046   :  { %1503 = vrot.lane.b32.xlu1 %v3344_v53, %s3453_s12 }
0x10b8   :  { %v1504_v54 = vpop.permute.xlu1 %1503 }
0x10b9   :  { %v1506_v57 = vmul.f32 %v1504_v54, %v1501_v16 }
0x10bb   :  { %v3769_v58 = vadd.f32 %v1507_v56, %v1506_v57 }
0x10bd   :  { %v1525_v59 = vpack.c.bf16 %v3769_v58, %v3769_v58 }
0x10bf   :  { %1527 = vrot.lane.b32.xlu0 %v1525_v59, %s3453_s12 }
0x1131   :  { %v1528_v60 = vpop.permute.xlu0 %1527 }
0x1132   :  { %3170 = vmatmul.mubr.msk.bf16.vlgmr.msra.gmra.mrb[20].mxu0 %vm937_vm9, %v1528_v60 }
0x1133   :  { %3182 = vmatpush3.bf16.msra.mxu0 %v3654_v38  ;;  %3185 = vmatprep.mubr.msk.bf16.mxu0 %vm3445_vm1, %v3444_v0 }
0x1134   :  { %3183 = vmatprep.subr.bf16.mxu0 %v3444_v0 }
0x1137   :  { %3184 = vmatpush3.bf16.msra.mxu0 %v3659_v40 }
0x1138   :  { %3197 = vmatprep.subr.bf16.mxu0 %v3444_v0 }
0x1205   :  { %v1566_v8 = vpop.f32.mrb[20].mxu0 }
0x1206   :  { %v1579_v1 = vadd.f32 %v1566_v8, %v3689_v55  ;;  %v3171_v2 = vpop.f32.mrb[21].mxu0  ;;  %v1572_v5 = vadd.f32 %v1566_v8, %v3699_v12 }
0x1207   :  { %v1569_v3 = vpop.f32.mrb[22].mxu0 }
0x1208   :  { %v3172_v61 = vpop.f32.mrb[23].mxu0  ;;  %v1587_v4 = vrot.slane %v1579_v1, %v3510_v15  ;;  %v2983_v6 = vmul.f32 -1.442695, %v1572_v5 }
0x120a   :  { %1588 = vrot.lane.b32.xlu1 %v1587_v4, %s3442_s22  ;;  %3345 = vpow2.f32 %v2983_v6 }
0x1214   :  { %v3346_v62 = vpop.eup %3345 }
0x1215   :  { %v1576_v63 = vadd.f32 1.0, %v3346_v62 }
0x1217   :  { %3347 = vrcp.f32 %v1576_v63 }
0x1221   :  { %v3348_v20 = vpop.eup %3347 }
0x1222   :  { %v1598_v31 = vsub.f32 1.0, %v3348_v20  ;;  %v1604_v33 = vmul.f32 %v3348_v20, %v3769_v58 }
0x127c   :  { %v1589_v24 = vpop.permute.xlu1 %1588 }
0x127d   :  { %v1591_v26 = vmul.f32 %v3348_v20, %v1589_v24 }
0x127f   :  { %1593 = vrot.lane.b32.xlu0 %v1591_v26, %s3442_s22 }
0x12f1   :  { %v1594_v27 = vpop.permute.xlu0 %1593 }
0x12f2   :  { %v1596_v29 = vadd.f32 %v1594_v27, %v3699_v12 }
0x12f4   :  { %3349 = vtanh.f32 %v1596_v29 }
0x12fe   :  { %v3350_v30 = vpop.eup %3349 }
0x12ff   :  { %1600 = vrot.lane.b32.xlu1 %v3350_v30, %s3453_s12 }
0x1371   :  { %v1601_v32 = vpop.permute.xlu1 %1600 }
0x1372   :  { %v1603_v34 = vmul.f32 %v1601_v32, %v1598_v31 }
0x1374   :  { %v3789_v35 = vadd.f32 %v1604_v33, %v1603_v34 }
0x1376   :  { %v1620_v36 = vpack.c.bf16 %v3789_v35, %v3789_v35 }
0x1378   :  { %1622 = vrot.lane.b32.xlu0 %v1620_v36, %s3453_s12 }
0x13ea   :  { %v1623_v37 = vpop.permute.xlu0 %1622 }
0x13eb   :  { %3178 = vmatmul.mubr.msk.bf16.vlgmr.msra.gmra.mrb[20].mxu1 %vm937_vm9, %v1623_v37 }
0x13ec   :  { %3190 = vmatpush3.bf16.msra.mxu1 %v3654_v38  ;;  %3193 = vmatprep.mubr.msk.bf16.mxu1 %vm3445_vm1, %v3444_v0 }
0x13ed   :  { %3191 = vmatprep.subr.bf16.mxu1 %v3444_v0 }
0x13f0   :  { %3192 = vmatpush3.bf16.msra.mxu1 %v3659_v40 }
0x13f1   :  { %3205 = vmatprep.subr.bf16.mxu1 %v3444_v0 }
0x14be   :  { %v1661_v12 = vpop.f32.mrb[20].mxu1 }
0x14bf   :  { %v1674_v39 = vadd.f32 %v1661_v12, %v3689_v55  ;;  %v3179_v42 = vpop.f32.mrb[21].mxu1  ;;  %v1667_v38 = vadd.f32 %v1661_v12, %v3701_v22 }
0x14c0   :  { %v1664_v18 = vpop.f32.mrb[22].mxu1 }
0x14c1   :  { %v3180_v7 = vpop.f32.mrb[23].mxu1  ;;  %v1682_v43 = vrot.slane %v1674_v39, %v3510_v15  ;;  %v2985_v44 = vmul.f32 -1.442695, %v1667_v38 }
0x14c3   :  { %1683 = vrot.lane.b32.xlu1 %v1682_v43, %s3442_s22  ;;  %3351 = vpow2.f32 %v2985_v44  ;;  %v1419_v44 = vrot.slane %v3749_v10, %v3510_v15 }
0x14cd   :  { %v3352_v11 = vpop.eup %3351 }
0x14ce   :  { %v1671_v45 = vadd.f32 1.0, %v3352_v11  ;;  %v1613_v11 = vrot.slane %v3789_v35, %v3510_v15 }
0x14d0   :  { %3353 = vrcp.f32 %v1671_v45 }
0x14da   :  { %v3354_v40 = vpop.eup %3353 }
0x14db   :  { %v1693_v49 = vsub.f32 1.0, %v3354_v40  ;;  %v1699_v51 = vmul.f32 %v3354_v40, %v3789_v35 }
0x1535   :  { %v1684_v13 = vpop.permute.xlu1 %1683 }
0x1536   :  { %v1686_v46 = vmul.f32 %v3354_v40, %v1684_v13 }
0x1538   :  { %1688 = vrot.lane.b32.xlu0 %v1686_v46, %s3442_s22  ;;  %v1322_v46 = vrot.slane %v3729_v25, %v3510_v15 }
0x15aa   :  { %v1689_v47 = vpop.permute.xlu0 %1688 }
0x15ab   :  { %v1691_v48 = vadd.f32 %v1689_v47, %v3701_v22 }
0x15ad   :  { %3355 = vtanh.f32 %v1691_v48  ;;  %v3313_v48 = vld [vmem:[#allocation3 + $0x50] sm:$0xff]  }
0x15b7   :  { %v3356_v21 = vpop.eup %3355 }
0x15b8   :  { %1695 = vrot.lane.b32.xlu1 %v3356_v21, %s3453_s12  ;;  %v3314_v21 = vld [vmem:[#allocation3 + $0x60] sm:$0xff]  }
0x162a   :  { %v1696_v50 = vpop.permute.xlu1 %1695 }
0x162b   :  { %v1698_v17 = vmul.f32 %v1696_v50, %v1693_v49  ;;  %v3315_v49 = vld [vmem:[#allocation3 + $0x58] sm:$0xff]   ;;  %v3316_v50 = vld [vmem:[#allocation3 + $0x68] sm:$0xff]  }
0x162d   :  { %v3809_v52 = vadd.f32 %v1699_v51, %v1698_v17 }
0x162f   :  { %v1715_v53 = vpack.c.bf16 %v3809_v52, %v3809_v52  ;;  %v1708_v47 = vrot.slane %v3809_v52, %v3510_v15 }
0x1631   :  { %1717 = vrot.lane.b32.xlu0 %v1715_v53, %s3453_s12 }
0x16a3   :  { %v1718_v16 = vpop.permute.xlu0 %1717 }
0x16a4   :  { %3186 = vmatmul.mubr.msk.bf16.vlgmr.msra.gmra.mrb[24].mxu0 %vm937_vm9, %v1718_v16 }
0x16a5   :  { %3201 = vmatprep.mubr.msk.bf16.mxu0 %vm3445_vm1, %v3444_v0  ;;  %3198 = vmatpush3.bf16.msra.mxu0 %v3313_v48 }
0x16a6   :  { %3199 = vmatprep.subr.bf16.mxu0 %v3444_v0 }
0x16a9   :  { %3200 = vmatpush3.bf16.msra.mxu0 %v3315_v49 }
0x16aa   :  { %3213 = vmatprep.subr.bf16.mxu0 %v3444_v0 }
0x1777   :  { %v1756_v22 = vpop.f32.mrb[24].mxu0 }
0x1778   :  { %v1769_v54 = vadd.f32 %v1756_v22, %v3689_v55  ;;  %v3187_v56 = vpop.f32.mrb[25].mxu0  ;;  %v1762_v8 = vadd.f32 %v1756_v22, %v3703_v23 }
0x1779   :  { %v1759_v57 = vpop.f32.mrb[26].mxu0 }
0x177a   :  { %v3188_v59 = vpop.f32.mrb[27].mxu0  ;;  %v1777_v60 = vrot.slane %v1769_v54, %v3510_v15  ;;  %v2987_v1 = vmul.f32 -1.442695, %v1762_v8 }
0x177c   :  { %1778 = vrot.lane.b32.xlu1 %v1777_v60, %s3442_s22  ;;  %3357 = vpow2.f32 %v2987_v1 }
0x1786   :  { %v3358_v2 = vpop.eup %3357 }
0x1787   :  { %v1766_v3 = vadd.f32 1.0, %v3358_v2 }
0x1789   :  { %3359 = vrcp.f32 %v1766_v3 }
0x1793   :  { %v3360_v61 = vpop.eup %3359 }
0x1794   :  { %v1788_v20 = vsub.f32 1.0, %v3360_v61  ;;  %v1794_v26 = vmul.f32 %v3360_v61, %v3809_v52 }
0x17ee   :  { %v1779_v4 = vpop.permute.xlu1 %1778 }
0x17ef   :  { %v1781_v5 = vmul.f32 %v3360_v61, %v1779_v4 }
0x17f1   :  { %1783 = vrot.lane.b32.xlu0 %v1781_v5, %s3442_s22 }
0x1863   :  { %v1784_v6 = vpop.permute.xlu0 %1783 }
0x1864   :  { %v1786_v62 = vadd.f32 %v1784_v6, %v3703_v23 }
0x1866   :  { %3361 = vtanh.f32 %v1786_v62 }
0x1870   :  { %v3362_v63 = vpop.eup %3361 }
0x1871   :  { %1790 = vrot.lane.b32.xlu1 %v3362_v63, %s3453_s12 }
0x18e3   :  { %v1791_v24 = vpop.permute.xlu1 %1790 }
0x18e4   :  { %v1793_v27 = vmul.f32 %v1791_v24, %v1788_v20 }
0x18e6   :  { %v3825_v29 = vadd.f32 %v1794_v26, %v1793_v27 }
0x18e8   :  { %v1810_v30 = vpack.c.bf16 %v3825_v29, %v3825_v29  ;;  %v1803_v45 = vrot.slane %v3825_v29, %v3510_v15 }
0x18ea   :  { %1812 = vrot.lane.b32.xlu0 %v1810_v30, %s3453_s12 }
0x195c   :  { %v1813_v31 = vpop.permute.xlu0 %1812 }
0x195d   :  { %3194 = vmatmul.mubr.msk.bf16.vlgmr.msra.gmra.mrb[24].mxu1 %vm937_vm9, %v1813_v31 }
0x195e   :  { %3209 = vmatprep.mubr.msk.bf16.mxu1 %vm3445_vm1, %v3444_v0  ;;  %3206 = vmatpush3.bf16.msra.mxu1 %v3314_v21 }
0x195f   :  { %3207 = vmatprep.subr.bf16.mxu1 %v3444_v0 }
0x1962   :  { %3208 = vmatpush3.bf16.msra.mxu1 %v3316_v50 }
0x1963   :  { %3221 = vmatprep.subr.bf16.mxu1 %v3444_v0 }
0x1a30   :  { %v1851_v23 = vpop.f32.mrb[24].mxu1 }
0x1a31   :  { %v1864_v32 = vadd.f32 %v1851_v23, %v3689_v55  ;;  %v3195_v33 = vpop.f32.mrb[25].mxu1  ;;  %v1857_v12 = vadd.f32 %v1851_v23, %v3706_v28  ;;  %v1224_v55 = vrot.slane %v3711_v9, %v3510_v15  ;;  %v3888_v23 = vld [vmem:[#allocation3 + $0x70] sm:$0xff]  }
0x1a32   :  { %v1854_v34 = vpop.f32.mrb[26].mxu1  ;;  %v3893_v33 = vld [vmem:[#allocation3 + $0x78] sm:$0xff]  }
0x1a33   :  { %v3196_v36 = vpop.f32.mrb[27].mxu1  ;;  %v1872_v37 = vrot.slane %v1864_v32, %v3510_v15  ;;  %v2989_v39 = vmul.f32 -1.442695, %v1857_v12  ;;  %v1924_v34 = vld [vmem:[%s4055_s2 + $0x8] sm:$0x3] }
0x1a34   :  { %v1973_v36 = vrot.slane %v1924_v34, %v3508_v14 }
0x1a35   :  { %1873 = vrot.lane.b32.xlu1 %v1872_v37, %s3442_s22  ;;  %3363 = vpow2.f32 %v2989_v39 }
0x1a3f   :  { %v3364_v42 = vpop.eup %3363 }
0x1a40   :  { %v1861_v18 = vadd.f32 1.0, %v3364_v42 }
0x1a42   :  { %3365 = vrcp.f32 %v1861_v18 }
0x1a4c   :  { %v3366_v7 = vpop.eup %3365 }
0x1a4d   :  { %v1883_v51 = vsub.f32 1.0, %v3366_v7  ;;  %v1889_v17 = vmul.f32 %v3366_v7, %v3825_v29 }
0x1aa7   :  { %v1874_v43 = vpop.permute.xlu1 %1873 }
0x1aa8   :  { %v1876_v38 = vmul.f32 %v3366_v7, %v1874_v43 }
0x1aaa   :  { %1878 = vrot.lane.b32.xlu0 %v1876_v38, %s3442_s22 }
0x1aae   :  { %1225 = vrot.lane.b32.xlu0 %v1224_v55, %s3453_s12 }
0x1ab2   :  { %1420 = vrot.lane.b32.xlu0 %v1419_v44, %s3453_s12 }
0x1ab6   :  { %1614 = vrot.lane.b32.xlu0 %v1613_v11, %s3453_s12 }
0x1aba   :  { %1804 = vrot.lane.b32.xlu0 %v1803_v45, %s3453_s12 }
0x1b1c   :  { %v1879_v40 = vpop.permute.xlu0 %1878 }
0x1b1d   :  { %v1881_v9 = vadd.f32 %v1879_v40, %v3706_v28  ;;  %v1516_v28 = vrot.slane %v3769_v58, %v3510_v15 }
0x1b1f   :  { %3367 = vtanh.f32 %v1881_v9 }
0x1b20   :  { %v1226_v13 = vpop.permute.xlu0 %1225 }
0x1b21   :  { %1229 = vst.msk [vmem:[#allocation2] sm:$0x3] %vm1228_vm10, %v1226_v13 }
0x1b22   :  { %1232 = vst.msk [vmem:[#allocation2 + $0xe] sm:$0x3] %vm1231_vm11, %v1226_v13 }
0x1b24   :  { %v1421_v10 = vpop.permute.xlu0 %1420 }
0x1b25   :  { %1424 = vst.msk [vmem:[#allocation2 + $0x4] sm:$0x3] %vm1228_vm10, %v1421_v10 }
0x1b26   :  { %1426 = vst.msk [vmem:[#allocation2 + $0xa] sm:$0x3] %vm1231_vm11, %v1421_v10 }
0x1b28   :  { %v1615_v25 = vpop.permute.xlu0 %1614 }
0x1b29   :  { %v3368_v35 = vpop.eup %3367 }
0x1b2a   :  { %1885 = vrot.lane.b32.xlu1 %v3368_v35, %s3453_s12 }
0x1b2c   :  { %v1805_v22 = vpop.permute.xlu0 %1804 }
0x1b2e   :  { %1323 = vrot.lane.b32.xlu1 %v1322_v46, %s3453_s12  ;;  %v3923_v46 = vrot.slane %v1924_v34, %v3517_v19 }
0x1b32   :  { %1517 = vrot.lane.b32.xlu1 %v1516_v28, %s3453_s12 }
0x1b36   :  { %1709 = vrot.lane.b32.xlu1 %v1708_v47, %s3453_s12 }
0x1b9c   :  { %v1886_v58 = vpop.permute.xlu1 %1885 }
0x1b9d   :  { %v1888_v52 = vmul.f32 %v1886_v58, %v1883_v51 }
0x1b9f   :  { %v1890_v53 = vadd.f32 %v1889_v17, %v1888_v52 }
0x1ba0   :  { %v1324_v16 = vpop.permute.xlu1 %1323 }
0x1ba1   :  { %1327 = vst.msk [vmem:[#allocation2 + $0x2] sm:$0x3] %vm1228_vm10, %v1324_v16  ;;  %v1898_v54 = vrot.slane %v1890_v53, %v3510_v15 }
0x1ba2   :  { %1329 = vst.msk [vmem:[#allocation2 + $0xc] sm:$0x3] %vm1231_vm11, %v1324_v16  ;;  %1808 = vst.msk [vmem:[#allocation2 + $0x2] sm:$0x3] %vm1231_vm11, %v1805_v22 }
0x1ba3   :  { %1807 = vst.msk [vmem:[#allocation2 + $0xc] sm:$0x3] %vm1228_vm10, %v1805_v22  ;;  %1899 = vrot.lane.b32.xlu1 %v1898_v54, %s3453_s12 }
0x1ba4   :  { %v1518_v56 = vpop.permute.xlu1 %1517 }
0x1ba5   :  { %1521 = vst.msk [vmem:[#allocation2 + $0x6] sm:$0x3] %vm1228_vm10, %v1518_v56 }
0x1ba6   :  { %1523 = vst.msk [vmem:[#allocation2 + $0x8] sm:$0x3] %vm1231_vm11, %v1518_v56  ;;  %1618 = vst.msk [vmem:[#allocation2 + $0x6] sm:$0x3] %vm1231_vm11, %v1615_v25 }
0x1ba7   :  { %1617 = vst.msk [vmem:[#allocation2 + $0x8] sm:$0x3] %vm1228_vm10, %v1615_v25 }
0x1ba8   :  { %v1710_v57 = vpop.permute.xlu1 %1709 }
0x1ba9   :  { %1712 = vst.msk [vmem:[#allocation2 + $0xa] sm:$0x3] %vm1228_vm10, %v1710_v57  ;;  %v1905_v3 = vld [vmem:[#allocation2 + $0x2] sm:$0x3] }
0x1baa   :  { %1713 = vst.msk [vmem:[#allocation2 + $0x4] sm:$0x3] %vm1231_vm11, %v1710_v57  ;;  %v1910_v6 = vld [vmem:[#allocation2 + $0xc] sm:$0x3] }
0x1bad   :  { %v1907_v1 = vld [vmem:[#allocation2 + $0x6] sm:$0x3] }
0x1bae   :  { %v1908_v2 = vld [vmem:[#allocation2 + $0x8] sm:$0x3] }
0x1bb0   :  { %v1909_v8 = vld [vmem:[#allocation2 + $0xa] sm:$0x3] }
0x1bb1   :  { %v1906_v60 = vld [vmem:[#allocation2 + $0x4] sm:$0x3]  ;;  %v1950_v4 = vcombine.low %v1908_v2, %v1909_v8 }
0x1bb2   :  { %v1934_v61 = vcombine.low %v1906_v60, %v1907_v1 }
0x1bb3   :  { %v1958_v27 = vrot.slane %v1950_v4, %v3510_v15 }
0x1bb4   :  { %v1948_v26 = vrot.slane %v1934_v61, %v3510_v15 }
0x1c15   :  { %v1900_v59 = vpop.permute.xlu1 %1899 }
0x1c16   :  { %1902 = vst.msk [vmem:[#allocation2 + $0xe] sm:$0x3] %vm1228_vm10, %v1900_v59 }
0x1c17   :  { %1903 = vst.msk [vmem:[#allocation2] sm:$0x3] %vm1231_vm11, %v1900_v59 }
0x1c1d   :  { %v1911_v62 = vld [vmem:[#allocation2 + $0xe] sm:$0x3] }
0x1c1e   :  { %v1904_v5 = vld [vmem:[#allocation2] sm:$0x3]  ;;  %v1951_v20 = vcombine.low %v1910_v6, %v1911_v62 }
0x1c1f   :  { %v1933_v63 = vcombine.low %v1904_v5, %v1905_v3 }
0x1c20   :  { %v1965_v29 = vrot.slane %v1951_v20, %v3510_v15 }
0x1c21   :  { %v1941_v24 = vrot.slane %v1933_v63, %v3510_v15 }
0x1c22   :  { %v1966_v31 = vcombine.low %v1958_v27, %v1965_v29 }
0x1c23   :  { %v1949_v30 = vcombine.low %v1941_v24, %v1948_v26 }
0x1c25   :  { %v1969_v32 = vpack.c.bf16 %v1966_v31, %v1949_v30 }
0x1c27   :  { %3202 = vmatmul.mubr.msk.bf16.vlgmr.msra.gmra.mrb[28].mxu0 %vm937_vm9, %v1969_v32  ;;  %3210 = vmatmul.mubr.msk.bf16.vlgmr.msra.gmra.mrb[28].mxu1 %vm937_vm9, %v1969_v32 }
0x1c28   :  { %3214 = vmatpush3.bf16.msra.mxu0 %v3888_v23  ;;  %3217 = vmatprep.mubr.msk.bf16.mxu0 %vm3445_vm1, %v3444_v0 }
0x1c29   :  { %3215 = vmatprep.subr.bf16.mxu0 %v3444_v0  ;;  %3222 = vmatpush3.bf16.msra.mxu1 %v3888_v23 }
0x1c2a   :  { %3223 = vmatprep.subr.bf16.mxu1 %v3444_v0  ;;  %3225 = vmatprep.mubr.msk.bf16.mxu1 %vm3445_vm1, %v3444_v0 }
0x1c2c   :  { %3216 = vmatpush3.bf16.msra.mxu0 %v3893_v33 }
0x1c2d   :  { %3224 = vmatpush3.bf16.msra.mxu1 %v3893_v33  ;;  %3229 = vmatprep.subr.bf16.mxu0 %v3444_v0 }
0x1c2e   :  { %3237 = vmatprep.subr.bf16.mxu1 %v3444_v0 }
0x1c2f   :  { %3218 = vmatmul.mubr.bf16.vlgmr.msra.gmra.mrb[32].mxu0 %v3454_v41 }
0x1c30   :  { %3230 = vmatpush3.bf16.msra.mxu0 %v3888_v23  ;;  %3233 = vmatprep.mubr.msk.bf16.mxu0 %vm3445_vm1, %v3444_v0 }
0x1c31   :  { %3231 = vmatprep.subr.bf16.mxu0 %v3444_v0 }
0x1c34   :  { %3232 = vmatpush3.bf16.msra.mxu0 %v3893_v33 }
0x1c35   :  { %3245 = vmatprep.subr.bf16.mxu0 %v3444_v0 }
0x1cfa   :  { %v2023_v37 = vpop.f32.mrb[28].mxu0  ;;  %v2120_v12 = vpop.f32.mrb[28].mxu1 }
0x1cfb   :  { %v2024_v41 = vadd.f32 %v2023_v37, %v1973_v36  ;;  %v2129_v39 = vcombine.high %v2120_v12, %v2120_v12  ;;  %v3203_v42 = vpop.f32.mrb[29].mxu0  ;;  %v3211_v18 = vpop.f32.mrb[29].mxu1  ;;  %v2136_v44 = vrot.slane %v2120_v12, %v3510_v15 }
0x1cfc   :  { %v2026_v7 = vpop.f32.mrb[30].mxu0  ;;  %v2123_v43 = vpop.f32.mrb[30].mxu1 }
0x1cfd   :  { %v2032_v38 = vcombine.high %v2024_v41, %v2024_v41  ;;  %v2039_v55 = vrot.slane %v2024_v41, %v3510_v15  ;;  %v2143_v11 = vrot.slane %v2129_v39, %v3510_v15  ;;  %v3204_v45 = vpop.f32.mrb[31].mxu0  ;;  %v3212_v40 = vpop.f32.mrb[31].mxu1  ;;  %v2027_v9 = vadd.f32 %v2026_v7, %v1973_v36 }
0x1cfe   :  { %v2146_v13 = vcombine.high %v2123_v43, %v2123_v43  ;;  %v2153_v14 = vrot.slane %v2123_v43, %v3510_v15  ;;  %v2144_v50 = vcombine.high %v2136_v44, %v2136_v44 }
0x1cff   :  { %v2046_v10 = vrot.slane %v2032_v38, %v3510_v15  ;;  %v2047_v35 = vcombine.high %v2039_v55, %v2039_v55  ;;  %v2145_v28 = vcombine.high %v2143_v11, %v2143_v11  ;;  %v2049_v47 = vcombine.high %v2027_v9, %v2027_v9 }
0x1d00   :  { %v2056_v48 = vrot.slane %v2027_v9, %v3510_v15  ;;  %v2160_v21 = vrot.slane %v2146_v13, %v3510_v15  ;;  %v2161_v49 = vcombine.high %v2153_v14, %v2153_v14 }
0x1d01   :  { %v2048_v25 = vcombine.high %v2046_v10, %v2046_v10  ;;  %v2063_v51 = vrot.slane %v2049_v47, %v3510_v15 }
0x1d02   :  { %v2064_v58 = vcombine.high %v2056_v48, %v2056_v48  ;;  %v2162_v17 = vcombine.high %v2160_v21, %v2160_v21  ;;  %v2218_v52 = vpop.f32.mrb[32].mxu0  ;;  %v2262_v53 = vadd.f32 %v2160_v21, %v2047_v35  ;;  %v3929_v19 = vadd.f32 %v2161_v49, %v2046_v10 }
0x1d03   :  { %v2235_v16 = vadd.f32 %v3923_v46, %v2218_v52  ;;  %v3219_v22 = vpop.f32.mrb[33].mxu0  ;;  %v3931_v54 = vadd.f32 %v2153_v14, %v2048_v25  ;;  %v3933_v56 = vadd.f32 %v2145_v28, %v2056_v48  ;;  %v3937_v8 = vadd.f32 %v2144_v50, %v2063_v51 }
0x1d04   :  { %v2171_v57 = vadd.f32 %v2162_v17, %v2039_v55  ;;  %v2221_v59 = vpop.f32.mrb[34].mxu0  ;;  %v3935_v60 = vadd.f32 %v2143_v11, %v2064_v58  ;;  %v2065_v1 = vcombine.high %v2063_v51, %v2063_v51 }
0x1d05   :  { %v3220_v2 = vpop.f32.mrb[35].mxu0  ;;  %v2243_v3 = vrot.slane %v2235_v16, %v3510_v15 }
0x1d06   :  { %v3940_v61 = vadd.f32 %v2136_v44, %v2065_v1  ;;  %v2224_v4 = vadd.f32 %v2218_v52, %v2171_v57 }
0x1d07   :  { %2244 = vrot.lane.b32.xlu0 %v2243_v3, %s3442_s22 }
0x1d08   :  { %v2998_v5 = vmul.f32 -1.442695, %v2224_v4 }
0x1d0a   :  { %3369 = vpow2.f32 %v2998_v5 }
0x1d14   :  { %v3370_v6 = vpop.eup %3369 }
0x1d15   :  { %v2228_v62 = vadd.f32 1.0, %v3370_v6 }
0x1d17   :  { %3371 = vrcp.f32 %v2228_v62 }
0x1d21   :  { %v3372_v63 = vpop.eup %3371 }
0x1d22   :  { %v2254_v30 = vsub.f32 1.0, %v3372_v63  ;;  %v2260_v32 = vmul.f32 0.0, %v3372_v63 }
0x1d79   :  { %v2245_v20 = vpop.permute.xlu0 %2244 }
0x1d7a   :  { %v2247_v24 = vmul.f32 %v3372_v63, %v2245_v20 }
0x1d7c   :  { %2249 = vrot.lane.b32.xlu1 %v2247_v24, %s3442_s22 }
0x1dee   :  { %v2250_v26 = vpop.permute.xlu1 %2249 }
0x1def   :  { %v2252_v27 = vadd.f32 %v2250_v26, %v2171_v57 }
0x1df1   :  { %3373 = vtanh.f32 %v2252_v27 }
0x1dfb   :  { %v3374_v29 = vpop.eup %3373 }
0x1dfc   :  { %2256 = vrot.lane.b32.xlu0 %v3374_v29, %s3453_s12 }
0x1e6e   :  { %v2257_v31 = vpop.permute.xlu0 %2256 }
0x1e6f   :  { %v2259_v34 = vmul.f32 %v2257_v31, %v2254_v30 }
0x1e71   :  { %v2261_v36 = vadd.f32 %v2260_v32, %v2259_v34 }
0x1e73   :  { %v3945_v37 = vpack.c.bf16 %v2261_v36, %v2261_v36 }
0x1e75   :  { %2265 = vrot.lane.b32.xlu1 %v3945_v37, %s3453_s12 }
0x1ee7   :  { %v2266_v12 = vpop.permute.xlu1 %2265 }
0x1ee8   :  { %3226 = vmatmul.mubr.msk.bf16.vlgmr.msra.gmra.mrb[32].mxu1 %vm937_vm9, %v2266_v12 }
0x1ee9   :  { %3238 = vmatpush3.bf16.msra.mxu1 %v3888_v23  ;;  %3241 = vmatprep.mubr.msk.bf16.mxu1 %vm3445_vm1, %v3444_v0 }
0x1eea   :  { %3239 = vmatprep.subr.bf16.mxu1 %v3444_v0 }
0x1eed   :  { %3240 = vmatpush3.bf16.msra.mxu1 %v3893_v33 }
0x1eee   :  { %3253 = vmatprep.subr.bf16.mxu1 %v3444_v0 }
0x1fbb   :  { %v2304_v41 = vpop.f32.mrb[32].mxu1 }
0x1fbc   :  { %v2317_v39 = vadd.f32 %v2304_v41, %v3923_v46  ;;  %v3227_v42 = vpop.f32.mrb[33].mxu1  ;;  %v2310_v38 = vadd.f32 %v2304_v41, %v2262_v53 }
0x1fbd   :  { %v2307_v18 = vpop.f32.mrb[34].mxu1 }
0x1fbe   :  { %v3228_v7 = vpop.f32.mrb[35].mxu1  ;;  %v2325_v43 = vrot.slane %v2317_v39, %v3510_v15  ;;  %v3000_v55 = vmul.f32 -1.442695, %v2310_v38 }
0x1fc0   :  { %2326 = vrot.lane.b32.xlu0 %v2325_v43, %s3442_s22  ;;  %3375 = vpow2.f32 %v3000_v55 }
0x1fca   :  { %v3376_v44 = vpop.eup %3375 }
0x1fcb   :  { %v2314_v11 = vadd.f32 1.0, %v3376_v44 }
0x1fcd   :  { %3377 = vrcp.f32 %v2314_v11 }
0x1fd7   :  { %v3378_v45 = vpop.eup %3377 }
0x1fd8   :  { %v2336_v35 = vsub.f32 1.0, %v3378_v45  ;;  %v2342_v47 = vmul.f32 %v3378_v45, %v2261_v36 }
0x2032   :  { %v2327_v40 = vpop.permute.xlu0 %2326 }
0x2033   :  { %v2329_v9 = vmul.f32 %v3378_v45, %v2327_v40 }
0x2035   :  { %2331 = vrot.lane.b32.xlu1 %v2329_v9, %s3442_s22 }
0x20a7   :  { %v2332_v13 = vpop.permute.xlu1 %2331 }
0x20a8   :  { %v2334_v14 = vadd.f32 %v2332_v13, %v2262_v53 }
0x20aa   :  { %3379 = vtanh.f32 %v2334_v14 }
0x20b4   :  { %v3380_v10 = vpop.eup %3379 }
0x20b5   :  { %2338 = vrot.lane.b32.xlu0 %v3380_v10, %s3453_s12 }
0x2127   :  { %v2339_v28 = vpop.permute.xlu0 %2338 }
0x2128   :  { %v2341_v48 = vmul.f32 %v2339_v28, %v2336_v35 }
0x212a   :  { %v2343_v21 = vadd.f32 %v2342_v47, %v2341_v48 }
0x212c   :  { %v2345_v49 = vpack.c.bf16 %v2343_v21, %v2343_v21 }
0x212e   :  { %2347 = vrot.lane.b32.xlu1 %v2345_v49, %s3453_s12 }
0x21a0   :  { %v2348_v50 = vpop.permute.xlu1 %2347 }
0x21a1   :  { %3234 = vmatmul.mubr.msk.bf16.vlgmr.msra.gmra.mrb[36].mxu0 %vm937_vm9, %v2348_v50 }
0x21a2   :  { %3246 = vmatpush3.bf16.msra.mxu0 %v3888_v23  ;;  %3249 = vmatprep.mubr.msk.bf16.mxu0 %vm3445_vm1, %v3444_v0 }
0x21a3   :  { %3247 = vmatprep.subr.bf16.mxu0 %v3444_v0 }
0x21a6   :  { %3248 = vmatpush3.bf16.msra.mxu0 %v3893_v33 }
0x21a7   :  { %3261 = vmatprep.subr.bf16.mxu0 %v3444_v0 }
0x2274   :  { %v2386_v25 = vpop.f32.mrb[36].mxu0 }
0x2275   :  { %v2399_v51 = vadd.f32 %v2386_v25, %v3923_v46  ;;  %v3235_v58 = vpop.f32.mrb[37].mxu0  ;;  %v2392_v16 = vadd.f32 %v2386_v25, %v3929_v19 }
0x2276   :  { %v2389_v17 = vpop.f32.mrb[38].mxu0 }
0x2277   :  { %v3236_v52 = vpop.f32.mrb[39].mxu0  ;;  %v2407_v53 = vrot.slane %v2399_v51, %v3510_v15  ;;  %v3002_v22 = vmul.f32 -1.442695, %v2392_v16 }
0x2279   :  { %2408 = vrot.lane.b32.xlu0 %v2407_v53, %s3442_s22  ;;  %3381 = vpow2.f32 %v3002_v22 }
0x2283   :  { %v3382_v57 = vpop.eup %3381 }
0x2284   :  { %v2396_v59 = vadd.f32 1.0, %v3382_v57 }
0x2286   :  { %3383 = vrcp.f32 %v2396_v59 }
0x2290   :  { %v3384_v1 = vpop.eup %3383 }
0x2291   :  { %v2418_v62 = vsub.f32 1.0, %v3384_v1  ;;  %v2424_v20 = vmul.f32 %v3384_v1, %v2343_v21 }
0x22eb   :  { %v2409_v2 = vpop.permute.xlu0 %2408 }
0x22ec   :  { %v2411_v3 = vmul.f32 %v3384_v1, %v2409_v2 }
0x22ee   :  { %2413 = vrot.lane.b32.xlu1 %v2411_v3, %s3442_s22 }
0x2360   :  { %v2414_v4 = vpop.permute.xlu1 %2413 }
0x2361   :  { %v2416_v5 = vadd.f32 %v2414_v4, %v3929_v19 }
0x2363   :  { %3385 = vtanh.f32 %v2416_v5 }
0x236d   :  { %v3386_v6 = vpop.eup %3385 }
0x236e   :  { %2420 = vrot.lane.b32.xlu0 %v3386_v6, %s3453_s12 }
0x23e0   :  { %v2421_v63 = vpop.permute.xlu0 %2420 }
0x23e1   :  { %v2423_v24 = vmul.f32 %v2421_v63, %v2418_v62 }
0x23e3   :  { %v2425_v26 = vadd.f32 %v2424_v20, %v2423_v24 }
0x23e5   :  { %v2427_v27 = vpack.c.bf16 %v2425_v26, %v2425_v26 }
0x23e7   :  { %2429 = vrot.lane.b32.xlu1 %v2427_v27, %s3453_s12 }
0x2459   :  { %v2430_v29 = vpop.permute.xlu1 %2429 }
0x245a   :  { %3242 = vmatmul.mubr.msk.bf16.vlgmr.msra.gmra.mrb[36].mxu1 %vm937_vm9, %v2430_v29 }
0x245b   :  { %3254 = vmatpush3.bf16.msra.mxu1 %v3888_v23  ;;  %3257 = vmatprep.mubr.msk.bf16.mxu1 %vm3445_vm1, %v3444_v0 }
0x245c   :  { %3255 = vmatprep.subr.bf16.mxu1 %v3444_v0 }
0x245f   :  { %3256 = vmatpush3.bf16.msra.mxu1 %v3893_v33 }
0x2460   :  { %3269 = vmatprep.subr.bf16.mxu1 %v3444_v0 }
0x252d   :  { %v2468_v19 = vpop.f32.mrb[36].mxu1 }
0x252e   :  { %v2481_v30 = vadd.f32 %v2468_v19, %v3923_v46  ;;  %v3243_v31 = vpop.f32.mrb[37].mxu1  ;;  %v2474_v12 = vadd.f32 %v2468_v19, %v3931_v54 }
0x252f   :  { %v2471_v32 = vpop.f32.mrb[38].mxu1 }
0x2530   :  { %v3244_v34 = vpop.f32.mrb[39].mxu1  ;;  %v2489_v36 = vrot.slane %v2481_v30, %v3510_v15  ;;  %v3004_v41 = vmul.f32 -1.442695, %v2474_v12 }
0x2532   :  { %2490 = vrot.lane.b32.xlu0 %v2489_v36, %s3442_s22  ;;  %3387 = vpow2.f32 %v3004_v41 }
0x253c   :  { %v3388_v39 = vpop.eup %3387 }
0x253d   :  { %v2478_v42 = vadd.f32 1.0, %v3388_v39 }
0x253f   :  { %3389 = vrcp.f32 %v2478_v42 }
0x2549   :  { %v3390_v18 = vpop.eup %3389 }
0x254a   :  { %v2500_v11 = vsub.f32 1.0, %v3390_v18  ;;  %v2506_v40 = vmul.f32 %v3390_v18, %v2425_v26 }
0x25a4   :  { %v2491_v7 = vpop.permute.xlu0 %2490 }
0x25a5   :  { %v2493_v43 = vmul.f32 %v3390_v18, %v2491_v7 }
0x25a7   :  { %2495 = vrot.lane.b32.xlu1 %v2493_v43, %s3442_s22 }
0x2619   :  { %v2496_v38 = vpop.permute.xlu1 %2495 }
0x261a   :  { %v2498_v55 = vadd.f32 %v2496_v38, %v3931_v54 }
0x261c   :  { %3391 = vtanh.f32 %v2498_v55 }
0x2626   :  { %v3392_v44 = vpop.eup %3391 }
0x2627   :  { %2502 = vrot.lane.b32.xlu0 %v3392_v44, %s3453_s12 }
0x2699   :  { %v2503_v45 = vpop.permute.xlu0 %2502 }
0x269a   :  { %v2505_v9 = vmul.f32 %v2503_v45, %v2500_v11 }
0x269c   :  { %v2507_v13 = vadd.f32 %v2506_v40, %v2505_v9 }
0x269e   :  { %v2509_v14 = vpack.c.bf16 %v2507_v13, %v2507_v13 }
0x26a0   :  { %2511 = vrot.lane.b32.xlu1 %v2509_v14, %s3453_s12 }
0x2712   :  { %v2512_v10 = vpop.permute.xlu1 %2511 }
0x2713   :  { %3250 = vmatmul.mubr.msk.bf16.vlgmr.msra.gmra.mrb[40].mxu0 %vm937_vm9, %v2512_v10 }
0x2714   :  { %3262 = vmatpush3.bf16.msra.mxu0 %v3888_v23  ;;  %3265 = vmatprep.mubr.msk.bf16.mxu0 %vm3445_vm1, %v3444_v0 }
0x2715   :  { %3263 = vmatprep.subr.bf16.mxu0 %v3444_v0 }
0x2718   :  { %3264 = vmatpush3.bf16.msra.mxu0 %v3893_v33 }
0x2719   :  { %3277 = vmatprep.subr.bf16.mxu0 %v3444_v0 }
0x27e6   :  { %v2550_v54 = vpop.f32.mrb[40].mxu0 }
0x27e7   :  { %v2563_v35 = vadd.f32 %v2550_v54, %v3923_v46  ;;  %v3251_v28 = vpop.f32.mrb[41].mxu0  ;;  %v2556_v49 = vadd.f32 %v2550_v54, %v3933_v56 }
0x27e8   :  { %v2553_v47 = vpop.f32.mrb[42].mxu0 }
0x27e9   :  { %v3252_v48 = vpop.f32.mrb[43].mxu0  ;;  %v2571_v21 = vrot.slane %v2563_v35, %v3510_v15  ;;  %v3006_v50 = vmul.f32 -1.442695, %v2556_v49 }
0x27eb   :  { %2572 = vrot.lane.b32.xlu0 %v2571_v21, %s3442_s22  ;;  %3393 = vpow2.f32 %v3006_v50 }
0x27f5   :  { %v3394_v25 = vpop.eup %3393 }
0x27f6   :  { %v2560_v51 = vadd.f32 1.0, %v3394_v25 }
0x27f8   :  { %3395 = vrcp.f32 %v2560_v51 }
0x2802   :  { %v3396_v58 = vpop.eup %3395 }
0x2803   :  { %v2582_v57 = vsub.f32 1.0, %v3396_v58  ;;  %v2588_v1 = vmul.f32 %v3396_v58, %v2507_v13 }
0x285d   :  { %v2573_v17 = vpop.permute.xlu0 %2572 }
0x285e   :  { %v2575_v52 = vmul.f32 %v3396_v58, %v2573_v17 }
0x2860   :  { %2577 = vrot.lane.b32.xlu1 %v2575_v52, %s3442_s22 }
0x28d2   :  { %v2578_v53 = vpop.permute.xlu1 %2577 }
0x28d3   :  { %v2580_v16 = vadd.f32 %v2578_v53, %v3933_v56 }
0x28d5   :  { %3397 = vtanh.f32 %v2580_v16 }
0x28df   :  { %v3398_v22 = vpop.eup %3397 }
0x28e0   :  { %2584 = vrot.lane.b32.xlu0 %v3398_v22, %s3453_s12 }
0x2952   :  { %v2585_v59 = vpop.permute.xlu0 %2584 }
0x2953   :  { %v2587_v2 = vmul.f32 %v2585_v59, %v2582_v57 }
0x2955   :  { %v2589_v3 = vadd.f32 %v2588_v1, %v2587_v2 }
0x2957   :  { %v2591_v4 = vpack.c.bf16 %v2589_v3, %v2589_v3 }
0x2959   :  { %2593 = vrot.lane.b32.xlu1 %v2591_v4, %s3453_s12 }
0x29cb   :  { %v2594_v5 = vpop.permute.xlu1 %2593 }
0x29cc   :  { %3258 = vmatmul.mubr.msk.bf16.vlgmr.msra.gmra.mrb[40].mxu1 %vm937_vm9, %v2594_v5 }
0x29cd   :  { %3270 = vmatpush3.bf16.msra.mxu1 %v3888_v23  ;;  %3273 = vmatprep.mubr.msk.bf16.mxu1 %vm3445_vm1, %v3444_v0 }
0x29ce   :  { %3271 = vmatprep.subr.bf16.mxu1 %v3444_v0 }
0x29d1   :  { %3272 = vmatpush3.bf16.msra.mxu1 %v3893_v33 }
0x29d2   :  { %3283 = vmatprep.subr.bf16.mxu1 %v3444_v0 }
0x2a9f   :  { %v2632_v56 = vpop.f32.mrb[40].mxu1 }
0x2aa0   :  { %v2645_v6 = vadd.f32 %v2632_v56, %v3923_v46  ;;  %v3259_v62 = vpop.f32.mrb[41].mxu1  ;;  %v2638_v23 = vadd.f32 %v2632_v56, %v3935_v60 }
0x2aa1   :  { %v2635_v63 = vpop.f32.mrb[42].mxu1  ;;  %v3320_v62 = vld [vmem:[#allocation3 + $0x80] sm:$0xff]  }
0x2aa2   :  { %v3260_v20 = vpop.f32.mrb[43].mxu1  ;;  %v2653_v24 = vrot.slane %v2645_v6, %v3510_v15  ;;  %v3008_v26 = vmul.f32 -1.442695, %v2638_v23 }
0x2aa4   :  { %2654 = vrot.lane.b32.xlu0 %v2653_v24, %s3442_s22  ;;  %3399 = vpow2.f32 %v3008_v26 }
0x2aae   :  { %v3400_v27 = vpop.eup %3399 }
0x2aaf   :  { %v2642_v29 = vadd.f32 1.0, %v3400_v27 }
0x2ab1   :  { %3401 = vrcp.f32 %v2642_v29 }
0x2abb   :  { %v3402_v33 = vpop.eup %3401 }
0x2abc   :  { %v2664_v36 = vsub.f32 1.0, %v3402_v33  ;;  %v2670_v41 = vmul.f32 %v3402_v33, %v2589_v3  ;;  %v3319_v3 = vld [vmem:[#allocation3 + $0x88] sm:$0xff]  }
0x2b16   :  { %v2655_v19 = vpop.permute.xlu0 %2654 }
0x2b17   :  { %v2657_v30 = vmul.f32 %v3402_v33, %v2655_v19 }
0x2b19   :  { %2659 = vrot.lane.b32.xlu1 %v2657_v30, %s3442_s22  ;;  %v3017_v30 = vld [vmem:[%s4055_s2 + $0xa] ss:$0 sm:$0xff] }
0x2b8b   :  { %v2660_v31 = vpop.permute.xlu1 %2659 }
0x2b8c   :  { %v2662_v32 = vadd.f32 %v2660_v31, %v3935_v60 }
0x2b8e   :  { %3403 = vtanh.f32 %v2662_v32 }
0x2b98   :  { %v3404_v34 = vpop.eup %3403 }
0x2b99   :  { %2666 = vrot.lane.b32.xlu0 %v3404_v34, %s3453_s12 }
0x2c0b   :  { %v2667_v12 = vpop.permute.xlu0 %2666 }
0x2c0c   :  { %v2669_v39 = vmul.f32 %v2667_v12, %v2664_v36 }
0x2c0e   :  { %v2671_v42 = vadd.f32 %v2670_v41, %v2669_v39 }
0x2c10   :  { %v2673_v18 = vpack.c.bf16 %v2671_v42, %v2671_v42 }
0x2c12   :  { %2675 = vrot.lane.b32.xlu1 %v2673_v18, %s3453_s12 }
0x2c84   :  { %v2676_v7 = vpop.permute.xlu1 %2675 }
0x2c85   :  { %3266 = vmatmul.mubr.msk.bf16.vlgmr.msra.gmra.mrb[44].mxu0 %vm937_vm9, %v2676_v7 }
0x2c86   :  { %3279 = vmatprep.mubr.msk.bf16.mxu0 %vm3445_vm1, %v3444_v0  ;;  %3278 = vmatpush3.bf16.msra.mxu0 %v3319_v3 }
0x2d58   :  { %v2714_v43 = vpop.f32.mrb[44].mxu0 }
0x2d59   :  { %v2727_v60 = vadd.f32 %v2714_v43, %v3923_v46  ;;  %v3267_v38 = vpop.f32.mrb[45].mxu0  ;;  %v2720_v45 = vadd.f32 %v2714_v43, %v3937_v8 }
0x2d5a   :  { %v2717_v55 = vpop.f32.mrb[46].mxu0 }
0x2d5b   :  { %v3268_v44 = vpop.f32.mrb[47].mxu0  ;;  %v2735_v11 = vrot.slane %v2727_v60, %v3510_v15  ;;  %v3010_v40 = vmul.f32 -1.442695, %v2720_v45 }
0x2d5d   :  { %2736 = vrot.lane.b32.xlu0 %v2735_v11, %s3442_s22  ;;  %3405 = vpow2.f32 %v3010_v40 }
0x2d67   :  { %v3406_v9 = vpop.eup %3405 }
0x2d68   :  { %v2724_v13 = vadd.f32 1.0, %v3406_v9 }
0x2d6a   :  { %3407 = vrcp.f32 %v2724_v13 }
0x2d74   :  { %v3408_v14 = vpop.eup %3407 }
0x2d75   :  { %v2746_v48 = vsub.f32 1.0, %v3408_v14  ;;  %v2752_v49 = vmul.f32 %v3408_v14, %v2671_v42 }
0x2dcf   :  { %v2737_v10 = vpop.permute.xlu0 %2736 }
0x2dd0   :  { %v2739_v54 = vmul.f32 %v3408_v14, %v2737_v10 }
0x2dd2   :  { %2741 = vrot.lane.b32.xlu1 %v2739_v54, %s3442_s22 }
0x2e44   :  { %v2742_v35 = vpop.permute.xlu1 %2741 }
0x2e45   :  { %v2744_v28 = vadd.f32 %v2742_v35, %v3937_v8 }
0x2e47   :  { %3409 = vtanh.f32 %v2744_v28 }
0x2e51   :  { %v3410_v47 = vpop.eup %3409 }
0x2e52   :  { %2748 = vrot.lane.b32.xlu0 %v3410_v47, %s3453_s12 }
0x2ec4   :  { %v2749_v21 = vpop.permute.xlu0 %2748 }
0x2ec5   :  { %v2751_v50 = vmul.f32 %v2749_v21, %v2746_v48 }
0x2ec7   :  { %v2753_v25 = vadd.f32 %v2752_v49, %v2751_v50 }
0x2ec9   :  { %v2755_v51 = vpack.c.bf16 %v2753_v25, %v2753_v25 }
0x2ecb   :  { %2757 = vrot.lane.b32.xlu1 %v2755_v51, %s3453_s12 }
0x2f3d   :  { %v2758_v58 = vpop.permute.xlu1 %2757 }
0x2f3e   :  { %3274 = vmatmul.mubr.msk.bf16.vlgmr.msra.gmra.mrb[44].mxu1 %vm937_vm9, %v2758_v58 }
0x2f3f   :  { %3285 = vmatprep.mubr.msk.bf16.mxu1 %vm3445_vm1, %v3444_v0  ;;  %3284 = vmatpush3.bf16.msra.mxu1 %v3320_v62 }
0x3011   :  { %v2796_v17 = vpop.f32.mrb[44].mxu1 }
0x3012   :  { %v2809_v8 = vadd.f32 %v2796_v17, %v3923_v46  ;;  %v3275_v52 = vpop.f32.mrb[45].mxu1  ;;  %v2802_v57 = vadd.f32 %v2796_v17, %v3940_v61 }
0x3013   :  { %v2799_v53 = vpop.f32.mrb[46].mxu1 }
0x3014   :  { %v2817_v16 = vrot.slane %v2809_v8, %v3510_v15  ;;  %v3276_v22 = vpop.f32.mrb[47].mxu1  ;;  %v3012_v59 = vmul.f32 -1.442695, %v2802_v57 }
0x3016   :  { %2818 = vrot.lane.b32.xlu0 %v2817_v16, %s3442_s22  ;;  %3411 = vpow2.f32 %v3012_v59 }
0x3020   :  { %v3412_v1 = vpop.eup %3411 }
0x3021   :  { %v2806_v2 = vadd.f32 1.0, %v3412_v1 }
0x3023   :  { %3413 = vrcp.f32 %v2806_v2 }
0x302d   :  { %v3414_v0 = vpop.eup %3413 }
0x302e   :  { %v2828_v63 = vsub.f32 1.0, %v3414_v0  ;;  %v2834_v24 = vmul.f32 %v3414_v0, %v2753_v25 }
0x3088   :  { %v2819_v4 = vpop.permute.xlu0 %2818 }
0x3089   :  { %v2821_v5 = vmul.f32 %v3414_v0, %v2819_v4 }
0x308b   :  { %2823 = vrot.lane.b32.xlu1 %v2821_v5, %s3442_s22 }
0x308f   :  { %2842 = vrot.lane.b32.xlu1 %v3945_v37, %s3455_s17 }
0x30fd   :  { %v2824_v15 = vpop.permute.xlu1 %2823 }
0x30fe   :  { %v2826_v46 = vadd.f32 %v2824_v15, %v3940_v61 }
0x3100   :  { %3415 = vtanh.f32 %v2826_v46 }
0x3101   :  { %v2843_v56 = vpop.permute.xlu1 %2842 }
0x3102   :  { %3280 = vmatmul.mubr.msk.bf16.vlgmr.msra.gmra.mrb[48].mxu0 %vm2850_vm12, %v2843_v56 }
0x310a   :  { %v3416_v6 = vpop.eup %3415 }
0x310b   :  { %2830 = vrot.lane.b32.xlu0 %v3416_v6, %s3453_s12 }
0x317d   :  { %v2831_v20 = vpop.permute.xlu0 %2830 }
0x317e   :  { %v2833_v23 = vmul.f32 %v2831_v20, %v2828_v63 }
0x3180   :  { %v2835_v26 = vadd.f32 %v2834_v24, %v2833_v23 }
0x3182   :  { %v2841_v27 = vpack.c.bf16 %v2835_v26, %v2835_v26 }
0x3184   :  { %2895 = vrot.lane.b32.xlu0 %v2841_v27, %s3453_s12 }
0x31d5   :  { %v2888_v37 = vpop.f32.mrb[48].mxu0 }
0x31d6   :  { %v3281_v61 = vpop.f32.mrb[49].mxu0 }
0x31d7   :  { %v2891_v29 = vpop.f32.mrb[50].mxu0 }
0x31d8   :  { %v3282_v33 = vpop.f32.mrb[51].mxu0 }
0x31f6   :  { %v2896_v19 = vpop.permute.xlu0 %2895 }
0x31f7   :  { %3286 = vmatmul.mubr.msk.bf16.vlgmr.msra.gmra.mrb[48].mxu1 %vm2850_vm12, %v2896_v19 }
0x32ca   :  { %v2940_v31 = vpop.f32.mrb[48].mxu1 }
0x32cb   :  { %v2941_v32 = vadd.f32 %v2940_v31, %v2888_v37  ;;  %v3287_v34 = vpop.f32.mrb[49].mxu1 }
0x32cc   :  { %v2943_v36 = vpop.f32.mrb[50].mxu1 }
0x32cd   :  { %v2950_v12 = vadd.f32 %v3017_v30, %v2941_v32  ;;  %v3288_v41 = vpop.f32.mrb[51].mxu1 }
0x32cf   :  { %2952 = vst.msk [vmem:[%s4056_s3] sm:$0x3] %vm2951_vm13, %v2950_v12 }
0x32d0   :  { %2957 = vsyncpa [#allocation4], 1 }

</bundles_post_ra>
